<compile_context>
chip_gen: v7x
topology: tpu7x:2x2x1
jax: 0.10.0
libtpu: 0.0.40
codegen_flags: <defaults>
</compile_context>

<pallas_src>
import functools

import numpy as np
import jax
import jax.numpy as jnp
from jax import lax
from jax.experimental import pallas as pl
from jax.experimental.pallas import tpu as pltpu

# Padded sizes.  Chosen so that every in-kernel matmul K / N is a multiple of
# 128 lanes and every reshape splits the sublane dim at multiples of 8
# (bt is always a multiple of 8) -> no relayouts, no strided ops.
C1P = 32        # conv1 out-channels 10 -> 32  (lane-group width after conv1)
C2P = 32        # conv2 out-channels 20 -> 32
F1P = 128       # fc1 width 50 -> 128
NCLS = 128      # classes 10 -> 128 (lane-dense output; padded logits get -1e30)
WPAD = 128      # input width 28 -> 128 (zero-padded: conv1 contraction K = 128)

_VMEM_LIMIT = 32 * 1024 * 1024      # safe scoped-VMEM budget on v5e/v6e/v7x


# ------------------------------ kernel helpers -------------------------------

def _banded_dots(x3, w_ref, oh, bt):
    """sum_di  reshape(x3[di:di+oh], (oh*bt, K)) @ w_ref[di]   (f32 accumulate).

    x3:    (H, bt, K) ref or value, rows ordered (row, image)
    w_ref: (5, K, N) bf16 banded weight (built at prep time)
    out:   (oh*bt, N) f32, rows ordered (out_row, image)
    """
    acc = None
    for di in range(w_ref.shape[0]):
        xs = x3[di:di + oh].reshape(oh * bt, x3.shape[-1]).astype(jnp.bfloat16)
        y = jnp.dot(xs, w_ref[di], preferred_element_type=jnp.float32)
        acc = y if acc is None else acc + y
    return acc


def _pool_bias_relu(even, odd, bt, bias):
    """2x2/stride-2 max-pool + bias + ReLU.

    even/odd: (OH*bt, N) conv outputs for even / odd output columns, rows
    ordered (out_row, image).  Column pooling = elementwise max of the two;
    row pooling = max over adjacent row pairs via a tile-aligned reshape
    (bt % 8 == 0) — no strided slices, no scratch round-trips.
    Bias is constant over each pool window, so adding it after the max is
    exact; ReLU last.
    """
    w = jnp.maximum(even, odd)                      # pool over output columns
    rows, n = w.shape
    w = w.reshape(rows // (2 * bt), 2 * bt, n)
    hp = jnp.maximum(w[:, :bt, :], w[:, bt:, :])    # pool over output rows
    hp = hp.reshape(rows // 2, n)
    return jnp.maximum(hp + bias, 0.0)


# --------------------------------- kernel ------------------------------------

def _cnn_fused_kernel(x_ref, w1e_ref, w1o_ref, b1_ref, w2e_ref, w2o_ref, b2_ref,
                      wf1_ref, bf1_ref, wf2_ref, bf2_ref, o_ref, *, bt):
    # x_ref: (28, bt, 128) f32 — rows = image row, sublanes = image, lanes = W.

    # conv1 + bias + 2x2 max-pool + ReLU                 -> (12*bt, 12*C1P)
    e1 = _banded_dots(x_ref, w1e_ref, 24, bt)
    o1 = _banded_dots(x_ref, w1o_ref, 24, bt)
    h1 = _pool_bias_relu(e1, o1, bt, b1_ref[...])

    # conv2 + bias + 2x2 max-pool + ReLU                 -> (4*bt, 4*C2P)
    # TODO(synk): Dropout2d is identity in inference mode; training-mode RNG
    # dropout is not implemented.
    h1r = h1.reshape(12, bt, h1.shape[-1])
    e2 = _banded_dots(h1r, w2e_ref, 8, bt)
    o2 = _banded_dots(h1r, w2o_ref, 8, bt)
    h2 = _pool_bias_relu(e2, o2, bt, b2_ref[...])

    # fc1 + ReLU  (F.dropout: identity in eval mode)
    h2r = h2.reshape(4, bt, h2.shape[-1])
    acc = None
    for r in range(4):
        y = jnp.dot(h2r[r].astype(jnp.bfloat16), wf1_ref[r],
                    preferred_element_type=jnp.float32)
        acc = y if acc is None else acc + y
    hf = jnp.maximum(acc + bf1_ref[...], 0.0)            # (bt, F1P)

    # fc2 + softmax.  Padded class lanes carry a -1e30 bias (and zero weight
    # columns), so exp() underflows to 0 and the 128-wide softmax equals the
    # exact 10-class softmax.
    logits = jnp.dot(hf.astype(jnp.bfloat16), wf2_ref[...],
                     preferred_element_type=jnp.float32) + bf2_ref[...]
    m = jnp.max(logits, axis=-1, keepdims=True)
    e = jnp.exp(logits - m)
    o_ref[...] = e / jnp.sum(e, axis=-1, keepdims=True)


# --------------------------------- wrapper ------------------------------------

def _pick_batch_tile(n):
    # Multiple of 8 keeps every in-kernel reshape sublane-tile aligned.
    # Large enough to fill the MXU M dim (conv1 M = 24*bt, conv2 M = 8*bt),
    # small enough that the grid has >= 2 steps (both v7x TensorCores busy)
    # whenever there is enough work to go around.
    half = (n + 1) // 2
    return int(min(32, max(8, ((half + 7) // 8) * 8)))


def cnn_forward(prep, x_nchw, *, batch_tile=None):
    n = x_nchw.shape[0]
    bt = batch_tile if batch_tile is not None else _pick_batch_tile(n)
    assert bt % 8 == 0
    npad = ((n + bt - 1) // bt) * bt

    # One-time input layout fix (cheap XLA ops on the tiny input):
    #   (N,1,28,28) -> (28, Npad, 128): rows of the conv matmuls become
    #   (image_row, image), and W is zero-padded to 128 so conv1's K is
    #   MXU-native.
    xt = jnp.transpose(x_nchw[:, 0], (1, 0, 2))                  # (28, N, 28)
    xt = jnp.pad(xt, ((0, 0), (0, npad - n), (0, WPAD - 28)))    # (28, Npad, 128)

    weights = (prep["w1e"], prep["w1o"], prep["b1"],
               prep["w2e"], prep["w2o"], prep["b2"],
               prep["wf1"], prep["bf1"], prep["wf2"], prep["bf2"])

    def resident_spec(arr):
        if arr.ndim == 3:
            return pl.BlockSpec(arr.shape, lambda i: (0, 0, 0))
        return pl.BlockSpec(arr.shape, lambda i: (0, 0))

    kernel = functools.partial(_cnn_fused_kernel, bt=bt)
    out = pl.pallas_call(
        kernel,
        out_shape=jax.ShapeDtypeStruct((npad, NCLS), jnp.float32),
        grid=(npad // bt,),
        in_specs=[pl.BlockSpec((28, bt, WPAD), lambda i: (0, i, 0))]
                 + [resident_spec(w) for w in weights],
        out_specs=pl.BlockSpec((bt, NCLS), lambda i: (i, 0)),
        compiler_params=pltpu.CompilerParams(
            dimension_semantics=("parallel",),
            vmem_limit_bytes=_VMEM_LIMIT),
    )(xt, *weights)
    return out[:n, :10]


# ------------------------------- parameters -----------------------------------

def init_params(key):
    def uniform(k, shape, fan_in):
        bound = 1.0 / jnp.sqrt(jnp.float32(fan_in))
        return jax.random.uniform(k, shape, jnp.float32, -bound, bound)

    ks = jax.random.split(key, 8)
    return {
        "conv1_w": uniform(ks[0], (10, 1, 5, 5), 1 * 5 * 5),
        "conv1_b": uniform(ks[1], (10,), 1 * 5 * 5),
        "conv2_w": uniform(ks[2], (20, 10, 5, 5), 10 * 5 * 5),
        "conv2_b": uniform(ks[3], (20,), 10 * 5 * 5),
        "fc1_w": uniform(ks[4], (50, 320), 320),     # PyTorch Linear: (out, in)
        "fc1_b": uniform(ks[5], (50,), 320),
        "fc2_w": uniform(ks[6], (10, 50), 50),
        "fc2_b": uniform(ks[7], (10,), 50),
    }


def prepare_params(params):
    """One-time repack of PyTorch-layout params into banded, padded bf16 mats."""
    p = {k: np.asarray(v, np.float32) for k, v in params.items()}
    w1, w2 = p["conv1_w"], p["conv2_w"]

    # conv1: banded weights, split by output-column parity.
    #   w1e[di, iw, j*C1P + c] = w1[c,0,di,dj]  with iw = 2j   + dj
    #   w1o[di, iw, j*C1P + c] = w1[c,0,di,dj]  with iw = 2j+1 + dj
    w1e = np.zeros((5, WPAD, 12 * C1P), np.float32)
    w1o = np.zeros((5, WPAD, 12 * C1P), np.float32)
    for di in range(5):
        for dj in range(5):
            for j in range(12):
                w1e[di, 2 * j + dj,     j * C1P: j * C1P + 10] = w1[:, 0, di, dj]
                w1o[di, 2 * j + 1 + dj, j * C1P: j * C1P + 10] = w1[:, 0, di, dj]
    b1 = np.zeros((1, 12 * C1P), np.float32)
    for j in range(12):
        b1[0, j * C1P: j * C1P + 10] = p["conv1_b"]

    # conv2: banded weights over the pooled conv1 layout (12 groups of C1P).
    #   w2e[di, pw*C1P + ci, q*C2P + co] = w2[co,ci,di,dj]  with pw = 2q   + dj
    #   w2o[di, pw*C1P + ci, q*C2P + co] = w2[co,ci,di,dj]  with pw = 2q+1 + dj
    w2e = np.zeros((5, 12 * C1P, 4 * C2P), np.float32)
    w2o = np.zeros((5, 12 * C1P, 4 * C2P), np.float32)
    for di in range(5):
        for dj in range(5):
            for q in range(4):
                blk = w2[:, :, di, dj].T                       # (ci=10, co=20)
                pe, po = 2 * q + dj, 2 * q + 1 + dj
                w2e[di, pe * C1P: pe * C1P + 10, q * C2P: q * C2P + 20] = blk
                w2o[di, po * C1P: po * C1P + 10, q * C2P: q * C2P + 20] = blk
    b2 = np.zeros((1, 4 * C2P), np.float32)
    for q in range(4):
        b2[0, q * C2P: q * C2P + 20] = p["conv2_b"]

    # fc1: PyTorch flattens NCHW (c*16 + h*4 + w); our conv2 output rows are
    # (h, image) and lanes are (w-group, c), so split fc1 into 4 per-row mats.
    f1 = p["fc1_w"].reshape(50, 20, 4, 4)                      # (f, c, h, w)
    wf1 = np.zeros((4, 4 * C2P, F1P), np.float32)
    for r in range(4):
        for q in range(4):
            wf1[r, q * C2P: q * C2P + 20, :50] = f1[:, :, r, q].T   # (c, f)
    bf1 = np.zeros((1, F1P), np.float32)
    bf1[0, :50] = p["fc1_b"]

    wf2 = np.zeros((F1P, NCLS), np.float32)
    wf2[:50, :10] = p["fc2_w"].T
    bf2 = np.full((1, NCLS), -1e30, np.float32)                # mask padded classes
    bf2[0, :10] = p["fc2_b"]

    bf16, f32 = jnp.bfloat16, jnp.float32
    return {
        "w1e": jnp.asarray(w1e, bf16), "w1o": jnp.asarray(w1o, bf16),
        "b1": jnp.asarray(b1, f32),
        "w2e": jnp.asarray(w2e, bf16), "w2o": jnp.asarray(w2o, bf16),
        "b2": jnp.asarray(b2, f32),
        "wf1": jnp.asarray(wf1, bf16), "bf1": jnp.asarray(bf1, f32),
        "wf2": jnp.asarray(wf2, bf16), "bf2": jnp.asarray(bf2, f32),
    }


# ------------------------------ pure-JAX reference ----------------------------

def cnn_reference(params, x):
    def pool2(y):
        n, c, h, w = y.shape
        return y.reshape(n, c, h // 2, 2, w // 2, 2).max(axis=(3, 5))

    y = lax.conv_general_dilated(x, params["conv1_w"], (1, 1), "VALID",
                                 dimension_numbers=("NCHW", "OIHW", "NCHW"))
    y = y + params["conv1_b"][None, :, None, None]
    y = jnp.maximum(pool2(y), 0.0)
    y = lax.conv_general_dilated(y, params["conv2_w"], (1, 1), "VALID",
                                 dimension_numbers=("NCHW", "OIHW", "NCHW"))
    y = y + params["conv2_b"][None, :, None, None]
    y = jnp.maximum(pool2(y), 0.0)
    y = y.reshape(y.shape[0], 320)
    y = jnp.maximum(y @ params["fc1_w"].T + params["fc1_b"], 0.0)
    logits = y @ params["fc2_w"].T + params["fc2_b"]
    return jax.nn.softmax(logits, axis=-1)


# ----------------------------------- main --------------------------------------

if __name__ == "__main__":
    key = jax.random.PRNGKey(0)
    k_params, k_input = jax.random.split(key)

    params = init_params(k_params)
    prep = prepare_params(params)

    # The module's forward implies 28x28 single-channel input (flatten -> 320).
    x = jax.random.normal(k_input, (2, 1, 28, 28), jnp.float32)

    out = jax.jit(cnn_forward)(prep, x)
    out = jax.block_until_ready(out)

    assert out.shape == (2, 10)
    assert bool(jnp.all(jnp.isfinite(out)))
    assert bool(jnp.allclose(jnp.sum(out, axis=-1), 1.0, atol=1e-5))

    # Correctness vs a pure-JAX f32 reference (generous tol: bf16 matmul operands).
    ref = cnn_reference(params, x)
    assert bool(jnp.allclose(out, ref, atol=5e-2)), (
        "max |out - ref| = %f" % float(jnp.max(jnp.abs(out - ref))))

    print("KERNEL_OK")
</pallas_src>

<mosaic_0001>
module attributes {stable_mosaic.version = 11 : i64} {
  func.func @_cnn_fused_kernel(%arg0: i32, %arg1: memref<28x8x128xf32, #tpu.memory_space<vmem>>, %arg2: memref<5x128x384xbf16, #tpu.memory_space<vmem>>, %arg3: memref<5x128x384xbf16, #tpu.memory_space<vmem>>, %arg4: memref<1x384xf32, #tpu.memory_space<vmem>>, %arg5: memref<5x384x128xbf16, #tpu.memory_space<vmem>>, %arg6: memref<5x384x128xbf16, #tpu.memory_space<vmem>>, %arg7: memref<1x128xf32, #tpu.memory_space<vmem>>, %arg8: memref<4x128x128xbf16, #tpu.memory_space<vmem>>, %arg9: memref<1x128xf32, #tpu.memory_space<vmem>>, %arg10: memref<128x128xbf16, #tpu.memory_space<vmem>>, %arg11: memref<1x128xf32, #tpu.memory_space<vmem>>, %arg12: memref<8x128xf32, #tpu.memory_space<vmem>>) attributes {dimension_semantics = [#tpu.dimension_semantics<parallel>], iteration_bounds = array<i64: 1>, scalar_prefetch = 0 : i64, scratch_operands = 0 : i64, tpu.core_type = #tpu.core_type<tc>, window_params = [{transform_indices = @transform_0, window_bounds = array<i64: 28, 8, 128>}, {pipeline_mode = #tpu.pipeline_mode<synchronous>, transform_indices = @transform_1, window_bounds = array<i64: 5, 128, 384>}, {pipeline_mode = #tpu.pipeline_mode<synchronous>, transform_indices = @transform_2, window_bounds = array<i64: 5, 128, 384>}, {pipeline_mode = #tpu.pipeline_mode<synchronous>, transform_indices = @transform_3, window_bounds = array<i64: 1, 384>}, {pipeline_mode = #tpu.pipeline_mode<synchronous>, transform_indices = @transform_4, window_bounds = array<i64: 5, 384, 128>}, {pipeline_mode = #tpu.pipeline_mode<synchronous>, transform_indices = @transform_5, window_bounds = array<i64: 5, 384, 128>}, {pipeline_mode = #tpu.pipeline_mode<synchronous>, transform_indices = @transform_6, window_bounds = array<i64: 1, 128>}, {pipeline_mode = #tpu.pipeline_mode<synchronous>, transform_indices = @transform_7, window_bounds = array<i64: 4, 128, 128>}, {pipeline_mode = #tpu.pipeline_mode<synchronous>, transform_indices = @transform_8, window_bounds = array<i64: 1, 128>}, {pipeline_mode = #tpu.pipeline_mode<synchronous>, transform_indices = @transform_9, window_bounds = array<i64: 128, 128>}, {pipeline_mode = #tpu.pipeline_mode<synchronous>, transform_indices = @transform_10, window_bounds = array<i64: 1, 128>}, {transform_indices = @transform_11, window_bounds = array<i64: 8, 128>}]} {
    %c0 = arith.constant 0 : index
    %c0_0 = arith.constant 0 : index
    %c0_1 = arith.constant 0 : index
    %0 = vector.load %arg1[%c0, %c0_0, %c0_1] : memref<28x8x128xf32, #tpu.memory_space<vmem>>, vector<24x8x128xf32>
    %1 = vector.shape_cast %0 : vector<24x8x128xf32> to vector<192x128xf32>
    %2 = arith.truncf %1 : vector<192x128xf32> to vector<192x128xbf16>
    %c0_2 = arith.constant 0 : index
    %c0_3 = arith.constant 0 : index
    %c0_4 = arith.constant 0 : index
    %3 = vector.load %arg2[%c0_2, %c0_3, %c0_4] : memref<5x128x384xbf16, #tpu.memory_space<vmem>>, vector<1x128x384xbf16>
    %4 = vector.shape_cast %3 : vector<1x128x384xbf16> to vector<128x384xbf16>
    %cst = arith.constant dense<0.000000e+00> : vector<192x384xf32>
    %5 = tpu.matmul %2, %4, %cst {dimension_numbers = #tpu.dot_dimension_numbers<[1], [0], [0], [1], [0, 0, 1, 1], [], []>} : vector<192x128xbf16>, vector<128x384xbf16>, vector<192x384xf32> -> vector<192x384xf32>
    %c1 = arith.constant 1 : index
    %c0_5 = arith.constant 0 : index
    %c0_6 = arith.constant 0 : index
    %6 = vector.load %arg1[%c1, %c0_5, %c0_6] : memref<28x8x128xf32, #tpu.memory_space<vmem>>, vector<24x8x128xf32>
    %7 = vector.shape_cast %6 : vector<24x8x128xf32> to vector<192x128xf32>
    %8 = arith.truncf %7 : vector<192x128xf32> to vector<192x128xbf16>
    %c1_7 = arith.constant 1 : index
    %c0_8 = arith.constant 0 : index
    %c0_9 = arith.constant 0 : index
    %9 = vector.load %arg2[%c1_7, %c0_8, %c0_9] : memref<5x128x384xbf16, #tpu.memory_space<vmem>>, vector<1x128x384xbf16>
    %10 = vector.shape_cast %9 : vector<1x128x384xbf16> to vector<128x384xbf16>
    %cst_10 = arith.constant dense<0.000000e+00> : vector<192x384xf32>
    %11 = tpu.matmul %8, %10, %cst_10 {dimension_numbers = #tpu.dot_dimension_numbers<[1], [0], [0], [1], [0, 0, 1, 1], [], []>} : vector<192x128xbf16>, vector<128x384xbf16>, vector<192x384xf32> -> vector<192x384xf32>
    %12 = arith.addf %5, %11 : vector<192x384xf32>
    %c2 = arith.constant 2 : index
    %c0_11 = arith.constant 0 : index
    %c0_12 = arith.constant 0 : index
    %13 = vector.load %arg1[%c2, %c0_11, %c0_12] : memref<28x8x128xf32, #tpu.memory_space<vmem>>, vector<24x8x128xf32>
    %14 = vector.shape_cast %13 : vector<24x8x128xf32> to vector<192x128xf32>
    %15 = arith.truncf %14 : vector<192x128xf32> to vector<192x128xbf16>
    %c2_13 = arith.constant 2 : index
    %c0_14 = arith.constant 0 : index
    %c0_15 = arith.constant 0 : index
    %16 = vector.load %arg2[%c2_13, %c0_14, %c0_15] : memref<5x128x384xbf16, #tpu.memory_space<vmem>>, vector<1x128x384xbf16>
    %17 = vector.shape_cast %16 : vector<1x128x384xbf16> to vector<128x384xbf16>
    %cst_16 = arith.constant dense<0.000000e+00> : vector<192x384xf32>
    %18 = tpu.matmul %15, %17, %cst_16 {dimension_numbers = #tpu.dot_dimension_numbers<[1], [0], [0], [1], [0, 0, 1, 1], [], []>} : vector<192x128xbf16>, vector<128x384xbf16>, vector<192x384xf32> -> vector<192x384xf32>
    %19 = arith.addf %12, %18 : vector<192x384xf32>
    %c3 = arith.constant 3 : index
    %c0_17 = arith.constant 0 : index
    %c0_18 = arith.constant 0 : index
    %20 = vector.load %arg1[%c3, %c0_17, %c0_18] : memref<28x8x128xf32, #tpu.memory_space<vmem>>, vector<24x8x128xf32>
    %21 = vector.shape_cast %20 : vector<24x8x128xf32> to vector<192x128xf32>
    %22 = arith.truncf %21 : vector<192x128xf32> to vector<192x128xbf16>
    %c3_19 = arith.constant 3 : index
    %c0_20 = arith.constant 0 : index
    %c0_21 = arith.constant 0 : index
    %23 = vector.load %arg2[%c3_19, %c0_20, %c0_21] : memref<5x128x384xbf16, #tpu.memory_space<vmem>>, vector<1x128x384xbf16>
    %24 = vector.shape_cast %23 : vector<1x128x384xbf16> to vector<128x384xbf16>
    %cst_22 = arith.constant dense<0.000000e+00> : vector<192x384xf32>
    %25 = tpu.matmul %22, %24, %cst_22 {dimension_numbers = #tpu.dot_dimension_numbers<[1], [0], [0], [1], [0, 0, 1, 1], [], []>} : vector<192x128xbf16>, vector<128x384xbf16>, vector<192x384xf32> -> vector<192x384xf32>
    %26 = arith.addf %19, %25 : vector<192x384xf32>
    %c4 = arith.constant 4 : index
    %c0_23 = arith.constant 0 : index
    %c0_24 = arith.constant 0 : index
    %27 = vector.load %arg1[%c4, %c0_23, %c0_24] : memref<28x8x128xf32, #tpu.memory_space<vmem>>, vector<24x8x128xf32>
    %28 = vector.shape_cast %27 : vector<24x8x128xf32> to vector<192x128xf32>
    %29 = arith.truncf %28 : vector<192x128xf32> to vector<192x128xbf16>
    %c4_25 = arith.constant 4 : index
    %c0_26 = arith.constant 0 : index
    %c0_27 = arith.constant 0 : index
    %30 = vector.load %arg2[%c4_25, %c0_26, %c0_27] : memref<5x128x384xbf16, #tpu.memory_space<vmem>>, vector<1x128x384xbf16>
    %31 = vector.shape_cast %30 : vector<1x128x384xbf16> to vector<128x384xbf16>
    %cst_28 = arith.constant dense<0.000000e+00> : vector<192x384xf32>
    %32 = tpu.matmul %29, %31, %cst_28 {dimension_numbers = #tpu.dot_dimension_numbers<[1], [0], [0], [1], [0, 0, 1, 1], [], []>} : vector<192x128xbf16>, vector<128x384xbf16>, vector<192x384xf32> -> vector<192x384xf32>
    %33 = arith.addf %26, %32 : vector<192x384xf32>
    %c0_29 = arith.constant 0 : index
    %c0_30 = arith.constant 0 : index
    %c0_31 = arith.constant 0 : index
    %34 = vector.load %arg1[%c0_29, %c0_30, %c0_31] : memref<28x8x128xf32, #tpu.memory_space<vmem>>, vector<24x8x128xf32>
    %35 = vector.shape_cast %34 : vector<24x8x128xf32> to vector<192x128xf32>
    %36 = arith.truncf %35 : vector<192x128xf32> to vector<192x128xbf16>
    %c0_32 = arith.constant 0 : index
    %c0_33 = arith.constant 0 : index
    %c0_34 = arith.constant 0 : index
    %37 = vector.load %arg3[%c0_32, %c0_33, %c0_34] : memref<5x128x384xbf16, #tpu.memory_space<vmem>>, vector<1x128x384xbf16>
    %38 = vector.shape_cast %37 : vector<1x128x384xbf16> to vector<128x384xbf16>
    %cst_35 = arith.constant dense<0.000000e+00> : vector<192x384xf32>
    %39 = tpu.matmul %36, %38, %cst_35 {dimension_numbers = #tpu.dot_dimension_numbers<[1], [0], [0], [1], [0, 0, 1, 1], [], []>} : vector<192x128xbf16>, vector<128x384xbf16>, vector<192x384xf32> -> vector<192x384xf32>
    %c1_36 = arith.constant 1 : index
    %c0_37 = arith.constant 0 : index
    %c0_38 = arith.constant 0 : index
    %40 = vector.load %arg1[%c1_36, %c0_37, %c0_38] : memref<28x8x128xf32, #tpu.memory_space<vmem>>, vector<24x8x128xf32>
    %41 = vector.shape_cast %40 : vector<24x8x128xf32> to vector<192x128xf32>
    %42 = arith.truncf %41 : vector<192x128xf32> to vector<192x128xbf16>
    %c1_39 = arith.constant 1 : index
    %c0_40 = arith.constant 0 : index
    %c0_41 = arith.constant 0 : index
    %43 = vector.load %arg3[%c1_39, %c0_40, %c0_41] : memref<5x128x384xbf16, #tpu.memory_space<vmem>>, vector<1x128x384xbf16>
    %44 = vector.shape_cast %43 : vector<1x128x384xbf16> to vector<128x384xbf16>
    %cst_42 = arith.constant dense<0.000000e+00> : vector<192x384xf32>
    %45 = tpu.matmul %42, %44, %cst_42 {dimension_numbers = #tpu.dot_dimension_numbers<[1], [0], [0], [1], [0, 0, 1, 1], [], []>} : vector<192x128xbf16>, vector<128x384xbf16>, vector<192x384xf32> -> vector<192x384xf32>
    %46 = arith.addf %39, %45 : vector<192x384xf32>
    %c2_43 = arith.constant 2 : index
    %c0_44 = arith.constant 0 : index
    %c0_45 = arith.constant 0 : index
    %47 = vector.load %arg1[%c2_43, %c0_44, %c0_45] : memref<28x8x128xf32, #tpu.memory_space<vmem>>, vector<24x8x128xf32>
    %48 = vector.shape_cast %47 : vector<24x8x128xf32> to vector<192x128xf32>
    %49 = arith.truncf %48 : vector<192x128xf32> to vector<192x128xbf16>
    %c2_46 = arith.constant 2 : index
    %c0_47 = arith.constant 0 : index
    %c0_48 = arith.constant 0 : index
    %50 = vector.load %arg3[%c2_46, %c0_47, %c0_48] : memref<5x128x384xbf16, #tpu.memory_space<vmem>>, vector<1x128x384xbf16>
    %51 = vector.shape_cast %50 : vector<1x128x384xbf16> to vector<128x384xbf16>
    %cst_49 = arith.constant dense<0.000000e+00> : vector<192x384xf32>
    %52 = tpu.matmul %49, %51, %cst_49 {dimension_numbers = #tpu.dot_dimension_numbers<[1], [0], [0], [1], [0, 0, 1, 1], [], []>} : vector<192x128xbf16>, vector<128x384xbf16>, vector<192x384xf32> -> vector<192x384xf32>
    %53 = arith.addf %46, %52 : vector<192x384xf32>
    %c3_50 = arith.constant 3 : index
    %c0_51 = arith.constant 0 : index
    %c0_52 = arith.constant 0 : index
    %54 = vector.load %arg1[%c3_50, %c0_51, %c0_52] : memref<28x8x128xf32, #tpu.memory_space<vmem>>, vector<24x8x128xf32>
    %55 = vector.shape_cast %54 : vector<24x8x128xf32> to vector<192x128xf32>
    %56 = arith.truncf %55 : vector<192x128xf32> to vector<192x128xbf16>
    %c3_53 = arith.constant 3 : index
    %c0_54 = arith.constant 0 : index
    %c0_55 = arith.constant 0 : index
    %57 = vector.load %arg3[%c3_53, %c0_54, %c0_55] : memref<5x128x384xbf16, #tpu.memory_space<vmem>>, vector<1x128x384xbf16>
    %58 = vector.shape_cast %57 : vector<1x128x384xbf16> to vector<128x384xbf16>
    %cst_56 = arith.constant dense<0.000000e+00> : vector<192x384xf32>
    %59 = tpu.matmul %56, %58, %cst_56 {dimension_numbers = #tpu.dot_dimension_numbers<[1], [0], [0], [1], [0, 0, 1, 1], [], []>} : vector<192x128xbf16>, vector<128x384xbf16>, vector<192x384xf32> -> vector<192x384xf32>
    %60 = arith.addf %53, %59 : vector<192x384xf32>
    %c4_57 = arith.constant 4 : index
    %c0_58 = arith.constant 0 : index
    %c0_59 = arith.constant 0 : index
    %61 = vector.load %arg1[%c4_57, %c0_58, %c0_59] : memref<28x8x128xf32, #tpu.memory_space<vmem>>, vector<24x8x128xf32>
    %62 = vector.shape_cast %61 : vector<24x8x128xf32> to vector<192x128xf32>
    %63 = arith.truncf %62 : vector<192x128xf32> to vector<192x128xbf16>
    %c4_60 = arith.constant 4 : index
    %c0_61 = arith.constant 0 : index
    %c0_62 = arith.constant 0 : index
    %64 = vector.load %arg3[%c4_60, %c0_61, %c0_62] : memref<5x128x384xbf16, #tpu.memory_space<vmem>>, vector<1x128x384xbf16>
    %65 = vector.shape_cast %64 : vector<1x128x384xbf16> to vector<128x384xbf16>
    %cst_63 = arith.constant dense<0.000000e+00> : vector<192x384xf32>
    %66 = tpu.matmul %63, %65, %cst_63 {dimension_numbers = #tpu.dot_dimension_numbers<[1], [0], [0], [1], [0, 0, 1, 1], [], []>} : vector<192x128xbf16>, vector<128x384xbf16>, vector<192x384xf32> -> vector<192x384xf32>
    %67 = arith.addf %60, %66 : vector<192x384xf32>
    %c0_64 = arith.constant 0 : index
    %c0_65 = arith.constant 0 : index
    %68 = vector.load %arg4[%c0_64, %c0_65] : memref<1x384xf32, #tpu.memory_space<vmem>>, vector<1x384xf32>
    %69 = arith.maximumf %33, %67 : vector<192x384xf32>
    %70 = vector.shape_cast %69 : vector<192x384xf32> to vector<12x16x384xf32>
    %71 = vector.extract_strided_slice %70 {offsets = [0, 0, 0], sizes = [12, 8, 384], strides = [1, 1, 1]} : vector<12x16x384xf32> to vector<12x8x384xf32>
    %72 = vector.extract_strided_slice %70 {offsets = [0, 8, 0], sizes = [12, 8, 384], strides = [1, 1, 1]} : vector<12x16x384xf32> to vector<12x8x384xf32>
    %73 = arith.maximumf %71, %72 : vector<12x8x384xf32>
    %74 = vector.shape_cast %73 : vector<12x8x384xf32> to vector<96x384xf32>
    %75 = vector.broadcast %68 : vector<1x384xf32> to vector<96x384xf32>
    %76 = arith.addf %74, %75 : vector<96x384xf32>
    %cst_66 = arith.constant 0.000000e+00 : f32
    %77 = vector.broadcast %cst_66 : f32 to vector<96x384xf32>
    %78 = arith.maximumf %76, %77 : vector<96x384xf32>
    %79 = vector.shape_cast %78 : vector<96x384xf32> to vector<12x8x384xf32>
    %80 = vector.extract_strided_slice %79 {offsets = [0, 0, 0], sizes = [8, 8, 384], strides = [1, 1, 1]} : vector<12x8x384xf32> to vector<8x8x384xf32>
    %81 = vector.shape_cast %80 : vector<8x8x384xf32> to vector<64x384xf32>
    %82 = arith.truncf %81 : vector<64x384xf32> to vector<64x384xbf16>
    %c0_67 = arith.constant 0 : index
    %c0_68 = arith.constant 0 : index
    %c0_69 = arith.constant 0 : index
    %83 = vector.load %arg5[%c0_67, %c0_68, %c0_69] : memref<5x384x128xbf16, #tpu.memory_space<vmem>>, vector<1x384x128xbf16>
    %84 = vector.shape_cast %83 : vector<1x384x128xbf16> to vector<384x128xbf16>
    %cst_70 = arith.constant dense<0.000000e+00> : vector<64x128xf32>
    %85 = tpu.matmul %82, %84, %cst_70 {dimension_numbers = #tpu.dot_dimension_numbers<[1], [0], [0], [1], [0, 0, 1, 1], [], []>} : vector<64x384xbf16>, vector<384x128xbf16>, vector<64x128xf32> -> vector<64x128xf32>
    %86 = vector.extract_strided_slice %79 {offsets = [1, 0, 0], sizes = [8, 8, 384], strides = [1, 1, 1]} : vector<12x8x384xf32> to vector<8x8x384xf32>
    %87 = vector.shape_cast %86 : vector<8x8x384xf32> to vector<64x384xf32>
    %88 = arith.truncf %87 : vector<64x384xf32> to vector<64x384xbf16>
    %c1_71 = arith.constant 1 : index
    %c0_72 = arith.constant 0 : index
    %c0_73 = arith.constant 0 : index
    %89 = vector.load %arg5[%c1_71, %c0_72, %c0_73] : memref<5x384x128xbf16, #tpu.memory_space<vmem>>, vector<1x384x128xbf16>
    %90 = vector.shape_cast %89 : vector<1x384x128xbf16> to vector<384x128xbf16>
    %cst_74 = arith.constant dense<0.000000e+00> : vector<64x128xf32>
    %91 = tpu.matmul %88, %90, %cst_74 {dimension_numbers = #tpu.dot_dimension_numbers<[1], [0], [0], [1], [0, 0, 1, 1], [], []>} : vector<64x384xbf16>, vector<384x128xbf16>, vector<64x128xf32> -> vector<64x128xf32>
    %92 = arith.addf %85, %91 : vector<64x128xf32>
    %93 = vector.extract_strided_slice %79 {offsets = [2, 0, 0], sizes = [8, 8, 384], strides = [1, 1, 1]} : vector<12x8x384xf32> to vector<8x8x384xf32>
    %94 = vector.shape_cast %93 : vector<8x8x384xf32> to vector<64x384xf32>
    %95 = arith.truncf %94 : vector<64x384xf32> to vector<64x384xbf16>
    %c2_75 = arith.constant 2 : index
    %c0_76 = arith.constant 0 : index
    %c0_77 = arith.constant 0 : index
    %96 = vector.load %arg5[%c2_75, %c0_76, %c0_77] : memref<5x384x128xbf16, #tpu.memory_space<vmem>>, vector<1x384x128xbf16>
    %97 = vector.shape_cast %96 : vector<1x384x128xbf16> to vector<384x128xbf16>
    %cst_78 = arith.constant dense<0.000000e+00> : vector<64x128xf32>
    %98 = tpu.matmul %95, %97, %cst_78 {dimension_numbers = #tpu.dot_dimension_numbers<[1], [0], [0], [1], [0, 0, 1, 1], [], []>} : vector<64x384xbf16>, vector<384x128xbf16>, vector<64x128xf32> -> vector<64x128xf32>
    %99 = arith.addf %92, %98 : vector<64x128xf32>
    %100 = vector.extract_strided_slice %79 {offsets = [3, 0, 0], sizes = [8, 8, 384], strides = [1, 1, 1]} : vector<12x8x384xf32> to vector<8x8x384xf32>
    %101 = vector.shape_cast %100 : vector<8x8x384xf32> to vector<64x384xf32>
    %102 = arith.truncf %101 : vector<64x384xf32> to vector<64x384xbf16>
    %c3_79 = arith.constant 3 : index
    %c0_80 = arith.constant 0 : index
    %c0_81 = arith.constant 0 : index
    %103 = vector.load %arg5[%c3_79, %c0_80, %c0_81] : memref<5x384x128xbf16, #tpu.memory_space<vmem>>, vector<1x384x128xbf16>
    %104 = vector.shape_cast %103 : vector<1x384x128xbf16> to vector<384x128xbf16>
    %cst_82 = arith.constant dense<0.000000e+00> : vector<64x128xf32>
    %105 = tpu.matmul %102, %104, %cst_82 {dimension_numbers = #tpu.dot_dimension_numbers<[1], [0], [0], [1], [0, 0, 1, 1], [], []>} : vector<64x384xbf16>, vector<384x128xbf16>, vector<64x128xf32> -> vector<64x128xf32>
    %106 = arith.addf %99, %105 : vector<64x128xf32>
    %107 = vector.extract_strided_slice %79 {offsets = [4, 0, 0], sizes = [8, 8, 384], strides = [1, 1, 1]} : vector<12x8x384xf32> to vector<8x8x384xf32>
    %108 = vector.shape_cast %107 : vector<8x8x384xf32> to vector<64x384xf32>
    %109 = arith.truncf %108 : vector<64x384xf32> to vector<64x384xbf16>
    %c4_83 = arith.constant 4 : index
    %c0_84 = arith.constant 0 : index
    %c0_85 = arith.constant 0 : index
    %110 = vector.load %arg5[%c4_83, %c0_84, %c0_85] : memref<5x384x128xbf16, #tpu.memory_space<vmem>>, vector<1x384x128xbf16>
    %111 = vector.shape_cast %110 : vector<1x384x128xbf16> to vector<384x128xbf16>
    %cst_86 = arith.constant dense<0.000000e+00> : vector<64x128xf32>
    %112 = tpu.matmul %109, %111, %cst_86 {dimension_numbers = #tpu.dot_dimension_numbers<[1], [0], [0], [1], [0, 0, 1, 1], [], []>} : vector<64x384xbf16>, vector<384x128xbf16>, vector<64x128xf32> -> vector<64x128xf32>
    %113 = arith.addf %106, %112 : vector<64x128xf32>
    %114 = vector.extract_strided_slice %79 {offsets = [0, 0, 0], sizes = [8, 8, 384], strides = [1, 1, 1]} : vector<12x8x384xf32> to vector<8x8x384xf32>
    %115 = vector.shape_cast %114 : vector<8x8x384xf32> to vector<64x384xf32>
    %116 = arith.truncf %115 : vector<64x384xf32> to vector<64x384xbf16>
    %c0_87 = arith.constant 0 : index
    %c0_88 = arith.constant 0 : index
    %c0_89 = arith.constant 0 : index
    %117 = vector.load %arg6[%c0_87, %c0_88, %c0_89] : memref<5x384x128xbf16, #tpu.memory_space<vmem>>, vector<1x384x128xbf16>
    %118 = vector.shape_cast %117 : vector<1x384x128xbf16> to vector<384x128xbf16>
    %cst_90 = arith.constant dense<0.000000e+00> : vector<64x128xf32>
    %119 = tpu.matmul %116, %118, %cst_90 {dimension_numbers = #tpu.dot_dimension_numbers<[1], [0], [0], [1], [0, 0, 1, 1], [], []>} : vector<64x384xbf16>, vector<384x128xbf16>, vector<64x128xf32> -> vector<64x128xf32>
    %120 = vector.extract_strided_slice %79 {offsets = [1, 0, 0], sizes = [8, 8, 384], strides = [1, 1, 1]} : vector<12x8x384xf32> to vector<8x8x384xf32>
    %121 = vector.shape_cast %120 : vector<8x8x384xf32> to vector<64x384xf32>
    %122 = arith.truncf %121 : vector<64x384xf32> to vector<64x384xbf16>
    %c1_91 = arith.constant 1 : index
    %c0_92 = arith.constant 0 : index
    %c0_93 = arith.constant 0 : index
    %123 = vector.load %arg6[%c1_91, %c0_92, %c0_93] : memref<5x384x128xbf16, #tpu.memory_space<vmem>>, vector<1x384x128xbf16>
    %124 = vector.shape_cast %123 : vector<1x384x128xbf16> to vector<384x128xbf16>
    %cst_94 = arith.constant dense<0.000000e+00> : vector<64x128xf32>
    %125 = tpu.matmul %122, %124, %cst_94 {dimension_numbers = #tpu.dot_dimension_numbers<[1], [0], [0], [1], [0, 0, 1, 1], [], []>} : vector<64x384xbf16>, vector<384x128xbf16>, vector<64x128xf32> -> vector<64x128xf32>
    %126 = arith.addf %119, %125 : vector<64x128xf32>
    %127 = vector.extract_strided_slice %79 {offsets = [2, 0, 0], sizes = [8, 8, 384], strides = [1, 1, 1]} : vector<12x8x384xf32> to vector<8x8x384xf32>
    %128 = vector.shape_cast %127 : vector<8x8x384xf32> to vector<64x384xf32>
    %129 = arith.truncf %128 : vector<64x384xf32> to vector<64x384xbf16>
    %c2_95 = arith.constant 2 : index
    %c0_96 = arith.constant 0 : index
    %c0_97 = arith.constant 0 : index
    %130 = vector.load %arg6[%c2_95, %c0_96, %c0_97] : memref<5x384x128xbf16, #tpu.memory_space<vmem>>, vector<1x384x128xbf16>
    %131 = vector.shape_cast %130 : vector<1x384x128xbf16> to vector<384x128xbf16>
    %cst_98 = arith.constant dense<0.000000e+00> : vector<64x128xf32>
    %132 = tpu.matmul %129, %131, %cst_98 {dimension_numbers = #tpu.dot_dimension_numbers<[1], [0], [0], [1], [0, 0, 1, 1], [], []>} : vector<64x384xbf16>, vector<384x128xbf16>, vector<64x128xf32> -> vector<64x128xf32>
    %133 = arith.addf %126, %132 : vector<64x128xf32>
    %134 = vector.extract_strided_slice %79 {offsets = [3, 0, 0], sizes = [8, 8, 384], strides = [1, 1, 1]} : vector<12x8x384xf32> to vector<8x8x384xf32>
    %135 = vector.shape_cast %134 : vector<8x8x384xf32> to vector<64x384xf32>
    %136 = arith.truncf %135 : vector<64x384xf32> to vector<64x384xbf16>
    %c3_99 = arith.constant 3 : index
    %c0_100 = arith.constant 0 : index
    %c0_101 = arith.constant 0 : index
    %137 = vector.load %arg6[%c3_99, %c0_100, %c0_101] : memref<5x384x128xbf16, #tpu.memory_space<vmem>>, vector<1x384x128xbf16>
    %138 = vector.shape_cast %137 : vector<1x384x128xbf16> to vector<384x128xbf16>
    %cst_102 = arith.constant dense<0.000000e+00> : vector<64x128xf32>
    %139 = tpu.matmul %136, %138, %cst_102 {dimension_numbers = #tpu.dot_dimension_numbers<[1], [0], [0], [1], [0, 0, 1, 1], [], []>} : vector<64x384xbf16>, vector<384x128xbf16>, vector<64x128xf32> -> vector<64x128xf32>
    %140 = arith.addf %133, %139 : vector<64x128xf32>
    %141 = vector.extract_strided_slice %79 {offsets = [4, 0, 0], sizes = [8, 8, 384], strides = [1, 1, 1]} : vector<12x8x384xf32> to vector<8x8x384xf32>
    %142 = vector.shape_cast %141 : vector<8x8x384xf32> to vector<64x384xf32>
    %143 = arith.truncf %142 : vector<64x384xf32> to vector<64x384xbf16>
    %c4_103 = arith.constant 4 : index
    %c0_104 = arith.constant 0 : index
    %c0_105 = arith.constant 0 : index
    %144 = vector.load %arg6[%c4_103, %c0_104, %c0_105] : memref<5x384x128xbf16, #tpu.memory_space<vmem>>, vector<1x384x128xbf16>
    %145 = vector.shape_cast %144 : vector<1x384x128xbf16> to vector<384x128xbf16>
    %cst_106 = arith.constant dense<0.000000e+00> : vector<64x128xf32>
    %146 = tpu.matmul %143, %145, %cst_106 {dimension_numbers = #tpu.dot_dimension_numbers<[1], [0], [0], [1], [0, 0, 1, 1], [], []>} : vector<64x384xbf16>, vector<384x128xbf16>, vector<64x128xf32> -> vector<64x128xf32>
    %147 = arith.addf %140, %146 : vector<64x128xf32>
    %c0_107 = arith.constant 0 : index
    %c0_108 = arith.constant 0 : index
    %148 = vector.load %arg7[%c0_107, %c0_108] : memref<1x128xf32, #tpu.memory_space<vmem>>, vector<1x128xf32>
    %149 = arith.maximumf %113, %147 : vector<64x128xf32>
    %150 = vector.shape_cast %149 : vector<64x128xf32> to vector<4x16x128xf32>
    %151 = vector.extract_strided_slice %150 {offsets = [0, 0, 0], sizes = [4, 8, 128], strides = [1, 1, 1]} : vector<4x16x128xf32> to vector<4x8x128xf32>
    %152 = vector.extract_strided_slice %150 {offsets = [0, 8, 0], sizes = [4, 8, 128], strides = [1, 1, 1]} : vector<4x16x128xf32> to vector<4x8x128xf32>
    %153 = arith.maximumf %151, %152 : vector<4x8x128xf32>
    %154 = vector.shape_cast %153 : vector<4x8x128xf32> to vector<32x128xf32>
    %155 = vector.broadcast %148 : vector<1x128xf32> to vector<32x128xf32>
    %156 = arith.addf %154, %155 : vector<32x128xf32>
    %cst_109 = arith.constant 0.000000e+00 : f32
    %157 = vector.broadcast %cst_109 : f32 to vector<32x128xf32>
    %158 = arith.maximumf %156, %157 : vector<32x128xf32>
    %159 = vector.shape_cast %158 : vector<32x128xf32> to vector<4x8x128xf32>
    %160 = vector.extract_strided_slice %159 {offsets = [0, 0, 0], sizes = [1, 8, 128], strides = [1, 1, 1]} : vector<4x8x128xf32> to vector<1x8x128xf32>
    %161 = vector.shape_cast %160 : vector<1x8x128xf32> to vector<8x128xf32>
    %162 = arith.truncf %161 : vector<8x128xf32> to vector<8x128xbf16>
    %c0_110 = arith.constant 0 : index
    %c0_111 = arith.constant 0 : index
    %c0_112 = arith.constant 0 : index
    %163 = vector.load %arg8[%c0_110, %c0_111, %c0_112] : memref<4x128x128xbf16, #tpu.memory_space<vmem>>, vector<1x128x128xbf16>
    %164 = vector.shape_cast %163 : vector<1x128x128xbf16> to vector<128x128xbf16>
    %cst_113 = arith.constant dense<0.000000e+00> : vector<8x128xf32>
    %165 = tpu.matmul %162, %164, %cst_113 {dimension_numbers = #tpu.dot_dimension_numbers<[1], [0], [0], [1], [0, 0, 1, 1], [], []>} : vector<8x128xbf16>, vector<128x128xbf16>, vector<8x128xf32> -> vector<8x128xf32>
    %166 = vector.extract_strided_slice %159 {offsets = [1, 0, 0], sizes = [1, 8, 128], strides = [1, 1, 1]} : vector<4x8x128xf32> to vector<1x8x128xf32>
    %167 = vector.shape_cast %166 : vector<1x8x128xf32> to vector<8x128xf32>
    %168 = arith.truncf %167 : vector<8x128xf32> to vector<8x128xbf16>
    %c1_114 = arith.constant 1 : index
    %c0_115 = arith.constant 0 : index
    %c0_116 = arith.constant 0 : index
    %169 = vector.load %arg8[%c1_114, %c0_115, %c0_116] : memref<4x128x128xbf16, #tpu.memory_space<vmem>>, vector<1x128x128xbf16>
    %170 = vector.shape_cast %169 : vector<1x128x128xbf16> to vector<128x128xbf16>
    %cst_117 = arith.constant dense<0.000000e+00> : vector<8x128xf32>
    %171 = tpu.matmul %168, %170, %cst_117 {dimension_numbers = #tpu.dot_dimension_numbers<[1], [0], [0], [1], [0, 0, 1, 1], [], []>} : vector<8x128xbf16>, vector<128x128xbf16>, vector<8x128xf32> -> vector<8x128xf32>
    %172 = arith.addf %165, %171 : vector<8x128xf32>
    %173 = vector.extract_strided_slice %159 {offsets = [2, 0, 0], sizes = [1, 8, 128], strides = [1, 1, 1]} : vector<4x8x128xf32> to vector<1x8x128xf32>
    %174 = vector.shape_cast %173 : vector<1x8x128xf32> to vector<8x128xf32>
    %175 = arith.truncf %174 : vector<8x128xf32> to vector<8x128xbf16>
    %c2_118 = arith.constant 2 : index
    %c0_119 = arith.constant 0 : index
    %c0_120 = arith.constant 0 : index
    %176 = vector.load %arg8[%c2_118, %c0_119, %c0_120] : memref<4x128x128xbf16, #tpu.memory_space<vmem>>, vector<1x128x128xbf16>
    %177 = vector.shape_cast %176 : vector<1x128x128xbf16> to vector<128x128xbf16>
    %cst_121 = arith.constant dense<0.000000e+00> : vector<8x128xf32>
    %178 = tpu.matmul %175, %177, %cst_121 {dimension_numbers = #tpu.dot_dimension_numbers<[1], [0], [0], [1], [0, 0, 1, 1], [], []>} : vector<8x128xbf16>, vector<128x128xbf16>, vector<8x128xf32> -> vector<8x128xf32>
    %179 = arith.addf %172, %178 : vector<8x128xf32>
    %180 = vector.extract_strided_slice %159 {offsets = [3, 0, 0], sizes = [1, 8, 128], strides = [1, 1, 1]} : vector<4x8x128xf32> to vector<1x8x128xf32>
    %181 = vector.shape_cast %180 : vector<1x8x128xf32> to vector<8x128xf32>
    %182 = arith.truncf %181 : vector<8x128xf32> to vector<8x128xbf16>
    %c3_122 = arith.constant 3 : index
    %c0_123 = arith.constant 0 : index
    %c0_124 = arith.constant 0 : index
    %183 = vector.load %arg8[%c3_122, %c0_123, %c0_124] : memref<4x128x128xbf16, #tpu.memory_space<vmem>>, vector<1x128x128xbf16>
    %184 = vector.shape_cast %183 : vector<1x128x128xbf16> to vector<128x128xbf16>
    %cst_125 = arith.constant dense<0.000000e+00> : vector<8x128xf32>
    %185 = tpu.matmul %182, %184, %cst_125 {dimension_numbers = #tpu.dot_dimension_numbers<[1], [0], [0], [1], [0, 0, 1, 1], [], []>} : vector<8x128xbf16>, vector<128x128xbf16>, vector<8x128xf32> -> vector<8x128xf32>
    %186 = arith.addf %179, %185 : vector<8x128xf32>
    %c0_126 = arith.constant 0 : index
    %c0_127 = arith.constant 0 : index
    %187 = vector.load %arg9[%c0_126, %c0_127] : memref<1x128xf32, #tpu.memory_space<vmem>>, vector<1x128xf32>
    %188 = vector.broadcast %187 : vector<1x128xf32> to vector<8x128xf32>
    %189 = arith.addf %186, %188 : vector<8x128xf32>
    %cst_128 = arith.constant 0.000000e+00 : f32
    %190 = vector.broadcast %cst_128 : f32 to vector<8x128xf32>
    %191 = arith.maximumf %189, %190 : vector<8x128xf32>
    %192 = arith.truncf %191 : vector<8x128xf32> to vector<8x128xbf16>
    %c0_129 = arith.constant 0 : index
    %c0_130 = arith.constant 0 : index
    %193 = vector.load %arg10[%c0_129, %c0_130] : memref<128x128xbf16, #tpu.memory_space<vmem>>, vector<128x128xbf16>
    %cst_131 = arith.constant dense<0.000000e+00> : vector<8x128xf32>
    %194 = tpu.matmul %192, %193, %cst_131 {dimension_numbers = #tpu.dot_dimension_numbers<[1], [0], [0], [1], [0, 0, 1, 1], [], []>} : vector<8x128xbf16>, vector<128x128xbf16>, vector<8x128xf32> -> vector<8x128xf32>
    %c0_132 = arith.constant 0 : index
    %c0_133 = arith.constant 0 : index
    %195 = vector.load %arg11[%c0_132, %c0_133] : memref<1x128xf32, #tpu.memory_space<vmem>>, vector<1x128xf32>
    %196 = vector.broadcast %195 : vector<1x128xf32> to vector<8x128xf32>
    %197 = arith.addf %194, %196 : vector<8x128xf32>
    %cst_134 = arith.constant dense<0xFF800000> : vector<8xf32>
    %198 = vector.multi_reduction <maximumf>, %197, %cst_134 [1] : vector<8x128xf32> to vector<8xf32>
    %199 = vector.shape_cast %198 : vector<8xf32> to vector<8x1xf32>
    %200 = vector.broadcast %199 : vector<8x1xf32> to vector<8x128xf32>
    %201 = arith.subf %197, %200 : vector<8x128xf32>
    %202 = math.exp %201 : vector<8x128xf32>
    %cst_135 = arith.constant dense<0.000000e+00> : vector<8xf32>
    %203 = vector.multi_reduction <add>, %202, %cst_135 [1] : vector<8x128xf32> to vector<8xf32>
    %204 = vector.shape_cast %203 : vector<8xf32> to vector<8x1xf32>
    %205 = vector.broadcast %204 : vector<8x1xf32> to vector<8x128xf32>
    %206 = arith.divf %202, %205 : vector<8x128xf32>
    %c0_136 = arith.constant 0 : index
    %c0_137 = arith.constant 0 : index
    %207 = vector.load %arg12[%c0_136, %c0_137] : memref<8x128xf32, #tpu.memory_space<vmem>>, vector<8x128xf32>
    tpu.vector_store %arg12[%c0_136, %c0_137], %206 {strides = array<i32>} : memref<8x128xf32, #tpu.memory_space<vmem>>, vector<8x128xf32>,
    return
  }
  func.func @transform_0(%arg0: i32) -> (i32, i32, i32) {
    %c0_i32 = arith.constant 0 : i32
    %c0_i32_0 = arith.constant 0 : i32
    %c0_i32_1 = arith.constant 0 : i32
    return %c0_i32, %arg0, %c0_i32_0 : i32, i32, i32
  }
  func.func @transform_1(%arg0: i32) -> (i32, i32, i32) {
    %c0_i32 = arith.constant 0 : i32
    %c0_i32_0 = arith.constant 0 : i32
    %c0_i32_1 = arith.constant 0 : i32
    %c0_i32_2 = arith.constant 0 : i32
    return %c0_i32, %c0_i32_0, %c0_i32_1 : i32, i32, i32
  }
  func.func @transform_2(%arg0: i32) -> (i32, i32, i32) {
    %c0_i32 = arith.constant 0 : i32
    %c0_i32_0 = arith.constant 0 : i32
    %c0_i32_1 = arith.constant 0 : i32
    %c0_i32_2 = arith.constant 0 : i32
    return %c0_i32, %c0_i32_0, %c0_i32_1 : i32, i32, i32
  }
  func.func @transform_3(%arg0: i32) -> (i32, i32) {
    %c0_i32 = arith.constant 0 : i32
    %c0_i32_0 = arith.constant 0 : i32
    %c0_i32_1 = arith.constant 0 : i32
    return %c0_i32, %c0_i32_0 : i32, i32
  }
  func.func @transform_4(%arg0: i32) -> (i32, i32, i32) {
    %c0_i32 = arith.constant 0 : i32
    %c0_i32_0 = arith.constant 0 : i32
    %c0_i32_1 = arith.constant 0 : i32
    %c0_i32_2 = arith.constant 0 : i32
    return %c0_i32, %c0_i32_0, %c0_i32_1 : i32, i32, i32
  }
  func.func @transform_5(%arg0: i32) -> (i32, i32, i32) {
    %c0_i32 = arith.constant 0 : i32
    %c0_i32_0 = arith.constant 0 : i32
    %c0_i32_1 = arith.constant 0 : i32
    %c0_i32_2 = arith.constant 0 : i32
    return %c0_i32, %c0_i32_0, %c0_i32_1 : i32, i32, i32
  }
  func.func @transform_6(%arg0: i32) -> (i32, i32) {
    %c0_i32 = arith.constant 0 : i32
    %c0_i32_0 = arith.constant 0 : i32
    %c0_i32_1 = arith.constant 0 : i32
    return %c0_i32, %c0_i32_0 : i32, i32
  }
  func.func @transform_7(%arg0: i32) -> (i32, i32, i32) {
    %c0_i32 = arith.constant 0 : i32
    %c0_i32_0 = arith.constant 0 : i32
    %c0_i32_1 = arith.constant 0 : i32
    %c0_i32_2 = arith.constant 0 : i32
    return %c0_i32, %c0_i32_0, %c0_i32_1 : i32, i32, i32
  }
  func.func @transform_8(%arg0: i32) -> (i32, i32) {
    %c0_i32 = arith.constant 0 : i32
    %c0_i32_0 = arith.constant 0 : i32
    %c0_i32_1 = arith.constant 0 : i32
    return %c0_i32, %c0_i32_0 : i32, i32
  }
  func.func @transform_9(%arg0: i32) -> (i32, i32) {
    %c0_i32 = arith.constant 0 : i32
    %c0_i32_0 = arith.constant 0 : i32
    %c0_i32_1 = arith.constant 0 : i32
    return %c0_i32, %c0_i32_0 : i32, i32
  }
  func.func @transform_10(%arg0: i32) -> (i32, i32) {
    %c0_i32 = arith.constant 0 : i32
    %c0_i32_0 = arith.constant 0 : i32
    %c0_i32_1 = arith.constant 0 : i32
    return %c0_i32, %c0_i32_0 : i32, i32
  }
  func.func @transform_11(%arg0: i32) -> (i32, i32) {
    %c0_i32 = arith.constant 0 : i32
    %c0_i32_0 = arith.constant 0 : i32
    return %arg0, %c0_i32 : i32, i32
  }
}

</mosaic_0001>

<bundles_post_ra>
// kernel: cnn_forward.1
= control target key start
LH: loop header
LB: loop body
LE: loop exit
PB: predicated region body
PF: predicated region fallthrough
CT: control target
= control target key end

     0   :  { %16 = vsyncpa [#allocation3], 0  ;;  %s14401_s0 = inlined_call_operand.vmem [shape: f32[28,8,128], index: 0, kind: input, shape index: {}]   ;;  %s14402_s1 = inlined_call_operand.hbm [shape: bf16[5,128,384], index: 1, kind: input, shape index: {}]   ;;  %s14403_s2 = inlined_call_operand.hbm [shape: bf16[5,128,384], index: 2, kind: input, shape index: {}]   ;;  %s14404_s3 = inlined_call_operand.vmem [shape: f32[1,384], index: 3, kind: input, shape index: {}]   ;;  %s14405_s4 = inlined_call_operand.hbm [shape: bf16[5,384,128], index: 4, kind: input, shape index: {}]   ;;  %s14406_s5 = inlined_call_operand.hbm [shape: bf16[5,384,128], index: 5, kind: input, shape index: {}]   ;;  %s14407_s6 = inlined_call_operand.vmem [shape: f32[1,128], index: 6, kind: input, shape index: {}]   ;;  %s14408_s7 = inlined_call_operand.vmem [shape: bf16[4,128,128], index: 7, kind: input, shape index: {}]   ;;  %s14409_s8 = inlined_call_operand.vmem [shape: f32[1,128], index: 8, kind: input, shape index: {}]   ;;  %s14410_s9 = inlined_call_operand.vmem [shape: bf16[128,128], index: 9, kind: input, shape index: {}]   ;;  %s14411_s10 = inlined_call_operand.vmem [shape: f32[1,128], index: 10, kind: input, shape index: {}]   ;;  %s14412_s11 = inlined_call_operand.vmem [shape: f32[8,128], index: 11, kind: output, shape index: {}]  }
   0x1   :  { %17 = vsyncpa [#allocation5], 0 }
   0x2   :  { %18 = vsyncpa [#allocation8], 0  ;;  %s12835_s17 = smov [#allocation4]   ;;  %s12836_s19 = smov [#allocation2]  }
   0x3   :  { %s38_s18 = sshll.u32 %s12835_s17, 4  ;;  %s26_s20 = sshll.u32 %s12836_s19, 4  ;;  %s39_s18 = int_to_ptr.vmem [resolvable:$true] %s38_s18  ;;  %s12906_s20 = int_to_ptr.vmem [resolvable:$true] %s26_s20 }
   0x4   :  { %s12741_s23 = scalar_lea.hbm %s14403_s2, 15360 }
   0x5   :  { %p12742_p0 = scmp.ne.s32.totalorder %s14403_s2, %s12741_s23  ;;  %p12745_p1 = scmp.lt.u32.totalorder %s12741_s23, %s14403_s2 }
   0x7   :  { %p12747_p2 = pnand %p12745_p1, %p12742_p0 }
   0x9   :  { %12750 = shalt.err (!%p12747_p2)
}
   0xa   :  { %s12751_s28 = scalar_lea.vmem %s39_s18, 15360  ;;  %p12756_p4 = scmp.lt.s32.totalorder %s39_s18, %s39_s18 }
   0xb   :  { %p12752_p3 = scmp.ne.s32.totalorder %s39_s18, %s12751_s28  ;;  %p12757_p5 = scmp.lt.s32.totalorder %s12751_s28, %s12751_s28 }
   0xd   :  { %p12758_p6 = por %p12757_p5, %p12756_p4 }
   0xf   :  { %p12759_p7 = pnand %p12758_p6, %p12752_p3 }
  0x11   :  { %12762 = shalt.err (!%p12759_p7)
}
  0x12   :  { %s12837_s29 = smov 192   ;;  %s12838_s30 = smov 12  }
  0x13   :  { %44 = dma.hbm_to_vmem [thread:$0]  %s14403_s2, 15360, %s39_s18, [#allocation5], %s12837_s29, %s12837_s29, %s12838_s30  }
  0x14   :  { %s12763_s16 = scalar_lea.hbm %s14402_s1, 15360 }
  0x15   :  { %p12764_p8 = scmp.ne.s32.totalorder %s14402_s1, %s12763_s16  ;;  %p12767_p9 = scmp.lt.u32.totalorder %s12763_s16, %s14402_s1 }
  0x17   :  { %p12769_p10 = pnand %p12767_p9, %p12764_p8 }
  0x19   :  { %12772 = shalt.err (!%p12769_p10)
}
  0x1a   :  { %s12773_s23 = scalar_lea.vmem %s12906_s20, 15360  ;;  %p12778_p12 = scmp.lt.s32.totalorder %s12906_s20, %s12906_s20 }
  0x1b   :  { %p12774_p11 = scmp.ne.s32.totalorder %s12906_s20, %s12773_s23  ;;  %p12779_p13 = scmp.lt.s32.totalorder %s12773_s23, %s12773_s23 }
  0x1d   :  { %p12780_p0 = por %p12779_p13, %p12778_p12 }
  0x1f   :  { %p12781_p1 = pnand %p12780_p0, %p12774_p11 }
  0x21   :  { %12784 = shalt.err (!%p12781_p1)
}
  0x22   :  { %32 = dma.hbm_to_vmem [thread:$0]  %s14402_s1, 15360, %s12906_s20, [#allocation3], %s12837_s29, %s12837_s29, %s12838_s30  }
  0x23   :  { %s12839_s24 = smov [#allocation6]   ;;  %s12785_s28 = scalar_lea.hbm %s14405_s4, 15360 }
  0x24   :  { %s52_s25 = sshll.u32 %s12839_s24, 4  ;;  %p12786_p2 = scmp.ne.s32.totalorder %s14405_s4, %s12785_s28  ;;  %s53_s25 = int_to_ptr.vmem [resolvable:$true] %s52_s25 }
  0x25   :  { %p12789_p3 = scmp.lt.u32.totalorder %s12785_s28, %s14405_s4 }
  0x27   :  { %p12791_p4 = pnand %p12789_p3, %p12786_p2 }
  0x29   :  { %12794 = shalt.err (!%p12791_p4)
}
  0x2a   :  { %s12795_s16 = scalar_lea.vmem %s53_s25, 15360  ;;  %p12800_p6 = scmp.lt.s32.totalorder %s53_s25, %s53_s25 }
  0x2b   :  { %p12796_p5 = scmp.ne.s32.totalorder %s53_s25, %s12795_s16  ;;  %p12801_p7 = scmp.lt.s32.totalorder %s12795_s16, %s12795_s16 }
  0x2d   :  { %p12802_p8 = por %p12801_p7, %p12800_p6 }
  0x2f   :  { %p12803_p9 = pnand %p12802_p8, %p12796_p5 }
  0x31   :  { %12806 = shalt.err (!%p12803_p9)
}
  0x32   :  { %s12840_s1 = smov 64   ;;  %s12841_s20 = smov 4  }
  0x33   :  { %58 = dma.hbm_to_vmem [thread:$0]  %s14405_s4, 15360, %s53_s25, [#allocation5], %s12840_s1, %s12840_s1, %s12841_s20  }
  0x34   :  { %s12842_s17 = smov [#allocation7]   ;;  %s12807_s23 = scalar_lea.hbm %s14406_s5, 15360 }
  0x35   :  { %s64_s19 = sshll.u32 %s12842_s17, 4  ;;  %p12808_p10 = scmp.ne.s32.totalorder %s14406_s5, %s12807_s23  ;;  %s65_s19 = int_to_ptr.vmem [resolvable:$true] %s64_s19 }
  0x36   :  { %p12811_p11 = scmp.lt.u32.totalorder %s12807_s23, %s14406_s5 }
  0x38   :  { %p12813_p12 = pnand %p12811_p11, %p12808_p10 }
  0x3a   :  { %12816 = shalt.err (!%p12813_p12)
}
  0x3b   :  { %s12817_s27 = scalar_lea.vmem %s65_s19, 15360  ;;  %p12822_p0 = scmp.lt.s32.totalorder %s65_s19, %s65_s19 }
  0x3c   :  { %p12818_p13 = scmp.ne.s32.totalorder %s65_s19, %s12817_s27  ;;  %p12823_p1 = scmp.lt.s32.totalorder %s12817_s27, %s12817_s27 }
  0x3e   :  { %p12824_p2 = por %p12823_p1, %p12822_p0 }
  0x40   :  { %p12825_p3 = pnand %p12824_p2, %p12818_p13 }
  0x42   :  { %12828 = shalt.err (!%p12825_p3)
}
  0x43   :  { %70 = dma.hbm_to_vmem [thread:$0]  %s14406_s5, 15360, %s65_s19, [#allocation8], %s12840_s1, %s12840_s1, %s12841_s20  }
  0x44   :  { %12829 = dma.done.wait [#allocation3], 15360  }
  0x45   :  { %12830 = vsyncadd [#allocation3], 4294951936 }
  0x46   :  { %12831 = dma.done.wait [#allocation5], 30720  }
  0x47   :  { %12832 = vsyncadd [#allocation5], 4294936576 }
  0x48   :  { %12833 = dma.done.wait [#allocation8], 15360  }
  0x49   :  { %12834 = vsyncadd [#allocation8], 4294951936  ;;  %v14413_v0 = vmov 0   ;;  %v12137_v1 = vld [vmem:[#allocation2 + $0xc8] ss:$12 sps:$4 sm:$0xff]   ;;  %v12980_v12 = vld [vmem:[%s14401_s0 + $0x18] sm:$0xff] }
  0x4a   :  { %392 = vmatprep.mubr.bf16.mxu0 %v14413_v0  ;;  %v12138_v2 = vld [vmem:[#allocation2 + $0xe0] ss:$12 sps:$4 sm:$0xff]   ;;  %10666 = vmatprep.subr.bf16.mxu1 %v12137_v1  ;;  %v12139_v3 = vld [vmem:[#allocation2 + $0xf8] ss:$12 sps:$4 sm:$0xff]   ;;  %v12140_v4 = vld [vmem:[#allocation2 + $0x110] ss:$12 sps:$4 sm:$0xff]  }
  0x4b   :  { %10667 = vmatpush3.bf16.msra.mxu1 %v12137_v1  ;;  %v12965_v5 = vld [vmem:[%s14401_s0 + $0x8] sm:$0xff]  ;;  %v12970_v6 = vld [vmem:[%s14401_s0 + $0x10] sm:$0xff]  ;;  %v12143_v10 = vld [vmem:[#allocation2 + $0x158] ss:$12 sps:$4 sm:$0xff]   ;;  %vm12845_vm0 = vmmov 0  }
  0x4c   :  { %10668 = vmatprep.subr.bf16.mxu1 %v12138_v2  ;;  %v12974_v7 = vpack.c.bf16 %v12970_v6, %v12965_v5  ;;  %v12141_v8 = vld [vmem:[#allocation2 + $0x128] ss:$12 sps:$4 sm:$0xff]   ;;  %v12142_v9 = vld [vmem:[#allocation2 + $0x140] ss:$12 sps:$4 sm:$0xff]   ;;  %v12144_v11 = vld [vmem:[#allocation2 + $0x170] ss:$12 sps:$4 sm:$0xff]  }
  0x4d   :  { %v12985_v13 = vld [vmem:[%s14401_s0 + $0x20] sm:$0xff]  ;;  %v12145_v14 = vld [vmem:[#allocation2 + $0x8] ss:$12 sps:$4 sm:$0xff]   ;;  %v13008_v25 = vld [vmem:[%s14401_s0 + $0x38] sm:$0xff] }
  0x4e   :  { %10682 = vmatprep.mubr.bf16.mxu1 %v12974_v7  ;;  %v12154_v15 = vld [vmem:[#allocation2 + $0xc4] ss:$12 sps:$4 sm:$0xff]   ;;  %v12156_v16 = vld [vmem:[#allocation2 + $0xc0] ss:$12 sps:$4 sm:$0xff]   ;;  %v12158_v19 = vld [vmem:[#allocation2 + $0xdc] ss:$12 sps:$4 sm:$0xff]   ;;  %v12999_v21 = vpack.c.bf16 %v12985_v13, %v12980_v12 }
  0x4f   :  { %10669 = vmatpush3.bf16.msra.mxu1 %v12138_v2  ;;  %v12990_v17 = vld [vmem:[%s14401_s0 + $0x28] sm:$0xff]  ;;  %v12995_v18 = vld [vmem:[%s14401_s0 + $0x30] sm:$0xff]  ;;  %360 = vmatprep.subr.bf16.mxu0 %v12154_v15  ;;  %v12160_v20 = vld [vmem:[#allocation2 + $0xd8] ss:$12 sps:$4 sm:$0xff]  }
  0x50   :  { %10670 = vmatprep.subr.bf16.mxu1 %v12139_v3  ;;  %361 = vmatpush1.bf16.msra.mxu0 %v12156_v16  ;;  %v12162_v22 = vld [vmem:[#allocation2 + $0xf4] ss:$12 sps:$4 sm:$0xff]   ;;  %v13003_v23 = vpack.c.bf16 %v12995_v18, %v12990_v17  ;;  %v12164_v27 = vld [vmem:[#allocation2 + $0xf0] ss:$12 sps:$4 sm:$0xff]   ;;  %v12147_v28 = vld [vmem:[#allocation2 + $0x38] ss:$12 sps:$4 sm:$0xff]  }
  0x51   :  { %362 = vmatprep.subr.bf16.mxu0 %v12158_v19  ;;  %v12146_v24 = vld [vmem:[#allocation2 + $0x20] ss:$12 sps:$4 sm:$0xff]   ;;  %v13025_v31 = vld [vmem:[%s14401_s0 + $0x50] sm:$0xff]  ;;  %v13038_v37 = vld [vmem:[%s14401_s0 + $0x58] sm:$0xff] }
  0x52   :  { %v13013_v26 = vld [vmem:[%s14401_s0 + $0x40] sm:$0xff]  ;;  %v12165_v29 = vld [vmem:[#allocation2 + $0x10c] ss:$12 sps:$4 sm:$0xff]   ;;  %v12167_v32 = vld [vmem:[#allocation2 + $0x108] ss:$12 sps:$4 sm:$0xff]  }
  0x53   :  { %10671 = vmatpush3.bf16.msra.mxu1 %v12139_v3  ;;  %v13020_v30 = vld [vmem:[%s14401_s0 + $0x48] sm:$0xff]  ;;  %v13029_v33 = vpack.c.bf16 %v13013_v26, %v13008_v25  ;;  %v12169_v34 = vld [vmem:[#allocation2 + $0x124] ss:$12 sps:$4 sm:$0xff]   ;;  %v12176_v46 = vld [vmem:[#allocation2 + $0x154] ss:$12 sps:$4 sm:$0xff]  }
  0x54   :  { %10672 = vmatprep.subr.bf16.mxu1 %v12140_v4  ;;  %363 = vmatpush1.bf16.msra.mxu0 %v12160_v20  ;;  %v13033_v35 = vpack.c.bf16 %v13025_v31, %v13020_v30  ;;  %v12148_v36 = vld [vmem:[#allocation2 + $0x50] ss:$12 sps:$4 sm:$0xff]   ;;  %v13043_v38 = vld [vmem:[%s14401_s0 + $0x60] sm:$0xff]  ;;  %v13049_v40 = vld [vmem:[%s14401_s0 + $0x68] sm:$0xff] }
  0x55   :  { %364 = vmatprep.subr.bf16.mxu0 %v12162_v22  ;;  %v12171_v39 = vld [vmem:[#allocation2 + $0x120] ss:$12 sps:$4 sm:$0xff]   ;;  %v12173_v41 = vld [vmem:[#allocation2 + $0x13c] ss:$12 sps:$4 sm:$0xff]   ;;  %v13055_v42 = vld [vmem:[%s14401_s0 + $0x70] sm:$0xff]  ;;  %v13059_v45 = vpack.c.bf16 %v13043_v38, %v13038_v37 }
  0x56   :  { %v12149_v43 = vld [vmem:[#allocation2 + $0x68] ss:$12 sps:$4 sm:$0xff]   ;;  %v12175_v44 = vld [vmem:[#allocation2 + $0x138] ss:$12 sps:$4 sm:$0xff]   ;;  %v13063_v47 = vpack.c.bf16 %v13055_v42, %v13049_v40  ;;  %v12150_v48 = vld [vmem:[#allocation2 + $0x80] ss:$12 sps:$4 sm:$0xff]  }
  0x57   :  { %10673 = vmatpush3.bf16.msra.mxu1 %v12140_v4  ;;  %v13068_v49 = vld [vmem:[%s14401_s0 + $0x78] sm:$0xff]  ;;  %v13073_v50 = vld [vmem:[%s14401_s0 + $0x80] sm:$0xff]  ;;  %v13079_v52 = vld [vmem:[%s14401_s0 + $0x88] sm:$0xff] }
  0x58   :  { %10674 = vmatprep.subr.bf16.mxu1 %v12141_v8  ;;  %365 = vmatpush1.bf16.msra.mxu0 %v12164_v27  ;;  %v12178_v51 = vld [vmem:[#allocation2 + $0x150] ss:$12 sps:$4 sm:$0xff]   ;;  %v12180_v53 = vld [vmem:[#allocation2 + $0x16c] ss:$12 sps:$4 sm:$0xff]   ;;  %v12182_v56 = vld [vmem:[#allocation2 + $0x168] ss:$12 sps:$4 sm:$0xff]   ;;  %v13089_v57 = vpack.c.bf16 %v13073_v50, %v13068_v49 }
  0x59   :  { %366 = vmatprep.subr.bf16.mxu0 %v12165_v29  ;;  %v13085_v54 = vld [vmem:[%s14401_s0 + $0x90] sm:$0xff]  ;;  %v12151_v55 = vld [vmem:[#allocation2 + $0x98] ss:$12 sps:$4 sm:$0xff]   ;;  %v12194_v63 = vld [vmem:[#allocation2] ss:$12 sps:$4 sm:$0xff]  }
  0x5a   :  { %v12196_v58 = vld [vmem:[#allocation2 + $0x4] ss:$12 sps:$4 sm:$0xff]   ;;  %v13093_v59 = vpack.c.bf16 %v13085_v54, %v13079_v52  ;;  %v13098_v61 = vld [vmem:[%s14401_s0 + $0x98] sm:$0xff]  ;;  %v13109_v1 = vld [vmem:[%s14401_s0 + $0xa8] sm:$0xff] }
  0x5b   :  { %10675 = vmatpush3.bf16.msra.mxu1 %v12141_v8  ;;  %v12152_v60 = vld [vmem:[#allocation2 + $0xb0] ss:$12 sps:$4 sm:$0xff]   ;;  %v13103_v62 = vld [vmem:[%s14401_s0 + $0xa0] sm:$0xff]  ;;  %v12153_v3 = vld [vmem:[#allocation2 + $0x188] ss:$12 sps:$4 sm:$0xff]  }
  0x5c   :  { %10676 = vmatprep.subr.bf16.mxu1 %v12142_v9  ;;  %367 = vmatpush1.bf16.msra.mxu0 %v12167_v32  ;;  %v13114_v2 = vld [vmem:[%s14401_s0 + $0xb0] sm:$0xff]  ;;  %v12200_v4 = vld [vmem:[#allocation2 + $0x1c] ss:$12 sps:$4 sm:$0xff]   ;;  %v12198_v8 = vld [vmem:[#allocation2 + $0x18] ss:$12 sps:$4 sm:$0xff]  }
  0x5d   :  { %368 = vmatprep.subr.bf16.mxu0 %v12169_v34  ;;  %v12202_v15 = vld [vmem:[#allocation2 + $0x30] ss:$12 sps:$4 sm:$0xff]   ;;  %v13136_v16 = vld [vmem:[%s14401_s0 + $0xc0] sm:$0xff]  ;;  %v12207_v20 = vld [vmem:[#allocation2 + $0x4c] ss:$12 sps:$4 sm:$0xff]  }
  0x5e   :  { %v94_v19 = vld [vmem:[%s14401_s0] sm:$0xff]  ;;  %v12205_v22 = vld [vmem:[#allocation2 + $0x48] ss:$12 sps:$4 sm:$0xff]  }
  0x5f   :  { %10677 = vmatpush3.bf16.msra.mxu1 %v12142_v9  ;;  %v12204_v9 = vld [vmem:[#allocation2 + $0x34] ss:$12 sps:$4 sm:$0xff]   ;;  %v12215_v32 = vld [vmem:[#allocation2 + $0x7c] ss:$12 sps:$4 sm:$0xff]   ;;  %v12213_v34 = vld [vmem:[#allocation2 + $0x78] ss:$12 sps:$4 sm:$0xff]  }
  0x60   :  { %10678 = vmatprep.subr.bf16.mxu1 %v12143_v10  ;;  %369 = vmatpush1.bf16.msra.mxu0 %v12171_v39  ;;  %v12209_v29 = vld [vmem:[#allocation2 + $0x60] ss:$12 sps:$4 sm:$0xff]   ;;  %v13157_v39 = vpack.c.bf16 %v12980_v12, %v12970_v6  ;;  %v13169_v6 = vpack.c.bf16 %v13008_v25, %v12995_v18  ;;  %v12168_v12 = vld [vmem:[#allocation2 + $0x1d0] ss:$12 sps:$4 sm:$0xff]   ;;  %v13181_v18 = vpack.c.bf16 %v13038_v37, %v13025_v31 }
  0x61   :  { %370 = vmatprep.subr.bf16.mxu0 %v12173_v41  ;;  %v12157_v41 = vld [vmem:[#allocation2 + $0x1a0] ss:$12 sps:$4 sm:$0xff]   ;;  %v13193_v31 = vpack.c.bf16 %v13068_v49, %v13055_v42  ;;  %v12184_v37 = vld [vmem:[#allocation2 + $0x230] ss:$12 sps:$4 sm:$0xff]   ;;  %v13205_v42 = vpack.c.bf16 %v13098_v61, %v13085_v54  ;;  %v13209_v49 = vpack.c.bf16 %v13109_v1, %v13103_v62  ;;  %v12189_v54 = vld [vmem:[#allocation2 + $0x2a8] ss:$12 sps:$4 sm:$0xff]  }
  0x62   :  { %v12179_v25 = vld [vmem:[#allocation2 + $0x200] ss:$12 sps:$4 sm:$0xff]  }
  0x63   :  { %10679 = vmatpush3.bf16.msra.mxu1 %v12143_v10  ;;  %v13121_v10 = vpack.c.bf16 %v13103_v62, %v13098_v61  ;;  %v12250_v61 = vld [vmem:[#allocation2 + $0x180] ss:$12 sps:$4 sm:$0xff]   ;;  %v12193_v62 = vld [vmem:[#allocation2 + $0x308] ss:$12 sps:$4 sm:$0xff]  }
  0x64   :  { %10680 = vmatprep.subr.bf16.mxu1 %v12144_v11  ;;  %371 = vmatpush1.bf16.msra.mxu0 %v12175_v44  ;;  %v12161_v44 = vld [vmem:[#allocation2 + $0x1b8] ss:$12 sps:$4 sm:$0xff]  }
  0x65   :  { %372 = vmatprep.subr.bf16.mxu0 %v12176_v46  ;;  %v12222_v46 = vld [vmem:[#allocation2 + $0xac] ss:$12 sps:$4 sm:$0xff]  }
  0x67   :  { %10681 = vmatpush3.bf16.msra.mxu1 %v12144_v11  ;;  %v13125_v11 = vpack.c.bf16 %v13114_v2, %v13109_v1  ;;  %v12253_v1 = vld [vmem:[#allocation2 + $0x198] ss:$12 sps:$4 sm:$0xff]  }
  0x68   :  { %10706 = vmatprep.subr.bf16.mxu1 %v12145_v14  ;;  %373 = vmatpush1.bf16.msra.mxu0 %v12178_v51  ;;  %v12186_v51 = vld [vmem:[#allocation2 + $0x260] ss:$12 sps:$4 sm:$0xff]  }
  0x69   :  { %374 = vmatprep.subr.bf16.mxu0 %v12180_v53  ;;  %v12188_v53 = vld [vmem:[#allocation2 + $0x290] ss:$12 sps:$4 sm:$0xff]  }
  0x6a   :  { %10683 = vmatmul.mubr.bf16.vlgmr.msra.gmra.mrb[0].mxu1 %v12999_v21 }
  0x6b   :  { %10707 = vmatpush3.bf16.msra.mxu1 %v12145_v14  ;;  %10686 = vmatprep.mubr.bf16.mxu1 %v13003_v23  ;;  %v13130_v14 = vld [vmem:[%s14401_s0 + $0xb8] sm:$0xff] }
  0x6c   :  { %10708 = vmatprep.subr.bf16.mxu1 %v12146_v24  ;;  %375 = vmatpush1.bf16.msra.mxu0 %v12182_v56  ;;  %v13146_v27 = vpack.c.bf16 %v13136_v16, %v13130_v14  ;;  %v12191_v56 = vld [vmem:[#allocation2 + $0x2d8] ss:$12 sps:$4 sm:$0xff]  }
  0x6d   :  { %770 = vmatprep.subr.bf16.mxu0 %v12196_v58  ;;  %v12252_v58 = vld [vmem:[#allocation2 + $0x184] ss:$12 sps:$4 sm:$0xff]  }
  0x6f   :  { %10709 = vmatpush3.bf16.msra.mxu1 %v12146_v24  ;;  %393 = vmatmul.mubr.bf16.vlgmr.msra.gmra.mrb[0].mxu0 %v12974_v7  ;;  %v12211_v24 = vld [vmem:[#allocation2 + $0x64] ss:$12 sps:$4 sm:$0xff]  }
  0x70   :  { %10710 = vmatprep.subr.bf16.mxu1 %v12147_v28  ;;  %402 = vmatprep.mubr.bf16.mxu0 %v14413_v0 }
  0x71   :  { %771 = vmatpush1.bf16.msra.mxu0 %v12194_v63  ;;  %v12255_v63 = vld [vmem:[#allocation2 + $0x19c] ss:$12 sps:$4 sm:$0xff]  }
  0x72   :  { %10687 = vmatmul.mubr.bf16.gmra.mrb[4].mxu1 %v13029_v33  ;;  %772 = vmatprep.subr.bf16.mxu0 %v12200_v4  ;;  %v13243_v4 = vld [vmem:[%s14401_s0 + $0xc8] sm:$0xff] }
  0x73   :  { %10711 = vmatpush3.bf16.msra.mxu1 %v12147_v28  ;;  %10690 = vmatprep.mubr.bf16.mxu1 %v13033_v35  ;;  %v13149_v28 = vpack.c.bf16 %v12965_v5, %v94_v19  ;;  %v13161_v5 = vpack.c.bf16 %v12990_v17, %v12985_v13  ;;  %v13173_v13 = vpack.c.bf16 %v13020_v30, %v13013_v26  ;;  %v12172_v17 = vld [vmem:[#allocation2 + $0x1e8] ss:$12 sps:$4 sm:$0xff]   ;;  %v12183_v30 = vld [vmem:[#allocation2 + $0x218] ss:$12 sps:$4 sm:$0xff]   ;;  %v12263_v19 = vld [vmem:[#allocation2 + $0x1e0] ss:$12 sps:$4 sm:$0xff]  }
  0x74   :  { %10712 = vmatprep.subr.bf16.mxu1 %v12148_v36  ;;  %v13185_v26 = vpack.c.bf16 %v13049_v40, %v13043_v38  ;;  %v13197_v38 = vpack.c.bf16 %v13079_v52, %v13073_v50  ;;  %v12185_v40 = vld [vmem:[#allocation2 + $0x248] ss:$12 sps:$4 sm:$0xff]   ;;  %v13217_v50 = vpack.c.bf16 %v13130_v14, %v13114_v2  ;;  %v12187_v52 = vld [vmem:[#allocation2 + $0x278] ss:$12 sps:$4 sm:$0xff]  }
  0x75   :  { %773 = vmatpush1.bf16.msra.mxu0 %v12198_v8  ;;  %v12259_v2 = vld [vmem:[#allocation2 + $0x1b4] ss:$12 sps:$4 sm:$0xff]   ;;  %v12262_v8 = vld [vmem:[#allocation2 + $0x1cc] ss:$12 sps:$4 sm:$0xff]   ;;  %v12265_v14 = vld [vmem:[#allocation2 + $0x1e4] ss:$12 sps:$4 sm:$0xff]  }
  0x76   :  { %774 = vmatprep.subr.bf16.mxu0 %v12204_v9  ;;  %v12260_v9 = vld [vmem:[#allocation2 + $0x1c8] ss:$12 sps:$4 sm:$0xff]  }
  0x77   :  { %10713 = vmatpush3.bf16.msra.mxu1 %v12148_v36  ;;  %403 = vmatmul.mubr.bf16.gmra.mrb[4].mxu0 %v12999_v21  ;;  %v12218_v36 = vld [vmem:[#allocation2 + $0x94] ss:$12 sps:$4 sm:$0xff]  }
  0x78   :  { %10714 = vmatprep.subr.bf16.mxu1 %v12149_v43  ;;  %412 = vmatprep.mubr.bf16.mxu0 %v14413_v0 }
  0x79   :  { %775 = vmatpush1.bf16.msra.mxu0 %v12202_v15  ;;  %v13250_v15 = vpack.c.bf16 %v13243_v4, %v13136_v16  ;;  %v12270_v16 = vld [vmem:[#allocation2 + $0x210] ss:$12 sps:$4 sm:$0xff]  }
  0x7a   :  { %10691 = vmatmul.mubr.bf16.gmra.mrb[8].mxu1 %v13059_v45  ;;  %776 = vmatprep.subr.bf16.mxu0 %v12207_v20  ;;  %v12269_v20 = vld [vmem:[#allocation2 + $0x1fc] ss:$12 sps:$4 sm:$0xff]  }
  0x7b   :  { %10694 = vmatprep.mubr.bf16.mxu1 %v13063_v47  ;;  %10715 = vmatpush3.bf16.msra.mxu1 %v12149_v43  ;;  %v12216_v43 = vld [vmem:[#allocation2 + $0x90] ss:$12 sps:$4 sm:$0xff]  }
  0x7c   :  { %10716 = vmatprep.subr.bf16.mxu1 %v12150_v48 }
  0x7d   :  { %777 = vmatpush1.bf16.msra.mxu0 %v12205_v22  ;;  %v12267_v22 = vld [vmem:[#allocation2 + $0x1f8] ss:$12 sps:$4 sm:$0xff]  }
  0x7e   :  { %778 = vmatprep.subr.bf16.mxu0 %v12211_v24  ;;  %v12272_v24 = vld [vmem:[#allocation2 + $0x214] ss:$12 sps:$4 sm:$0xff]  }
  0x7f   :  { %10717 = vmatpush3.bf16.msra.mxu1 %v12150_v48  ;;  %413 = vmatmul.mubr.bf16.gmra.mrb[8].mxu0 %v13003_v23  ;;  %v12220_v48 = vld [vmem:[#allocation2 + $0xa8] ss:$12 sps:$4 sm:$0xff]  }
  0x80   :  { %10718 = vmatprep.subr.bf16.mxu1 %v12151_v55  ;;  %422 = vmatprep.mubr.bf16.mxu0 %v14413_v0 }
  0x81   :  { %779 = vmatpush1.bf16.msra.mxu0 %v12209_v29  ;;  %v12197_v29 = vld [vmem:[#allocation2 + $0x320] ss:$12 sps:$4 sm:$0xff]  }
  0x82   :  { %10695 = vmatmul.mubr.bf16.gmra.mrb[12].mxu1 %v13089_v57  ;;  %780 = vmatprep.subr.bf16.mxu0 %v12215_v32  ;;  %v12201_v32 = vld [vmem:[#allocation2 + $0x338] ss:$12 sps:$4 sm:$0xff]  }
  0x83   :  { %10698 = vmatprep.mubr.bf16.mxu1 %v13093_v59  ;;  %10719 = vmatpush3.bf16.msra.mxu1 %v12151_v55  ;;  %v12190_v55 = vld [vmem:[#allocation2 + $0x2c0] ss:$12 sps:$4 sm:$0xff]  }
  0x84   :  { %10720 = vmatprep.subr.bf16.mxu1 %v12152_v60 }
  0x85   :  { %781 = vmatpush1.bf16.msra.mxu0 %v12213_v34  ;;  %v12275_v34 = vld [vmem:[#allocation2 + $0x22c] ss:$12 sps:$4 sm:$0xff]  }
  0x86   :  { %782 = vmatprep.subr.bf16.mxu0 %v12218_v36  ;;  %v12273_v36 = vld [vmem:[#allocation2 + $0x228] ss:$12 sps:$4 sm:$0xff]  }
  0x87   :  { %10721 = vmatpush3.bf16.msra.mxu1 %v12152_v60  ;;  %423 = vmatmul.mubr.bf16.gmra.mrb[12].mxu0 %v13029_v33  ;;  %v12192_v60 = vld [vmem:[#allocation2 + $0x2f0] ss:$12 sps:$4 sm:$0xff]  }
  0x88   :  { %10746 = vmatprep.subr.bf16.mxu1 %v12153_v3  ;;  %432 = vmatprep.mubr.bf16.mxu0 %v14413_v0 }
  0x89   :  { %783 = vmatpush1.bf16.msra.mxu0 %v12216_v43  ;;  %v12212_v43 = vld [vmem:[#allocation2 + $0x368] ss:$12 sps:$4 sm:$0xff]  }
  0x8a   :  { %10699 = vmatmul.mubr.bf16.gmra.mrb[16].mxu1 %v13121_v10  ;;  %784 = vmatprep.subr.bf16.mxu0 %v12222_v46  ;;  %v12223_v46 = vld [vmem:[#allocation2 + $0x398] ss:$12 sps:$4 sm:$0xff]  }
  0x8b   :  { %10702 = vmatprep.mubr.bf16.mxu1 %v13125_v11 }
  0x8d   :  { %785 = vmatpush1.bf16.msra.mxu0 %v12220_v48  ;;  %v12224_v48 = vld [vmem:[#allocation2 + $0x3b0] ss:$12 sps:$4 sm:$0xff]  }
  0x8e   :  { %1250 = vmatprep.subr.bf16.mxu0 %v12252_v58  ;;  %v12242_v58 = vld [vmem:[#allocation4 + $0x13c] ss:$12 sps:$4 sm:$0xff]  }
  0x8f   :  { %433 = vmatmul.mubr.bf16.gmra.mrb[16].mxu0 %v13033_v35 }
  0x90   :  { %442 = vmatprep.mubr.bf16.mxu0 %v14413_v0 }
  0x92   :  { %10703 = vmatmul.mubr.bf16.gmra.mrb[20].mxu1 %v13146_v27 }
  0x93   :  { %10722 = vmatprep.mubr.bf16.mxu1 %v13149_v28 }
  0x97   :  { %443 = vmatmul.mubr.bf16.gmra.mrb[20].mxu0 %v13059_v45 }
  0x98   :  { %452 = vmatprep.mubr.bf16.mxu0 %v14413_v0 }
  0x9a   :  { %10723 = vmatmul.mubr.bf16.vlgmr.msra.gmra.mrb[0].mxu1 %v13157_v39 }
  0x9b   :  { %10747 = vmatpush3.bf16.msra.mxu1 %v12153_v3  ;;  %10726 = vmatprep.mubr.bf16.mxu1 %v13161_v5  ;;  %v12257_v3 = vld [vmem:[#allocation2 + $0x1b0] ss:$12 sps:$4 sm:$0xff]  }
  0x9c   :  { %10748 = vmatprep.subr.bf16.mxu1 %v12157_v41 }
  0x9f   :  { %10749 = vmatpush3.bf16.msra.mxu1 %v12157_v41  ;;  %453 = vmatmul.mubr.bf16.gmra.mrb[24].mxu0 %v13063_v47  ;;  %v12208_v41 = vld [vmem:[#allocation2 + $0x350] ss:$12 sps:$4 sm:$0xff]  }
  0xa0   :  { %10750 = vmatprep.subr.bf16.mxu1 %v12161_v44  ;;  %462 = vmatprep.mubr.bf16.mxu0 %v14413_v0 }
  0xa2   :  { %10727 = vmatmul.mubr.bf16.gmra.mrb[4].mxu1 %v13169_v6 }
  0xa3   :  { %10751 = vmatpush3.bf16.msra.mxu1 %v12161_v44  ;;  %10730 = vmatprep.mubr.bf16.mxu1 %v13173_v13  ;;  %v12219_v44 = vld [vmem:[#allocation2 + $0x380] ss:$12 sps:$4 sm:$0xff]  }
  0xa4   :  { %10752 = vmatprep.subr.bf16.mxu1 %v12168_v12 }
  0xa7   :  { %10753 = vmatpush3.bf16.msra.mxu1 %v12168_v12  ;;  %463 = vmatmul.mubr.bf16.gmra.mrb[28].mxu0 %v13089_v57  ;;  %v12227_v12 = vld [vmem:[#allocation4 + $0xc4] ss:$12 sps:$4 sm:$0xff]  }
  0xa8   :  { %10754 = vmatprep.subr.bf16.mxu1 %v12172_v17  ;;  %472 = vmatprep.mubr.bf16.mxu0 %v14413_v0 }
  0xaa   :  { %10731 = vmatmul.mubr.bf16.gmra.mrb[8].mxu1 %v13181_v18 }
  0xab   :  { %10734 = vmatprep.mubr.bf16.mxu1 %v13185_v26  ;;  %10755 = vmatpush3.bf16.msra.mxu1 %v12172_v17  ;;  %v13275_v17 = vld [vmem:[%s14401_s0 + $0xd0] sm:$0xff] }
  0xac   :  { %10756 = vmatprep.subr.bf16.mxu1 %v12179_v25 }
  0xaf   :  { %10757 = vmatpush3.bf16.msra.mxu1 %v12179_v25  ;;  %473 = vmatmul.mubr.bf16.gmra.mrb[32].mxu0 %v13093_v59  ;;  %v13283_v25 = vpack.c.bf16 %v13275_v17, %v13243_v4  ;;  %v12249_v4 = vld [vmem:[#allocation4 + $0xc8] ss:$12 sps:$4 sm:$0xff]  }
  0xb0   :  { %10758 = vmatprep.subr.bf16.mxu1 %v12183_v30  ;;  %482 = vmatprep.mubr.bf16.mxu0 %v14413_v0 }
  0xb2   :  { %10735 = vmatmul.mubr.bf16.gmra.mrb[12].mxu1 %v13193_v31 }
  0xb3   :  { %10738 = vmatprep.mubr.bf16.mxu1 %v13197_v38  ;;  %10759 = vmatpush3.bf16.msra.mxu1 %v12183_v30  ;;  %v12225_v30 = vld [vmem:[#allocation4 + $0xc0] ss:$12 sps:$4 sm:$0xff]  }
  0xb4   :  { %10760 = vmatprep.subr.bf16.mxu1 %v12184_v37 }
  0xb7   :  { %10761 = vmatpush3.bf16.msra.mxu1 %v12184_v37  ;;  %483 = vmatmul.mubr.bf16.gmra.mrb[36].mxu0 %v13121_v10  ;;  %v12230_v37 = vld [vmem:[#allocation4 + $0xdc] ss:$12 sps:$4 sm:$0xff]  }
  0xb8   :  { %10786 = vmatprep.subr.bf16.mxu1 %v12185_v40  ;;  %492 = vmatprep.mubr.bf16.mxu0 %v14413_v0 }
  0xba   :  { %10739 = vmatmul.mubr.bf16.gmra.mrb[16].mxu1 %v13205_v42 }
  0xbb   :  { %10742 = vmatprep.mubr.bf16.mxu1 %v13209_v49 }
  0xbf   :  { %493 = vmatmul.mubr.bf16.gmra.mrb[40].mxu0 %v13125_v11 }
  0xc0   :  { %502 = vmatprep.mubr.bf16.mxu0 %v14413_v0 }
  0xc2   :  { %10743 = vmatmul.mubr.bf16.gmra.mrb[20].mxu1 %v13217_v50 }
  0xc3   :  { %10762 = vmatprep.mubr.bf16.mxu1 %v13157_v39 }
  0xc7   :  { %503 = vmatmul.mubr.bf16.gmra.mrb[44].mxu0 %v13146_v27 }
  0xc8   :  { %802 = vmatprep.mubr.bf16.mxu0 %v14413_v0 }
  0xca   :  { %10763 = vmatmul.mubr.bf16.vlgmr.msra.gmra.mrb[0].mxu1 %v13161_v5 }
  0xcb   :  { %10787 = vmatpush3.bf16.msra.mxu1 %v12185_v40  ;;  %10766 = vmatprep.mubr.bf16.mxu1 %v13169_v6  ;;  %v12228_v40 = vld [vmem:[#allocation4 + $0xd8] ss:$12 sps:$4 sm:$0xff]  }
  0xcc   :  { %10788 = vmatprep.subr.bf16.mxu1 %v12186_v51 }
  0xcf   :  { %10789 = vmatpush3.bf16.msra.mxu1 %v12186_v51  ;;  %803 = vmatmul.mubr.bf16.vlgmr.msra.gmra.mrb[0].mxu0 %v13149_v28  ;;  %v12233_v51 = vld [vmem:[#allocation4 + $0xf4] ss:$12 sps:$4 sm:$0xff]  }
  0xd0   :  { %10790 = vmatprep.subr.bf16.mxu1 %v12187_v52  ;;  %812 = vmatprep.mubr.bf16.mxu0 %v14413_v0 }
  0xd1   :  { %1251 = vmatpush1.bf16.msra.mxu0 %v12250_v61  ;;  %v12286_v61 = vld [vmem:[#allocation2 + $0x244] ss:$12 sps:$4 sm:$0xff]  }
  0xd2   :  { %10767 = vmatmul.mubr.bf16.gmra.mrb[4].mxu1 %v13173_v13  ;;  %1252 = vmatprep.subr.bf16.mxu0 %v12255_v63  ;;  %v12243_v63 = vld [vmem:[#allocation4 + $0x150] ss:$12 sps:$4 sm:$0xff]  }
  0xd3   :  { %10791 = vmatpush3.bf16.msra.mxu1 %v12187_v52  ;;  %10770 = vmatprep.mubr.bf16.mxu1 %v13181_v18  ;;  %v12231_v52 = vld [vmem:[#allocation4 + $0xf0] ss:$12 sps:$4 sm:$0xff]  }
  0xd4   :  { %10792 = vmatprep.subr.bf16.mxu1 %v12188_v53 }
  0xd5   :  { %1253 = vmatpush1.bf16.msra.mxu0 %v12253_v1  ;;  %v12248_v1 = vld [vmem:[#allocation4 + $0x16c] ss:$12 sps:$4 sm:$0xff]  }
  0xd6   :  { %1254 = vmatprep.subr.bf16.mxu0 %v12259_v2  ;;  %v12284_v2 = vld [vmem:[#allocation2 + $0x240] ss:$12 sps:$4 sm:$0xff]  }
  0xd7   :  { %10793 = vmatpush3.bf16.msra.mxu1 %v12188_v53  ;;  %813 = vmatmul.mubr.bf16.gmra.mrb[4].mxu0 %v13157_v39  ;;  %v12236_v53 = vld [vmem:[#allocation4 + $0x10c] ss:$12 sps:$4 sm:$0xff]  }
  0xd8   :  { %10794 = vmatprep.subr.bf16.mxu1 %v12189_v54  ;;  %822 = vmatprep.mubr.bf16.mxu0 %v14413_v0 }
  0xd9   :  { %1255 = vmatpush1.bf16.msra.mxu0 %v12257_v3  ;;  %v12246_v3 = vld [vmem:[#allocation4 + $0x168] ss:$12 sps:$4 sm:$0xff]  }
  0xda   :  { %10771 = vmatmul.mubr.bf16.gmra.mrb[8].mxu1 %v13185_v26  ;;  %1256 = vmatprep.subr.bf16.mxu0 %v12262_v8  ;;  %v12292_v8 = vld [vmem:[#allocation2 + $0x25c] ss:$12 sps:$4 sm:$0xff]  }
  0xdb   :  { %10774 = vmatprep.mubr.bf16.mxu1 %v13193_v31  ;;  %10795 = vmatpush3.bf16.msra.mxu1 %v12189_v54  ;;  %v12234_v54 = vld [vmem:[#allocation4 + $0x108] ss:$12 sps:$4 sm:$0xff]  }
  0xdc   :  { %10796 = vmatprep.subr.bf16.mxu1 %v12190_v55 }
  0xdd   :  { %1257 = vmatpush1.bf16.msra.mxu0 %v12260_v9  ;;  %v12290_v9 = vld [vmem:[#allocation2 + $0x258] ss:$12 sps:$4 sm:$0xff]  }
  0xde   :  { %1258 = vmatprep.subr.bf16.mxu0 %v12265_v14  ;;  %v12298_v14 = vld [vmem:[#allocation2 + $0x274] ss:$12 sps:$4 sm:$0xff]  }
  0xdf   :  { %10797 = vmatpush3.bf16.msra.mxu1 %v12190_v55  ;;  %823 = vmatmul.mubr.bf16.gmra.mrb[8].mxu0 %v13161_v5  ;;  %v12239_v55 = vld [vmem:[#allocation4 + $0x124] ss:$12 sps:$4 sm:$0xff]  }
  0xe0   :  { %10798 = vmatprep.subr.bf16.mxu1 %v12191_v56  ;;  %832 = vmatprep.mubr.bf16.mxu0 %v14413_v0 }
  0xe1   :  { %1259 = vmatpush1.bf16.msra.mxu0 %v12263_v19  ;;  %v12296_v19 = vld [vmem:[#allocation2 + $0x270] ss:$12 sps:$4 sm:$0xff]  }
  0xe2   :  { %10775 = vmatmul.mubr.bf16.gmra.mrb[12].mxu1 %v13197_v38  ;;  %1260 = vmatprep.subr.bf16.mxu0 %v12269_v20  ;;  %v9425_v20 = vld [vmem:[%s14401_s0 + $0xd8] sm:$0xff] }
  0xe3   :  { %10778 = vmatprep.mubr.bf16.mxu1 %v13205_v42  ;;  %10799 = vmatpush3.bf16.msra.mxu1 %v12191_v56  ;;  %v12237_v56 = vld [vmem:[#allocation4 + $0x120] ss:$12 sps:$4 sm:$0xff]  }
  0xe4   :  { %10800 = vmatprep.subr.bf16.mxu1 %v12192_v60 }
  0xe5   :  { %1261 = vmatpush1.bf16.msra.mxu0 %v12267_v22  ;;  %v12301_v22 = vld [vmem:[#allocation2 + $0x28c] ss:$12 sps:$4 sm:$0xff]  }
  0xe6   :  { %1262 = vmatprep.subr.bf16.mxu0 %v12272_v24  ;;  %v12299_v24 = vld [vmem:[#allocation2 + $0x288] ss:$12 sps:$4 sm:$0xff]  }
  0xe7   :  { %10801 = vmatpush3.bf16.msra.mxu1 %v12192_v60  ;;  %833 = vmatmul.mubr.bf16.gmra.mrb[12].mxu0 %v13169_v6  ;;  %v12240_v60 = vld [vmem:[#allocation4 + $0x138] ss:$12 sps:$4 sm:$0xff]  }
  0xe8   :  { %10826 = vmatprep.subr.bf16.mxu1 %v12193_v62  ;;  %842 = vmatprep.mubr.bf16.mxu0 %v14413_v0 }
  0xe9   :  { %1263 = vmatpush1.bf16.msra.mxu0 %v12270_v16  ;;  %v13313_v16 = vpack.c.bf16 %v9425_v20, %v13275_v17  ;;  %v12276_v17 = vld [vmem:[#allocation4 + $0x110] ss:$12 sps:$4 sm:$0xff]   ;;  %v12287_v20 = vld [vmem:[#allocation4 + $0x18] ss:$12 sps:$4 sm:$0xff]  }
  0xea   :  { %10779 = vmatmul.mubr.bf16.gmra.mrb[16].mxu1 %v13209_v49  ;;  %1264 = vmatprep.subr.bf16.mxu0 %v12275_v34  ;;  %v12313_v34 = vld [vmem:[#allocation2 + $0x2bc] ss:$12 sps:$4 sm:$0xff]  }
  0xeb   :  { %10782 = vmatprep.mubr.bf16.mxu1 %v13217_v50 }
  0xed   :  { %1265 = vmatpush1.bf16.msra.mxu0 %v12273_v36  ;;  %v12311_v36 = vld [vmem:[#allocation2 + $0x2b8] ss:$12 sps:$4 sm:$0xff]  }
  0xee   :  { %1802 = vmatprep.subr.bf16.mxu0 %v12286_v61  ;;  %v12346_v61 = vld [vmem:[#allocation2 + $0x34c] ss:$12 sps:$4 sm:$0xff]  }
  0xef   :  { %843 = vmatmul.mubr.bf16.gmra.mrb[16].mxu0 %v13173_v13 }
  0xf0   :  { %852 = vmatprep.mubr.bf16.mxu0 %v14413_v0 }
  0xf2   :  { %10783 = vmatmul.mubr.bf16.gmra.mrb[20].mxu1 %v13250_v15 }
  0xf3   :  { %10802 = vmatprep.mubr.bf16.mxu1 %v12999_v21 }
  0xf7   :  { %853 = vmatmul.mubr.bf16.gmra.mrb[20].mxu0 %v13181_v18 }
  0xf8   :  { %862 = vmatprep.mubr.bf16.mxu0 %v14413_v0 }
  0xfa   :  { %10803 = vmatmul.mubr.bf16.vlgmr.msra.gmra.mrb[0].mxu1 %v13003_v23 }
  0xfb   :  { %10827 = vmatpush3.bf16.msra.mxu1 %v12193_v62  ;;  %10806 = vmatprep.mubr.bf16.mxu1 %v13029_v33  ;;  %v12245_v62 = vld [vmem:[#allocation4 + $0x154] ss:$12 sps:$4 sm:$0xff]  }
  0xfc   :  { %10828 = vmatprep.subr.bf16.mxu1 %v12197_v29 }
  0xff   :  { %10829 = vmatpush3.bf16.msra.mxu1 %v12197_v29  ;;  %863 = vmatmul.mubr.bf16.gmra.mrb[24].mxu0 %v13185_v26  ;;  %v12307_v29 = vld [vmem:[#allocation2 + $0x2a4] ss:$12 sps:$4 sm:$0xff]  }
 0x100   :  { %10830 = vmatprep.subr.bf16.mxu1 %v12201_v32  ;;  %872 = vmatprep.mubr.bf16.mxu0 %v14413_v0 }
 0x102   :  { %10807 = vmatmul.mubr.bf16.gmra.mrb[4].mxu1 %v13033_v35 }
 0x103   :  { %10831 = vmatpush3.bf16.msra.mxu1 %v12201_v32  ;;  %10810 = vmatprep.mubr.bf16.mxu1 %v13059_v45  ;;  %v12305_v32 = vld [vmem:[#allocation2 + $0x2a0] ss:$12 sps:$4 sm:$0xff]  }
 0x104   :  { %10832 = vmatprep.subr.bf16.mxu1 %v12208_v41 }
 0x107   :  { %10833 = vmatpush3.bf16.msra.mxu1 %v12208_v41  ;;  %873 = vmatmul.mubr.bf16.gmra.mrb[28].mxu0 %v13193_v31  ;;  %v12316_v41 = vld [vmem:[#allocation2 + $0x2d4] ss:$12 sps:$4 sm:$0xff]  }
 0x108   :  { %10834 = vmatprep.subr.bf16.mxu1 %v12212_v43  ;;  %882 = vmatprep.mubr.bf16.mxu0 %v14413_v0 }
 0x10a   :  { %10811 = vmatmul.mubr.bf16.gmra.mrb[8].mxu1 %v13063_v47 }
 0x10b   :  { %10814 = vmatprep.mubr.bf16.mxu1 %v13089_v57  ;;  %10835 = vmatpush3.bf16.msra.mxu1 %v12212_v43  ;;  %v12256_v43 = vld [vmem:[#allocation4 + $0xe0] ss:$12 sps:$4 sm:$0xff]  }
 0x10c   :  { %10836 = vmatprep.subr.bf16.mxu1 %v12219_v44 }
 0x10f   :  { %10837 = vmatpush3.bf16.msra.mxu1 %v12219_v44  ;;  %883 = vmatmul.mubr.bf16.gmra.mrb[32].mxu0 %v13197_v38  ;;  %v12314_v44 = vld [vmem:[#allocation2 + $0x2d0] ss:$12 sps:$4 sm:$0xff]  }
 0x110   :  { %10838 = vmatprep.subr.bf16.mxu1 %v12223_v46  ;;  %892 = vmatprep.mubr.bf16.mxu0 %v14413_v0 }
 0x112   :  { %10815 = vmatmul.mubr.bf16.gmra.mrb[12].mxu1 %v13093_v59 }
 0x113   :  { %10818 = vmatprep.mubr.bf16.mxu1 %v13121_v10  ;;  %10839 = vmatpush3.bf16.msra.mxu1 %v12223_v46  ;;  %v12266_v46 = vld [vmem:[#allocation4 + $0xf8] ss:$12 sps:$4 sm:$0xff]  }
 0x114   :  { %10840 = vmatprep.subr.bf16.mxu1 %v12224_v48 }
 0x117   :  { %10841 = vmatpush3.bf16.msra.mxu1 %v12224_v48  ;;  %893 = vmatmul.mubr.bf16.gmra.mrb[36].mxu0 %v13205_v42  ;;  %v12322_v48 = vld [vmem:[#allocation2 + $0x2ec] ss:$12 sps:$4 sm:$0xff]  }
 0x118   :  { %2901 = vmatprep.subr.bf16.mxu1 %v12227_v12  ;;  %902 = vmatprep.mubr.bf16.mxu0 %v14413_v0  ;;  %v12320_v12 = vld [vmem:[#allocation2 + $0x2e8] ss:$12 sps:$4 sm:$0xff]  }
 0x11a   :  { %10819 = vmatmul.mubr.bf16.gmra.mrb[16].mxu1 %v13125_v11 }
 0x11b   :  { %10822 = vmatprep.mubr.bf16.mxu1 %v13146_v27 }
 0x11f   :  { %903 = vmatmul.mubr.bf16.gmra.mrb[40].mxu0 %v13209_v49 }
 0x120   :  { %912 = vmatprep.mubr.bf16.mxu0 %v14413_v0 }
 0x122   :  { %10823 = vmatmul.mubr.bf16.gmra.mrb[20].mxu1 %v13283_v25 }
 0x123   :  { %10842 = vmatprep.mubr.bf16.mxu1 %v13161_v5 }
 0x127   :  { %913 = vmatmul.mubr.bf16.gmra.mrb[44].mxu0 %v13217_v50 }
 0x128   :  { %1282 = vmatprep.mubr.bf16.mxu0 %v14413_v0 }
 0x12a   :  { %10843 = vmatmul.mubr.bf16.vlgmr.msra.gmra.mrb[0].mxu1 %v13169_v6 }
 0x12b   :  { %2902 = vmatpush1.bf16.msra.mxu1 %v12225_v30  ;;  %10846 = vmatprep.mubr.bf16.mxu1 %v13173_v13  ;;  %v12277_v30 = vld [vmem:[#allocation4 + $0x128] ss:$12 sps:$4 sm:$0xff]  }
 0x12c   :  { %2903 = vmatprep.subr.bf16.mxu1 %v12230_v37  ;;  %v12278_v37 = vld [vmem:[#allocation4 + $0x140] ss:$12 sps:$4 sm:$0xff]  }
 0x12f   :  { %2904 = vmatpush1.bf16.msra.mxu1 %v12228_v40  ;;  %1283 = vmatmul.mubr.bf16.vlgmr.msra.gmra.mrb[0].mxu0 %v13157_v39  ;;  %v12279_v40 = vld [vmem:[#allocation4 + $0x158] ss:$12 sps:$4 sm:$0xff]  }
 0x130   :  { %2905 = vmatprep.subr.bf16.mxu1 %v12233_v51  ;;  %1292 = vmatprep.mubr.bf16.mxu0 %v14413_v0  ;;  %v12280_v51 = vld [vmem:[#allocation4 + $0x170] ss:$12 sps:$4 sm:$0xff]  }
 0x131   :  { %1803 = vmatpush1.bf16.msra.mxu0 %v12284_v2  ;;  %v12353_v2 = vld [vmem:[#allocation2 + $0x37c] ss:$12 sps:$4 sm:$0xff]  }
 0x132   :  { %10847 = vmatmul.mubr.bf16.gmra.mrb[4].mxu1 %v13181_v18  ;;  %1804 = vmatprep.subr.bf16.mxu0 %v12292_v8  ;;  %v12281_v8 = vld [vmem:[#allocation4] ss:$12 sps:$4 sm:$0xff]  }
 0x133   :  { %2906 = vmatpush1.bf16.msra.mxu1 %v12231_v52  ;;  %10850 = vmatprep.mubr.bf16.mxu1 %v13185_v26  ;;  %v12283_v52 = vld [vmem:[#allocation4 + $0x4] ss:$12 sps:$4 sm:$0xff]  }
 0x134   :  { %2907 = vmatprep.subr.bf16.mxu1 %v12236_v53  ;;  %v12336_v53 = vld [vmem:[#allocation2 + $0x304] ss:$12 sps:$4 sm:$0xff]  }
 0x135   :  { %1805 = vmatpush1.bf16.msra.mxu0 %v12290_v9  ;;  %v12289_v9 = vld [vmem:[#allocation4 + $0x1c] ss:$12 sps:$4 sm:$0xff]  }
 0x136   :  { %1806 = vmatprep.subr.bf16.mxu0 %v12298_v14  ;;  %v12354_v14 = vld [vmem:[#allocation2 + $0x390] ss:$12 sps:$4 sm:$0xff]  }
 0x137   :  { %2908 = vmatpush1.bf16.msra.mxu1 %v12234_v54  ;;  %1293 = vmatmul.mubr.bf16.gmra.mrb[4].mxu0 %v13161_v5  ;;  %v12334_v54 = vld [vmem:[#allocation2 + $0x300] ss:$12 sps:$4 sm:$0xff]  }
 0x138   :  { %2909 = vmatprep.subr.bf16.mxu1 %v12239_v55  ;;  %1302 = vmatprep.mubr.bf16.mxu0 %v14413_v0  ;;  %v12339_v55 = vld [vmem:[#allocation2 + $0x31c] ss:$12 sps:$4 sm:$0xff]  }
 0x139   :  { %1807 = vmatpush1.bf16.msra.mxu0 %v12296_v19  ;;  %v12359_v19 = vld [vmem:[#allocation2 + $0x3ac] ss:$12 sps:$4 sm:$0xff]  }
 0x13a   :  { %10851 = vmatmul.mubr.bf16.gmra.mrb[8].mxu1 %v13193_v31  ;;  %1808 = vmatprep.subr.bf16.mxu0 %v12301_v22  ;;  %v12357_v22 = vld [vmem:[#allocation2 + $0x3a8] ss:$12 sps:$4 sm:$0xff]  }
 0x13b   :  { %10854 = vmatprep.mubr.bf16.mxu1 %v13197_v38  ;;  %2910 = vmatpush1.bf16.msra.mxu1 %v12237_v56  ;;  %v12337_v56 = vld [vmem:[#allocation2 + $0x318] ss:$12 sps:$4 sm:$0xff]  }
 0x13c   :  { %2911 = vmatprep.subr.bf16.mxu1 %v12242_v58  ;;  %v12343_v58 = vld [vmem:[#allocation2 + $0x334] ss:$12 sps:$4 sm:$0xff]  }
 0x13d   :  { %1809 = vmatpush1.bf16.msra.mxu0 %v12299_v24  ;;  %v12293_v24 = vld [vmem:[#allocation4 + $0x30] ss:$12 sps:$4 sm:$0xff]  }
 0x13e   :  { %1810 = vmatprep.subr.bf16.mxu0 %v12307_v29  ;;  %v12304_v29 = vld [vmem:[#allocation4 + $0x4c] ss:$12 sps:$4 sm:$0xff]  }
 0x13f   :  { %2912 = vmatpush1.bf16.msra.mxu1 %v12240_v60  ;;  %1303 = vmatmul.mubr.bf16.gmra.mrb[8].mxu0 %v13169_v6  ;;  %v12341_v60 = vld [vmem:[#allocation2 + $0x330] ss:$12 sps:$4 sm:$0xff]  }
 0x140   :  { %2913 = vmatprep.subr.bf16.mxu1 %v12245_v62  ;;  %1312 = vmatprep.mubr.bf16.mxu0 %v14413_v0  ;;  %v12344_v62 = vld [vmem:[#allocation2 + $0x348] ss:$12 sps:$4 sm:$0xff]  }
 0x141   :  { %1811 = vmatpush1.bf16.msra.mxu0 %v12305_v32  ;;  %v12302_v32 = vld [vmem:[#allocation4 + $0x48] ss:$12 sps:$4 sm:$0xff]  }
 0x142   :  { %10855 = vmatmul.mubr.bf16.gmra.mrb[12].mxu1 %v13205_v42  ;;  %1812 = vmatprep.subr.bf16.mxu0 %v12313_v34  ;;  %v12310_v34 = vld [vmem:[#allocation4 + $0x64] ss:$12 sps:$4 sm:$0xff]  }
 0x143   :  { %10858 = vmatprep.mubr.bf16.mxu1 %v13209_v49  ;;  %2914 = vmatpush1.bf16.msra.mxu1 %v12243_v63  ;;  %v12349_v63 = vld [vmem:[#allocation2 + $0x364] ss:$12 sps:$4 sm:$0xff]  }
 0x144   :  { %2915 = vmatprep.subr.bf16.mxu1 %v12248_v1  ;;  %v12347_v1 = vld [vmem:[#allocation2 + $0x360] ss:$12 sps:$4 sm:$0xff]  }
 0x145   :  { %1813 = vmatpush1.bf16.msra.mxu0 %v12311_v36  ;;  %v12308_v36 = vld [vmem:[#allocation4 + $0x60] ss:$12 sps:$4 sm:$0xff]  }
 0x146   :  { %1814 = vmatprep.subr.bf16.mxu0 %v12316_v41  ;;  %v12319_v41 = vld [vmem:[#allocation4 + $0x7c] ss:$12 sps:$4 sm:$0xff]  }
 0x147   :  { %2916 = vmatpush1.bf16.msra.mxu1 %v12246_v3  ;;  %1313 = vmatmul.mubr.bf16.gmra.mrb[12].mxu0 %v13173_v13  ;;  %v12351_v3 = vld [vmem:[#allocation2 + $0x378] ss:$12 sps:$4 sm:$0xff]  }
 0x148   :  { %10866 = vmatprep.subr.bf16.mxu1 %v12249_v4  ;;  %1322 = vmatprep.mubr.bf16.mxu0 %v14413_v0 }
 0x149   :  { %1815 = vmatpush1.bf16.msra.mxu0 %v12314_v44  ;;  %v12325_v44 = vld [vmem:[#allocation4 + $0x94] ss:$12 sps:$4 sm:$0xff]  }
 0x14a   :  { %10859 = vmatmul.mubr.bf16.gmra.mrb[16].mxu1 %v13217_v50  ;;  %1816 = vmatprep.subr.bf16.mxu0 %v12322_v48  ;;  %v12328_v48 = vld [vmem:[#allocation4 + $0xac] ss:$12 sps:$4 sm:$0xff]  }
 0x14b   :  { %10862 = vmatprep.mubr.bf16.mxu1 %v13250_v15 }
 0x14d   :  { %1817 = vmatpush1.bf16.msra.mxu0 %v12320_v12  ;;  %v12326_v12 = vld [vmem:[#allocation4 + $0xa8] ss:$12 sps:$4 sm:$0xff]  }
 0x14e   :  { %2354 = vmatprep.subr.bf16.mxu0 %v12336_v53  ;;  %v12350_v53 = vld [vmem:[#allocation4 + $0x98] ss:$12 sps:$4 sm:$0xff]  }
 0x14f   :  { %1323 = vmatmul.mubr.bf16.gmra.mrb[16].mxu0 %v13181_v18 }
 0x150   :  { %1332 = vmatprep.mubr.bf16.mxu0 %v14413_v0 }
 0x152   :  { %10863 = vmatmul.mubr.bf16.gmra.mrb[20].mxu1 %v13313_v16 }
 0x153   :  { %2933 = vmatprep.mubr.bf16.mxu1 %v14413_v0 }
 0x157   :  { %1333 = vmatmul.mubr.bf16.gmra.mrb[20].mxu0 %v13185_v26 }
 0x158   :  { %1342 = vmatprep.mubr.bf16.mxu0 %v14413_v0 }
 0x15a   :  { %2934 = vmatmul.mubr.bf16.vlgmr.msra.gmra.mrb[24].mxu1 %v12974_v7 }
 0x15b   :  { %10867 = vmatpush3.bf16.msra.mxu1 %v12249_v4  ;;  %2943 = vmatprep.mubr.bf16.mxu1 %v14413_v0  ;;  %v12356_v4 = vld [vmem:[#allocation2 + $0x394] ss:$12 sps:$4 sm:$0xff]  }
 0x15c   :  { %10868 = vmatprep.subr.bf16.mxu1 %v12256_v43 }
 0x15f   :  { %10869 = vmatpush3.bf16.msra.mxu1 %v12256_v43  ;;  %1343 = vmatmul.mubr.bf16.gmra.mrb[24].mxu0 %v13193_v31  ;;  %v12317_v43 = vld [vmem:[#allocation4 + $0x78] ss:$12 sps:$4 sm:$0xff]  }
 0x160   :  { %10870 = vmatprep.subr.bf16.mxu1 %v12266_v46  ;;  %1352 = vmatprep.mubr.bf16.mxu0 %v14413_v0 }
 0x162   :  { %2944 = vmatmul.mubr.bf16.gmra.mrb[28].mxu1 %v12999_v21 }
 0x163   :  { %2953 = vmatprep.mubr.bf16.mxu1 %v14413_v0  ;;  %10871 = vmatpush3.bf16.msra.mxu1 %v12266_v46  ;;  %v12323_v46 = vld [vmem:[#allocation4 + $0x90] ss:$12 sps:$4 sm:$0xff]  }
 0x164   :  { %10872 = vmatprep.subr.bf16.mxu1 %v12276_v17 }
 0x167   :  { %10873 = vmatpush3.bf16.msra.mxu1 %v12276_v17  ;;  %1353 = vmatmul.mubr.bf16.gmra.mrb[28].mxu0 %v13197_v38  ;;  %v12329_v17 = vld [vmem:[#allocation4 + $0x8] ss:$12 sps:$4 sm:$0xff]  }
 0x168   :  { %10874 = vmatprep.subr.bf16.mxu1 %v12277_v30  ;;  %1362 = vmatprep.mubr.bf16.mxu0 %v14413_v0 }
 0x16a   :  { %2954 = vmatmul.mubr.bf16.gmra.mrb[32].mxu1 %v13003_v23 }
 0x16b   :  { %2963 = vmatprep.mubr.bf16.mxu1 %v14413_v0  ;;  %10875 = vmatpush3.bf16.msra.mxu1 %v12277_v30  ;;  %v12330_v30 = vld [vmem:[#allocation4 + $0x20] ss:$12 sps:$4 sm:$0xff]  }
 0x16c   :  { %10876 = vmatprep.subr.bf16.mxu1 %v12278_v37 }
 0x16f   :  { %10877 = vmatpush3.bf16.msra.mxu1 %v12278_v37  ;;  %1363 = vmatmul.mubr.bf16.gmra.mrb[32].mxu0 %v13205_v42  ;;  %v12331_v37 = vld [vmem:[#allocation4 + $0x38] ss:$12 sps:$4 sm:$0xff]  }
 0x170   :  { %10878 = vmatprep.subr.bf16.mxu1 %v12279_v40  ;;  %1372 = vmatprep.mubr.bf16.mxu0 %v14413_v0 }
 0x172   :  { %2964 = vmatmul.mubr.bf16.gmra.mrb[36].mxu1 %v13029_v33 }
 0x173   :  { %2973 = vmatprep.mubr.bf16.mxu1 %v14413_v0  ;;  %10879 = vmatpush3.bf16.msra.mxu1 %v12279_v40  ;;  %v12332_v40 = vld [vmem:[#allocation4 + $0x50] ss:$12 sps:$4 sm:$0xff]  }
 0x174   :  { %10880 = vmatprep.subr.bf16.mxu1 %v12280_v51 }
 0x177   :  { %10881 = vmatpush3.bf16.msra.mxu1 %v12280_v51  ;;  %1373 = vmatmul.mubr.bf16.gmra.mrb[36].mxu0 %v13209_v49  ;;  %v12333_v51 = vld [vmem:[#allocation4 + $0x68] ss:$12 sps:$4 sm:$0xff]  }
 0x178   :  { %3311 = vmatprep.subr.bf16.mxu1 %v12283_v52  ;;  %1382 = vmatprep.mubr.bf16.mxu0 %v14413_v0  ;;  %v12340_v52 = vld [vmem:[#allocation4 + $0x80] ss:$12 sps:$4 sm:$0xff]  }
 0x17a   :  { %2974 = vmatmul.mubr.bf16.gmra.mrb[40].mxu1 %v13033_v35 }
 0x17b   :  { %2983 = vmatprep.mubr.bf16.mxu1 %v14413_v0 }
 0x17f   :  { %1383 = vmatmul.mubr.bf16.gmra.mrb[40].mxu0 %v13217_v50 }
 0x180   :  { %1392 = vmatprep.mubr.bf16.mxu0 %v14413_v0 }
 0x182   :  { %2984 = vmatmul.mubr.bf16.gmra.mrb[44].mxu1 %v13059_v45 }
 0x183   :  { %2993 = vmatprep.mubr.bf16.mxu1 %v14413_v0 }
 0x187   :  { %1393 = vmatmul.mubr.bf16.gmra.mrb[44].mxu0 %v13250_v15 }
 0x188   :  { %1834 = vmatprep.mubr.bf16.mxu0 %v14413_v0 }
 0x18a   :  { %2994 = vmatmul.mubr.bf16.gmra.mrb[48].mxu1 %v13063_v47 }
 0x18b   :  { %3003 = vmatprep.mubr.bf16.mxu1 %v14413_v0 }
 0x18f   :  { %1835 = vmatmul.mubr.bf16.vlgmr.msra.gmra.mrb[0].mxu0 %v12999_v21 }
 0x190   :  { %1844 = vmatprep.mubr.bf16.mxu0 %v14413_v0  ;;  %2355 = vmatpush1.bf16.msra.mxu0 %v12334_v54 }
 0x191   :  { %2356 = vmatprep.subr.bf16.mxu0 %v12339_v55 }
 0x192   :  { %3004 = vmatmul.mubr.bf16.gmra.mrb[52].mxu1 %v13089_v57 }
 0x193   :  { %3013 = vmatprep.mubr.bf16.mxu1 %v14413_v0 }
 0x194   :  { %2357 = vmatpush1.bf16.msra.mxu0 %v12337_v56 }
 0x195   :  { %2358 = vmatprep.subr.bf16.mxu0 %v12343_v58 }
 0x197   :  { %1845 = vmatmul.mubr.bf16.gmra.mrb[4].mxu0 %v13003_v23 }
 0x198   :  { %1854 = vmatprep.mubr.bf16.mxu0 %v14413_v0  ;;  %2359 = vmatpush1.bf16.msra.mxu0 %v12341_v60  ;;  %v12360_v60 = vld [vmem:[#allocation4 + $0xb0] ss:$12 sps:$4 sm:$0xff]  }
 0x199   :  { %2360 = vmatprep.subr.bf16.mxu0 %v12346_v61  ;;  %v12363_v61 = vld [vmem:[#allocation4 + $0x184] ss:$12 sps:$4 sm:$0xff]  }
 0x19a   :  { %3014 = vmatmul.mubr.bf16.gmra.mrb[56].mxu1 %v13093_v59 }
 0x19b   :  { %3023 = vmatprep.mubr.bf16.mxu1 %v14413_v0 }
 0x19c   :  { %2361 = vmatpush1.bf16.msra.mxu0 %v12344_v62 }
 0x19d   :  { %2362 = vmatprep.subr.bf16.mxu0 %v12349_v63 }
 0x19f   :  { %1855 = vmatmul.mubr.bf16.gmra.mrb[8].mxu0 %v13029_v33 }
 0x1a0   :  { %1864 = vmatprep.mubr.bf16.mxu0 %v14413_v0  ;;  %2363 = vmatpush1.bf16.msra.mxu0 %v12347_v1 }
 0x1a1   :  { %2364 = vmatprep.subr.bf16.mxu0 %v12353_v2 }
 0x1a2   :  { %3024 = vmatmul.mubr.bf16.gmra.mrb[60].mxu1 %v13121_v10 }
 0x1a3   :  { %3033 = vmatprep.mubr.bf16.mxu1 %v14413_v0 }
 0x1a4   :  { %2365 = vmatpush1.bf16.msra.mxu0 %v12351_v3 }
 0x1a5   :  { %2366 = vmatprep.subr.bf16.mxu0 %v12356_v4 }
 0x1a7   :  { %1865 = vmatmul.mubr.bf16.gmra.mrb[12].mxu0 %v13033_v35 }
 0x1a8   :  { %1874 = vmatprep.mubr.bf16.mxu0 %v14413_v0  ;;  %2367 = vmatpush1.bf16.msra.mxu0 %v12354_v14 }
 0x1a9   :  { %2368 = vmatprep.subr.bf16.mxu0 %v12359_v19 }
 0x1aa   :  { %3034 = vmatmul.mubr.bf16.gmra.mrb[64].mxu1 %v13125_v11 }
 0x1ab   :  { %3043 = vmatprep.mubr.bf16.mxu1 %v14413_v0 }
 0x1ac   :  { %2369 = vmatpush1.bf16.msra.mxu0 %v12357_v22 }
 0x1af   :  { %1875 = vmatmul.mubr.bf16.gmra.mrb[16].mxu0 %v13059_v45 }
 0x1b0   :  { %1884 = vmatprep.mubr.bf16.mxu0 %v14413_v0 }
 0x1b2   :  { %3044 = vmatmul.mubr.bf16.gmra.mrb[68].mxu1 %v13146_v27 }
 0x1b3   :  { %10882 = vmatprep.mubr.bf16.mxu1 %v12974_v7  ;;  %v12295_v7 = vld [vmem:[#allocation4 + $0x34] ss:$12 sps:$4 sm:$0xff]  }
 0x1b7   :  { %1885 = vmatmul.mubr.bf16.gmra.mrb[20].mxu0 %v13063_v47 }
 0x1b8   :  { %1894 = vmatprep.mubr.bf16.mxu0 %v14413_v0 }
 0x1ba   :  { %10883 = vmatmul.mubr.bf16.vlgmr.msra.gmra.mrb[72].mxu1 %v12999_v21 }
 0x1bb   :  { %3312 = vmatpush1.bf16.msra.mxu1 %v12281_v8  ;;  %10886 = vmatprep.mubr.bf16.mxu1 %v13003_v23 }
 0x1bc   :  { %3313 = vmatprep.subr.bf16.mxu1 %v12289_v9 }
 0x1bf   :  { %3314 = vmatpush1.bf16.msra.mxu1 %v12287_v20  ;;  %1895 = vmatmul.mubr.bf16.gmra.mrb[24].mxu0 %v13089_v57 }
 0x1c0   :  { %3315 = vmatprep.subr.bf16.mxu1 %v12295_v7  ;;  %1904 = vmatprep.mubr.bf16.mxu0 %v14413_v0 }
 0x1c2   :  { %10887 = vmatmul.mubr.bf16.gmra.mrb[76].mxu1 %v13029_v33 }
 0x1c3   :  { %3316 = vmatpush1.bf16.msra.mxu1 %v12293_v24  ;;  %10890 = vmatprep.mubr.bf16.mxu1 %v13033_v35 }
 0x1c4   :  { %3317 = vmatprep.subr.bf16.mxu1 %v12304_v29 }
 0x1c7   :  { %3318 = vmatpush1.bf16.msra.mxu1 %v12302_v32  ;;  %1905 = vmatmul.mubr.bf16.gmra.mrb[28].mxu0 %v13093_v59 }
 0x1c8   :  { %3319 = vmatprep.subr.bf16.mxu1 %v12310_v34  ;;  %1914 = vmatprep.mubr.bf16.mxu0 %v14413_v0 }
 0x1ca   :  { %10891 = vmatmul.mubr.bf16.gmra.mrb[80].mxu1 %v13059_v45 }
 0x1cb   :  { %10894 = vmatprep.mubr.bf16.mxu1 %v13063_v47  ;;  %3320 = vmatpush1.bf16.msra.mxu1 %v12308_v36 }
 0x1cc   :  { %3321 = vmatprep.subr.bf16.mxu1 %v12319_v41 }
 0x1cf   :  { %3322 = vmatpush1.bf16.msra.mxu1 %v12317_v43  ;;  %1915 = vmatmul.mubr.bf16.gmra.mrb[32].mxu0 %v13121_v10 }
 0x1d0   :  { %3323 = vmatprep.subr.bf16.mxu1 %v12325_v44  ;;  %1924 = vmatprep.mubr.bf16.mxu0 %v14413_v0  ;;  %v12361_v44 = vld [vmem:[#allocation4 + $0x180] ss:$12 sps:$4 sm:$0xff]  }
 0x1d2   :  { %10895 = vmatmul.mubr.bf16.gmra.mrb[84].mxu1 %v13089_v57 }
 0x1d3   :  { %10898 = vmatprep.mubr.bf16.mxu1 %v13093_v59  ;;  %3324 = vmatpush1.bf16.msra.mxu1 %v12323_v46  ;;  %v12366_v46 = vld [vmem:[#allocation4 + $0x19c] ss:$12 sps:$4 sm:$0xff]  }
 0x1d4   :  { %3325 = vmatprep.subr.bf16.mxu1 %v12328_v48  ;;  %v12364_v48 = vld [vmem:[#allocation4 + $0x198] ss:$12 sps:$4 sm:$0xff]  }
 0x1d7   :  { %3326 = vmatpush1.bf16.msra.mxu1 %v12326_v12  ;;  %1925 = vmatmul.mubr.bf16.gmra.mrb[36].mxu0 %v13125_v11  ;;  %v12369_v12 = vld [vmem:[#allocation4 + $0x1b4] ss:$12 sps:$4 sm:$0xff]  }
 0x1d8   :  { %10906 = vmatprep.subr.bf16.mxu1 %v12329_v17  ;;  %1934 = vmatprep.mubr.bf16.mxu0 %v14413_v0 }
 0x1da   :  { %10899 = vmatmul.mubr.bf16.gmra.mrb[88].mxu1 %v13121_v10 }
 0x1db   :  { %10902 = vmatprep.mubr.bf16.mxu1 %v13125_v11 }
 0x1df   :  { %1935 = vmatmul.mubr.bf16.gmra.mrb[40].mxu0 %v13146_v27 }
 0x1e0   :  { %1944 = vmatprep.mubr.bf16.mxu0 %v14413_v0 }
 0x1e2   :  { %10903 = vmatmul.mubr.bf16.gmra.mrb[92].mxu1 %v13146_v27 }
 0x1e3   :  { %3343 = vmatprep.mubr.bf16.mxu1 %v14413_v0 }
 0x1e7   :  { %1945 = vmatmul.mubr.bf16.gmra.mrb[44].mxu0 %v13283_v25 }
 0x1e8   :  { %2386 = vmatprep.mubr.bf16.mxu0 %v14413_v0 }
 0x1ea   :  { %3344 = vmatmul.mubr.bf16.vlgmr.msra.gmra.mrb[24].mxu1 %v13149_v28 }
 0x1eb   :  { %10907 = vmatpush3.bf16.msra.mxu1 %v12329_v17  ;;  %3353 = vmatprep.mubr.bf16.mxu1 %v14413_v0  ;;  %v12372_v17 = vld [vmem:[#allocation4 + $0x1cc] ss:$12 sps:$4 sm:$0xff]  }
 0x1ec   :  { %10908 = vmatprep.subr.bf16.mxu1 %v12330_v30 }
 0x1ef   :  { %10909 = vmatpush3.bf16.msra.mxu1 %v12330_v30  ;;  %2387 = vmatmul.mubr.bf16.vlgmr.msra.gmra.mrb[0].mxu0 %v13161_v5  ;;  %v12370_v30 = vld [vmem:[#allocation4 + $0x1c8] ss:$12 sps:$4 sm:$0xff]  }
 0x1f0   :  { %10910 = vmatprep.subr.bf16.mxu1 %v12331_v37  ;;  %2396 = vmatprep.mubr.bf16.mxu0 %v14413_v0 }
 0x1f2   :  { %3354 = vmatmul.mubr.bf16.gmra.mrb[28].mxu1 %v13157_v39 }
 0x1f3   :  { %3363 = vmatprep.mubr.bf16.mxu1 %v14413_v0  ;;  %10911 = vmatpush3.bf16.msra.mxu1 %v12331_v37  ;;  %v12375_v37 = vld [vmem:[#allocation4 + $0x1e4] ss:$12 sps:$4 sm:$0xff]  }
 0x1f4   :  { %10912 = vmatprep.subr.bf16.mxu1 %v12332_v40 }
 0x1f7   :  { %10913 = vmatpush3.bf16.msra.mxu1 %v12332_v40  ;;  %2397 = vmatmul.mubr.bf16.gmra.mrb[4].mxu0 %v13169_v6  ;;  %v12373_v40 = vld [vmem:[#allocation4 + $0x1e0] ss:$12 sps:$4 sm:$0xff]  }
 0x1f8   :  { %10914 = vmatprep.subr.bf16.mxu1 %v12333_v51  ;;  %2406 = vmatprep.mubr.bf16.mxu0 %v14413_v0 }
 0x1fa   :  { %3364 = vmatmul.mubr.bf16.gmra.mrb[32].mxu1 %v13161_v5 }
 0x1fb   :  { %3373 = vmatprep.mubr.bf16.mxu1 %v14413_v0  ;;  %10915 = vmatpush3.bf16.msra.mxu1 %v12333_v51  ;;  %v12378_v51 = vld [vmem:[#allocation4 + $0x1fc] ss:$12 sps:$4 sm:$0xff]  }
 0x1fc   :  { %10916 = vmatprep.subr.bf16.mxu1 %v12340_v52 }
 0x1fd   :  { %v13402_v54 = vpop.f32.mrb[0].mxu1 }
 0x1fe   :  { %14415 = vst [vmem:[#allocation12_spill] sm:$0xff] %v13402_v54  ;;  %v13405_v55 = vpop.f32.mrb[1].mxu1 }
 0x1ff   :  { %14416 = vst [vmem:[#allocation13_spill] sm:$0xff] %v13405_v55  ;;  %v13407_v56 = vpop.f32.mrb[2].mxu1  ;;  %10917 = vmatpush3.bf16.msra.mxu1 %v12340_v52  ;;  %2407 = vmatmul.mubr.bf16.gmra.mrb[8].mxu0 %v13173_v13  ;;  %v12376_v52 = vld [vmem:[#allocation4 + $0x1f8] ss:$12 sps:$4 sm:$0xff]  }
 0x200   :  { %14417 = vst [vmem:[#allocation14_spill] sm:$0xff] %v13407_v56  ;;  %v13409_v58 = vpop.f32.mrb[3].mxu1  ;;  %10918 = vmatprep.subr.bf16.mxu1 %v12350_v53  ;;  %2416 = vmatprep.mubr.bf16.mxu0 %v14413_v0 }
 0x201   :  { %14418 = vst [vmem:[#allocation15_spill] sm:$0xff] %v13409_v58 }
 0x202   :  { %3374 = vmatmul.mubr.bf16.gmra.mrb[36].mxu1 %v13169_v6 }
 0x203   :  { %3383 = vmatprep.mubr.bf16.mxu1 %v14413_v0  ;;  %10919 = vmatpush3.bf16.msra.mxu1 %v12350_v53  ;;  %v12381_v53 = vld [vmem:[#allocation4 + $0x214] ss:$12 sps:$4 sm:$0xff]  }
 0x204   :  { %10920 = vmatprep.subr.bf16.mxu1 %v12360_v60 }
 0x205   :  { %v13414_v62 = vpop.f32.mrb[4].mxu1 }
 0x206   :  { %14419 = vst [vmem:[#allocation16_spill] sm:$0xff] %v13414_v62  ;;  %v13417_v63 = vpop.f32.mrb[5].mxu1 }
 0x207   :  { %14420 = vst [vmem:[#allocation17_spill] sm:$0xff] %v13417_v63  ;;  %v13419_v1 = vpop.f32.mrb[6].mxu1  ;;  %10921 = vmatpush3.bf16.msra.mxu1 %v12360_v60  ;;  %2417 = vmatmul.mubr.bf16.gmra.mrb[12].mxu0 %v13181_v18  ;;  %v12379_v60 = vld [vmem:[#allocation4 + $0x210] ss:$12 sps:$4 sm:$0xff]  }
 0x208   :  { %14421 = vst [vmem:[#allocation18_spill] sm:$0xff] %v13419_v1  ;;  %v13421_v2 = vpop.f32.mrb[7].mxu1  ;;  %3754 = vmatprep.subr.bf16.mxu1 %v12363_v61  ;;  %2426 = vmatprep.mubr.bf16.mxu0 %v14413_v0  ;;  %v12384_v61 = vld [vmem:[#allocation4 + $0x22c] ss:$12 sps:$4 sm:$0xff]   ;;  %v12420_v1 = vld [vmem:[#allocation4 + $0x290] ss:$12 sps:$4 sm:$0xff]  }
 0x209   :  { %14422 = vst [vmem:[#allocation19_spill] sm:$0xff] %v13421_v2 }
 0x20a   :  { %3384 = vmatmul.mubr.bf16.gmra.mrb[40].mxu1 %v13173_v13 }
 0x20b   :  { %3393 = vmatprep.mubr.bf16.mxu1 %v14413_v0 }
 0x20d   :  { %v13426_v3 = vpop.f32.mrb[8].mxu1 }
 0x20e   :  { %14423 = vst [vmem:[#allocation20_spill] sm:$0xff] %v13426_v3  ;;  %v13429_v4 = vpop.f32.mrb[9].mxu1  ;;  %v12419_v3 = vld [vmem:[#allocation4 + $0x278] ss:$12 sps:$4 sm:$0xff]  }
 0x20f   :  { %14424 = vst [vmem:[#allocation21_spill] sm:$0xff] %v13429_v4  ;;  %v13431_v8 = vpop.f32.mrb[10].mxu1  ;;  %2427 = vmatmul.mubr.bf16.gmra.mrb[16].mxu0 %v13185_v26 }
 0x210   :  { %14425 = vst [vmem:[#allocation22_spill] sm:$0xff] %v13431_v8  ;;  %v13433_v9 = vpop.f32.mrb[11].mxu1  ;;  %2436 = vmatprep.mubr.bf16.mxu0 %v14413_v0 }
 0x211   :  { %14426 = vst [vmem:[#allocation23_spill] sm:$0xff] %v13433_v9 }
 0x212   :  { %3394 = vmatmul.mubr.bf16.gmra.mrb[44].mxu1 %v13181_v18 }
 0x213   :  { %3403 = vmatprep.mubr.bf16.mxu1 %v14413_v0 }
 0x215   :  { %v13438_v14 = vpop.f32.mrb[12].mxu1 }
 0x216   :  { %14427 = vst [vmem:[#allocation24_spill] sm:$0xff] %v13438_v14  ;;  %v13441_v19 = vpop.f32.mrb[13].mxu1  ;;  %v12418_v14 = vld [vmem:[#allocation4 + $0x260] ss:$12 sps:$4 sm:$0xff]  }
 0x217   :  { %14428 = vst [vmem:[#allocation25_spill] sm:$0xff] %v13441_v19  ;;  %v13443_v20 = vpop.f32.mrb[14].mxu1  ;;  %2437 = vmatmul.mubr.bf16.gmra.mrb[20].mxu0 %v13193_v31 }
 0x218   :  { %14429 = vst [vmem:[#allocation26_spill] sm:$0xff] %v13443_v20  ;;  %v13445_v7 = vpop.f32.mrb[15].mxu1  ;;  %2446 = vmatprep.mubr.bf16.mxu0 %v14413_v0  ;;  %v14439_v20 = vmov 0  }
 0x219   :  { %14430 = vst [vmem:[#allocation27_spill] sm:$0xff] %v13445_v7 }
 0x21a   :  { %3404 = vmatmul.mubr.bf16.gmra.mrb[48].mxu1 %v13185_v26 }
 0x21b   :  { %3413 = vmatprep.mubr.bf16.mxu1 %v14413_v0 }
 0x21d   :  { %v13450_v22 = vpop.f32.mrb[16].mxu1 }
 0x21e   :  { %14431 = vst [vmem:[#allocation28_spill] sm:$0xff] %v13450_v22  ;;  %v13453_v24 = vpop.f32.mrb[17].mxu1 }
 0x21f   :  { %14432 = vst [vmem:[#allocation29_spill] sm:$0xff] %v13453_v24  ;;  %v13455_v29 = vpop.f32.mrb[18].mxu1  ;;  %2447 = vmatmul.mubr.bf16.gmra.mrb[24].mxu0 %v13197_v38 }
 0x220   :  { %14433 = vst [vmem:[#allocation30_spill] sm:$0xff] %v13455_v29  ;;  %v13457_v32 = vpop.f32.mrb[19].mxu1  ;;  %2456 = vmatprep.mubr.bf16.mxu0 %v14413_v0 }
 0x221   :  { %14434 = vst [vmem:[#allocation31_spill] sm:$0xff] %v13457_v32 }
 0x222   :  { %3414 = vmatmul.mubr.bf16.gmra.mrb[52].mxu1 %v13193_v31 }
 0x223   :  { %3423 = vmatprep.mubr.bf16.mxu1 %v14413_v0 }
 0x225   :  { %v13462_v34 = vpop.f32.mrb[20].mxu1 }
 0x226   :  { %14435 = vst [vmem:[#allocation32_spill] sm:$0xff] %v13462_v34  ;;  %v13465_v36 = vpop.f32.mrb[21].mxu1 }
 0x227   :  { %14436 = vst [vmem:[#allocation33_spill] sm:$0xff] %v13465_v36  ;;  %v13467_v41 = vpop.f32.mrb[22].mxu1  ;;  %2457 = vmatmul.mubr.bf16.gmra.mrb[28].mxu0 %v13205_v42 }
 0x228   :  { %14437 = vst [vmem:[#allocation34_spill] sm:$0xff] %v13467_v41  ;;  %v13469_v43 = vpop.f32.mrb[23].mxu1  ;;  %2466 = vmatprep.mubr.bf16.mxu0 %v14413_v0 }
 0x229   :  { %14438 = vst [vmem:[#allocation35_spill] sm:$0xff] %v13469_v43 }
 0x22a   :  { %3424 = vmatmul.mubr.bf16.gmra.mrb[56].mxu1 %v13197_v38 }
 0x22b   :  { %3433 = vmatprep.mubr.bf16.mxu1 %v14413_v0 }
 0x22f   :  { %2467 = vmatmul.mubr.bf16.gmra.mrb[32].mxu0 %v13209_v49 }
 0x230   :  { %2476 = vmatprep.mubr.bf16.mxu0 %v14413_v0 }
 0x232   :  { %3434 = vmatmul.mubr.bf16.gmra.mrb[60].mxu1 %v13205_v42 }
 0x233   :  { %3443 = vmatprep.mubr.bf16.mxu1 %v14413_v0 }
 0x237   :  { %2477 = vmatmul.mubr.bf16.gmra.mrb[36].mxu0 %v13217_v50 }
 0x238   :  { %2486 = vmatprep.mubr.bf16.mxu0 %v14413_v0 }
 0x23a   :  { %3444 = vmatmul.mubr.bf16.gmra.mrb[64].mxu1 %v13209_v49 }
 0x23b   :  { %3453 = vmatprep.mubr.bf16.mxu1 %v14413_v0 }
 0x23f   :  { %2487 = vmatmul.mubr.bf16.gmra.mrb[40].mxu0 %v13250_v15 }
 0x240   :  { %2496 = vmatprep.mubr.bf16.mxu0 %v14413_v0 }
 0x242   :  { %3454 = vmatmul.mubr.bf16.gmra.mrb[68].mxu1 %v13217_v50 }
 0x243   :  { %10922 = vmatprep.mubr.bf16.mxu1 %v13149_v28  ;;  %v12367_v28 = vld [vmem:[#allocation4 + $0x1b0] ss:$12 sps:$4 sm:$0xff]  }
 0x247   :  { %2497 = vmatmul.mubr.bf16.gmra.mrb[44].mxu0 %v13313_v16 }
 0x24a   :  { %10923 = vmatmul.mubr.bf16.vlgmr.msra.gmra.mrb[72].mxu1 %v13157_v39 }
 0x24b   :  { %3755 = vmatpush1.bf16.msra.mxu1 %v12361_v44  ;;  %10926 = vmatprep.mubr.bf16.mxu1 %v13161_v5  ;;  %v12382_v44 = vld [vmem:[#allocation4 + $0x228] ss:$12 sps:$4 sm:$0xff]  }
 0x24c   :  { %3756 = vmatprep.subr.bf16.mxu1 %v12366_v46  ;;  %v12385_v46 = vld [vmem:[#allocation4 + $0x188] ss:$12 sps:$4 sm:$0xff]  }
 0x24f   :  { %3757 = vmatpush1.bf16.msra.mxu1 %v12364_v48  ;;  %v12386_v48 = vld [vmem:[#allocation4 + $0x1a0] ss:$12 sps:$4 sm:$0xff]  }
 0x250   :  { %3758 = vmatprep.subr.bf16.mxu1 %v12369_v12  ;;  %v12387_v12 = vld [vmem:[#allocation4 + $0x1b8] ss:$12 sps:$4 sm:$0xff]  }
 0x252   :  { %10927 = vmatmul.mubr.bf16.gmra.mrb[76].mxu1 %v13169_v6 }
 0x253   :  { %3759 = vmatpush1.bf16.msra.mxu1 %v12367_v28  ;;  %10930 = vmatprep.mubr.bf16.mxu1 %v13173_v13  ;;  %v12388_v28 = vld [vmem:[#allocation4 + $0x1d0] ss:$12 sps:$4 sm:$0xff]  }
 0x254   :  { %3760 = vmatprep.subr.bf16.mxu1 %v12372_v17  ;;  %v12389_v17 = vld [vmem:[#allocation4 + $0x1e8] ss:$12 sps:$4 sm:$0xff]  }
 0x257   :  { %3761 = vmatpush1.bf16.msra.mxu1 %v12370_v30  ;;  %v12390_v30 = vld [vmem:[#allocation4 + $0x200] ss:$12 sps:$4 sm:$0xff]  }
 0x258   :  { %3762 = vmatprep.subr.bf16.mxu1 %v12375_v37  ;;  %v12391_v37 = vld [vmem:[#allocation4 + $0x218] ss:$12 sps:$4 sm:$0xff]  }
 0x25a   :  { %10931 = vmatmul.mubr.bf16.gmra.mrb[80].mxu1 %v13181_v18 }
 0x25b   :  { %10934 = vmatprep.mubr.bf16.mxu1 %v13185_v26  ;;  %3763 = vmatpush1.bf16.msra.mxu1 %v12373_v40  ;;  %v12392_v40 = vld [vmem:[#allocation4 + $0x230] ss:$12 sps:$4 sm:$0xff]  }
 0x25c   :  { %3764 = vmatprep.subr.bf16.mxu1 %v12378_v51  ;;  %v12395_v51 = vld [vmem:[#allocation4 + $0x244] ss:$12 sps:$4 sm:$0xff]  }
 0x25f   :  { %3765 = vmatpush1.bf16.msra.mxu1 %v12376_v52  ;;  %v12393_v52 = vld [vmem:[#allocation4 + $0x240] ss:$12 sps:$4 sm:$0xff]  }
 0x260   :  { %3766 = vmatprep.subr.bf16.mxu1 %v12381_v53 }
 0x262   :  { %10935 = vmatmul.mubr.bf16.gmra.mrb[84].mxu1 %v13193_v31 }
 0x263   :  { %10938 = vmatprep.mubr.bf16.mxu1 %v13197_v38  ;;  %3767 = vmatpush1.bf16.msra.mxu1 %v12379_v60  ;;  %v12398_v60 = vld [vmem:[#allocation4 + $0x25c] ss:$12 sps:$4 sm:$0xff]  }
 0x264   :  { %3768 = vmatprep.subr.bf16.mxu1 %v12384_v61 }
 0x267   :  { %3769 = vmatpush1.bf16.msra.mxu1 %v12382_v44 }
 0x268   :  { %10946 = vmatprep.subr.bf16.mxu1 %v12385_v46 }
 0x26a   :  { %10939 = vmatmul.mubr.bf16.gmra.mrb[88].mxu1 %v13205_v42 }
 0x26b   :  { %10942 = vmatprep.mubr.bf16.mxu1 %v13209_v49 }
 0x272   :  { %10943 = vmatmul.mubr.bf16.gmra.mrb[92].mxu1 %v13217_v50 }
 0x273   :  { %3786 = vmatprep.mubr.bf16.mxu1 %v14413_v0 }
 0x27a   :  { %3787 = vmatmul.mubr.bf16.vlgmr.msra.gmra.mrb[24].mxu1 %v13157_v39 }
 0x27b   :  { %10947 = vmatpush3.bf16.msra.mxu1 %v12385_v46  ;;  %3796 = vmatprep.mubr.bf16.mxu1 %v14413_v0 }
 0x27c   :  { %10948 = vmatprep.subr.bf16.mxu1 %v12386_v48 }
 0x27f   :  { %10949 = vmatpush3.bf16.msra.mxu1 %v12386_v48  ;;  %v12396_v48 = vld [vmem:[#allocation4 + $0x258] ss:$12 sps:$4 sm:$0xff]  }
 0x280   :  { %10950 = vmatprep.subr.bf16.mxu1 %v12387_v12 }
 0x282   :  { %3797 = vmatmul.mubr.bf16.gmra.mrb[28].mxu1 %v13161_v5 }
 0x283   :  { %3806 = vmatprep.mubr.bf16.mxu1 %v14413_v0  ;;  %10951 = vmatpush3.bf16.msra.mxu1 %v12387_v12  ;;  %v12401_v12 = vld [vmem:[#allocation4 + $0x274] ss:$12 sps:$4 sm:$0xff]  }
 0x284   :  { %10952 = vmatprep.subr.bf16.mxu1 %v12388_v28 }
 0x287   :  { %10953 = vmatpush3.bf16.msra.mxu1 %v12388_v28 }
 0x288   :  { %10954 = vmatprep.subr.bf16.mxu1 %v12389_v17 }
 0x28a   :  { %3807 = vmatmul.mubr.bf16.gmra.mrb[32].mxu1 %v13169_v6 }
 0x28b   :  { %3816 = vmatprep.mubr.bf16.mxu1 %v14413_v0  ;;  %10955 = vmatpush3.bf16.msra.mxu1 %v12389_v17  ;;  %v12404_v17 = vld [vmem:[#allocation4 + $0x28c] ss:$12 sps:$4 sm:$0xff]  }
 0x28c   :  { %10956 = vmatprep.subr.bf16.mxu1 %v12390_v30 }
 0x28f   :  { %10957 = vmatpush3.bf16.msra.mxu1 %v12390_v30 }
 0x290   :  { %10958 = vmatprep.subr.bf16.mxu1 %v12391_v37 }
 0x292   :  { %3817 = vmatmul.mubr.bf16.gmra.mrb[36].mxu1 %v13173_v13 }
 0x293   :  { %3826 = vmatprep.mubr.bf16.mxu1 %v14413_v0  ;;  %10959 = vmatpush3.bf16.msra.mxu1 %v12391_v37 }
 0x294   :  { %10960 = vmatprep.subr.bf16.mxu1 %v12392_v40 }
 0x297   :  { %10961 = vmatpush3.bf16.msra.mxu1 %v12392_v40 }
 0x298   :  { %4269 = vmatprep.subr.bf16.mxu1 %v12395_v51  ;;  %v12402_v51 = vld [vmem:[#allocation4 + $0x288] ss:$12 sps:$4 sm:$0xff]  }
 0x29a   :  { %3827 = vmatmul.mubr.bf16.gmra.mrb[40].mxu1 %v13181_v18 }
 0x29b   :  { %3836 = vmatprep.mubr.bf16.mxu1 %v14413_v0 }
 0x2a2   :  { %3837 = vmatmul.mubr.bf16.gmra.mrb[44].mxu1 %v13185_v26 }
 0x2a3   :  { %3846 = vmatprep.mubr.bf16.mxu1 %v14413_v0 }
 0x2aa   :  { %3847 = vmatmul.mubr.bf16.gmra.mrb[48].mxu1 %v13193_v31 }
 0x2ab   :  { %3856 = vmatprep.mubr.bf16.mxu1 %v14413_v0 }
 0x2b2   :  { %3857 = vmatmul.mubr.bf16.gmra.mrb[52].mxu1 %v13197_v38 }
 0x2b3   :  { %3866 = vmatprep.mubr.bf16.mxu1 %v14413_v0 }
 0x2ba   :  { %3867 = vmatmul.mubr.bf16.gmra.mrb[56].mxu1 %v13205_v42 }
 0x2bb   :  { %3876 = vmatprep.mubr.bf16.mxu1 %v14413_v0 }
 0x2c2   :  { %3877 = vmatmul.mubr.bf16.gmra.mrb[60].mxu1 %v13209_v49  ;;  %v13528_v53 = vpop.f32.mrb[0].mxu0 }
 0x2c3   :  { %3886 = vmatprep.mubr.bf16.mxu1 %v14413_v0  ;;  %v13530_v61 = vpop.f32.mrb[1].mxu0 }
 0x2c4   :  { %v13532_v44 = vpop.f32.mrb[2].mxu0 }
 0x2c5   :  { %v13535_v46 = vpop.f32.mrb[3].mxu0 }
 0x2ca   :  { %3887 = vmatmul.mubr.bf16.gmra.mrb[64].mxu1 %v13217_v50  ;;  %v13538_v28 = vpop.f32.mrb[4].mxu0 }
 0x2cb   :  { %3896 = vmatprep.mubr.bf16.mxu1 %v14413_v0  ;;  %v13540_v30 = vpop.f32.mrb[5].mxu0 }
 0x2cc   :  { %v13542_v37 = vpop.f32.mrb[6].mxu0 }
 0x2cd   :  { %v13545_v40 = vpop.f32.mrb[7].mxu0 }
 0x2d2   :  { %3897 = vmatmul.mubr.bf16.gmra.mrb[68].mxu1 %v13250_v15 }
 0x2d3   :  { %10962 = vmatprep.mubr.bf16.mxu1 %v13157_v39  ;;  %v12399_v39 = vld [vmem:[#allocation4 + $0x270] ss:$12 sps:$4 sm:$0xff]  }
 0x2da   :  { %10963 = vmatmul.mubr.bf16.vlgmr.msra.gmra.mrb[72].mxu1 %v13161_v5 }
 0x2db   :  { %4270 = vmatpush1.bf16.msra.mxu1 %v12393_v52  ;;  %10966 = vmatprep.mubr.bf16.mxu1 %v13169_v6  ;;  %v12407_v52 = vld [vmem:[#allocation4 + $0x2a4] ss:$12 sps:$4 sm:$0xff]  }
 0x2dc   :  { %4271 = vmatprep.subr.bf16.mxu1 %v12398_v60  ;;  %v12405_v60 = vld [vmem:[#allocation4 + $0x2a0] ss:$12 sps:$4 sm:$0xff]  }
 0x2df   :  { %4272 = vmatpush1.bf16.msra.mxu1 %v12396_v48  ;;  %v13548_v48 = vpop.f32.mrb[8].mxu0 }
 0x2e0   :  { %4273 = vmatprep.subr.bf16.mxu1 %v12401_v12  ;;  %v12410_v12 = vld [vmem:[#allocation4 + $0x2bc] ss:$12 sps:$4 sm:$0xff]   ;;  %v13550_v0 = vpop.f32.mrb[9].mxu0 }
 0x2e1   :  { %v13552_v43 = vpop.f32.mrb[10].mxu0 }
 0x2e2   :  { %10967 = vmatmul.mubr.bf16.gmra.mrb[76].mxu1 %v13173_v13  ;;  %v13555_v41 = vpop.f32.mrb[11].mxu0 }
 0x2e3   :  { %4274 = vmatpush1.bf16.msra.mxu1 %v12399_v39  ;;  %10970 = vmatprep.mubr.bf16.mxu1 %v13181_v18  ;;  %v12408_v39 = vld [vmem:[#allocation4 + $0x2b8] ss:$12 sps:$4 sm:$0xff]   ;;  %v13558_v36 = vpop.f32.mrb[12].mxu0 }
 0x2e4   :  { %4275 = vmatprep.subr.bf16.mxu1 %v12404_v17  ;;  %v12413_v17 = vld [vmem:[#allocation4 + $0x2d4] ss:$12 sps:$4 sm:$0xff]   ;;  %v13560_v34 = vpop.f32.mrb[13].mxu0 }
 0x2e5   :  { %v13562_v32 = vpop.f32.mrb[14].mxu0 }
 0x2e6   :  { %v13565_v29 = vpop.f32.mrb[15].mxu0 }
 0x2e7   :  { %4276 = vmatpush1.bf16.msra.mxu1 %v12402_v51  ;;  %v12411_v51 = vld [vmem:[#allocation4 + $0x2d0] ss:$12 sps:$4 sm:$0xff]  }
 0x2e8   :  { %4277 = vmatprep.subr.bf16.mxu1 %v12407_v52  ;;  %v12416_v52 = vld [vmem:[#allocation4 + $0x2ec] ss:$12 sps:$4 sm:$0xff]  }
 0x2ea   :  { %10971 = vmatmul.mubr.bf16.gmra.mrb[80].mxu1 %v13185_v26 }
 0x2eb   :  { %10974 = vmatprep.mubr.bf16.mxu1 %v13193_v31  ;;  %4278 = vmatpush1.bf16.msra.mxu1 %v12405_v60  ;;  %v12414_v60 = vld [vmem:[#allocation4 + $0x2e8] ss:$12 sps:$4 sm:$0xff]  }
 0x2ec   :  { %4279 = vmatprep.subr.bf16.mxu1 %v12410_v12  ;;  %v12417_v12 = vld [vmem:[#allocation4 + $0x248] ss:$12 sps:$4 sm:$0xff]  }
 0x2ef   :  { %4280 = vmatpush1.bf16.msra.mxu1 %v12408_v39  ;;  %v13568_v39 = vpop.f32.mrb[16].mxu0 }
 0x2f0   :  { %4281 = vmatprep.subr.bf16.mxu1 %v12413_v17  ;;  %v13570_v17 = vpop.f32.mrb[17].mxu0 }
 0x2f1   :  { %v13572_v24 = vpop.f32.mrb[18].mxu0 }
 0x2f2   :  { %10975 = vmatmul.mubr.bf16.gmra.mrb[84].mxu1 %v13197_v38  ;;  %v13575_v22 = vpop.f32.mrb[19].mxu0 }
 0x2f3   :  { %10978 = vmatprep.mubr.bf16.mxu1 %v13205_v42  ;;  %4282 = vmatpush1.bf16.msra.mxu1 %v12411_v51  ;;  %v13578_v7 = vpop.f32.mrb[20].mxu0 }
 0x2f4   :  { %4283 = vmatprep.subr.bf16.mxu1 %v12416_v52  ;;  %v13580_v51 = vpop.f32.mrb[21].mxu0 }
 0x2f5   :  { %v13582_v52 = vpop.f32.mrb[22].mxu0 }
 0x2f7   :  { %4284 = vmatpush1.bf16.msra.mxu1 %v12414_v60  ;;  %v13585_v60 = vpop.f32.mrb[23].mxu0 }
 0x2f8   :  { %10986 = vmatprep.subr.bf16.mxu1 %v12417_v12  ;;  %v13588_v19 = vpop.f32.mrb[24].mxu0 }
 0x2f9   :  { %v13590_v9 = vpop.f32.mrb[25].mxu0 }
 0x2fa   :  { %10979 = vmatmul.mubr.bf16.gmra.mrb[88].mxu1 %v13209_v49  ;;  %v13592_v8 = vpop.f32.mrb[26].mxu0 }
 0x2fb   :  { %10982 = vmatprep.mubr.bf16.mxu1 %v13217_v50  ;;  %v13595_v4 = vpop.f32.mrb[27].mxu0 }
 0x2fc   :  { %v13598_v2 = vpop.f32.mrb[28].mxu0 }
 0x2fd   :  { %v13600_v63 = vpop.f32.mrb[29].mxu0 }
 0x2fe   :  { %14440 = vst [vmem:[#allocation36_spill] sm:$0xff] %v13600_v63  ;;  %v13602_v62 = vpop.f32.mrb[30].mxu0 }
 0x2ff   :  { %14441 = vst [vmem:[#allocation37_spill] sm:$0xff] %v13602_v62  ;;  %v13605_v58 = vpop.f32.mrb[31].mxu0 }
 0x300   :  { %14442 = vst [vmem:[#allocation38_spill] sm:$0xff] %v13605_v58 }
 0x302   :  { %10983 = vmatmul.mubr.bf16.gmra.mrb[92].mxu1 %v13250_v15  ;;  %v13608_v56 = vpop.f32.mrb[32].mxu0 }
 0x303   :  { %4301 = vmatprep.mubr.bf16.mxu1 %v14439_v20  ;;  %14443 = vst [vmem:[#allocation39_spill] sm:$0xff] %v13608_v56  ;;  %v13610_v55 = vpop.f32.mrb[33].mxu0  ;;  %v12424_v56 = vld [vmem:[#allocation4 + $0x2f0] ss:$12 sps:$4 sm:$0xff]  }
 0x304   :  { %v13612_v54 = vpop.f32.mrb[34].mxu0 }
 0x305   :  { %14444 = vst [vmem:[#allocation40_spill] sm:$0xff] %v13612_v54  ;;  %v13615_v62 = vpop.f32.mrb[35].mxu0 }
 0x306   :  { %14445 = vst [vmem:[#allocation41_spill] sm:$0xff] %v13615_v62 }
 0x30a   :  { %4302 = vmatmul.mubr.bf16.vlgmr.msra.gmra.mrb[24].mxu1 %v12999_v21  ;;  %v13618_v58 = vpop.f32.mrb[36].mxu0 }
 0x30b   :  { %10987 = vmatpush3.bf16.msra.mxu1 %v12417_v12  ;;  %4311 = vmatprep.mubr.bf16.mxu1 %v14439_v20  ;;  %v12421_v12 = vld [vmem:[#allocation4 + $0x2a8] ss:$12 sps:$4 sm:$0xff]   ;;  %14446 = vst [vmem:[#allocation42_spill] sm:$0xff] %v13618_v58 }
 0x30c   :  { %10988 = vmatprep.subr.bf16.mxu1 %v12418_v14 }
 0x30f   :  { %10989 = vmatpush3.bf16.msra.mxu1 %v12418_v14  ;;  %v12422_v14 = vld [vmem:[#allocation4 + $0x2c0] ss:$12 sps:$4 sm:$0xff]  }
 0x310   :  { %10990 = vmatprep.subr.bf16.mxu1 %v12419_v3 }
 0x312   :  { %4312 = vmatmul.mubr.bf16.gmra.mrb[28].mxu1 %v13003_v23 }
 0x313   :  { %4321 = vmatprep.mubr.bf16.mxu1 %v14439_v20  ;;  %10991 = vmatpush3.bf16.msra.mxu1 %v12419_v3  ;;  %v12423_v3 = vld [vmem:[#allocation4 + $0x2d8] ss:$12 sps:$4 sm:$0xff]  }
 0x314   :  { %10992 = vmatprep.subr.bf16.mxu1 %v12420_v1 }
 0x317   :  { %10993 = vmatpush3.bf16.msra.mxu1 %v12420_v1  ;;  %v13620_v1 = vpop.f32.mrb[37].mxu0 }
 0x318   :  { %10994 = vmatprep.subr.bf16.mxu1 %v12421_v12  ;;  %14447 = vst [vmem:[#allocation43_spill] sm:$0xff] %v13620_v1  ;;  %v13622_v63 = vpop.f32.mrb[38].mxu0 }
 0x319   :  { %14448 = vst [vmem:[#allocation44_spill] sm:$0xff] %v13622_v63  ;;  %v13625_v54 = vpop.f32.mrb[39].mxu0 }
 0x31a   :  { %4322 = vmatmul.mubr.bf16.gmra.mrb[32].mxu1 %v13029_v33  ;;  %14449 = vst [vmem:[#allocation45_spill] sm:$0xff] %v13625_v54  ;;  %v13628_v62 = vpop.f32.mrb[40].mxu0 }
 0x31b   :  { %4331 = vmatprep.mubr.bf16.mxu1 %v14439_v20  ;;  %10995 = vmatpush3.bf16.msra.mxu1 %v12421_v12  ;;  %v12427_v12 = vld [vmem:[#allocation4 + $0x304] ss:$12 sps:$4 sm:$0xff]  }
 0x31c   :  { %10996 = vmatprep.subr.bf16.mxu1 %v12422_v14 }
 0x31f   :  { %10997 = vmatpush3.bf16.msra.mxu1 %v12422_v14  ;;  %v13630_v14 = vpop.f32.mrb[41].mxu0 }
 0x320   :  { %10998 = vmatprep.subr.bf16.mxu1 %v12423_v3  ;;  %v13632_v58 = vpop.f32.mrb[42].mxu0 }
 0x321   :  { %14450 = vst [vmem:[#allocation46_spill] sm:$0xff] %v13632_v58  ;;  %v13635_v63 = vpop.f32.mrb[43].mxu0  ;;  %v12439_v58 = vld [vmem:[#allocation4 + $0x364] ss:$12 sps:$4 sm:$0xff]  }
 0x322   :  { %4332 = vmatmul.mubr.bf16.gmra.mrb[36].mxu1 %v13033_v35  ;;  %14451 = vst [vmem:[#allocation47_spill] sm:$0xff] %v13635_v63  ;;  %v13638_v54 = vpop.f32.mrb[44].mxu0  ;;  %v12436_v63 = vld [vmem:[#allocation4 + $0x34c] ss:$12 sps:$4 sm:$0xff]  }
 0x323   :  { %4341 = vmatprep.mubr.bf16.mxu1 %v14439_v20  ;;  %10999 = vmatpush3.bf16.msra.mxu1 %v12423_v3  ;;  %14452 = vst [vmem:[#allocation48_spill] sm:$0xff] %v13638_v54  ;;  %v13640_v1 = vpop.f32.mrb[45].mxu0  ;;  %v12431_v54 = vld [vmem:[#allocation4 + $0x330] ss:$12 sps:$4 sm:$0xff]  }
 0x324   :  { %11000 = vmatprep.subr.bf16.mxu1 %v12424_v56  ;;  %14453 = vst [vmem:[#allocation49_spill] sm:$0xff] %v13640_v1  ;;  %v13642_v3 = vpop.f32.mrb[46].mxu0  ;;  %v12433_v1 = vld [vmem:[#allocation4 + $0x334] ss:$12 sps:$4 sm:$0xff]  }
 0x325   :  { %14454 = vst [vmem:[#allocation50_spill] sm:$0xff] %v13642_v3  ;;  %v12428_v3 = vld [vmem:[#allocation4 + $0x318] ss:$12 sps:$4 sm:$0xff]  }
 0x327   :  { %11001 = vmatpush3.bf16.msra.mxu1 %v12424_v56  ;;  %v13645_v56 = vpop.f32.mrb[47].mxu0 }
 0x328   :  { %4784 = vmatprep.subr.bf16.mxu1 %v12427_v12  ;;  %14455 = vst [vmem:[#allocation51_spill] sm:$0xff] %v13645_v56  ;;  %v12425_v12 = vld [vmem:[#allocation4 + $0x300] ss:$12 sps:$4 sm:$0xff]   ;;  %v12430_v56 = vld [vmem:[#allocation4 + $0x31c] ss:$12 sps:$4 sm:$0xff]  }
 0x32a   :  { %4342 = vmatmul.mubr.bf16.gmra.mrb[40].mxu1 %v13059_v45 }
 0x32b   :  { %4351 = vmatprep.mubr.bf16.mxu1 %v14439_v20 }
 0x332   :  { %4352 = vmatmul.mubr.bf16.gmra.mrb[44].mxu1 %v13063_v47 }
 0x333   :  { %4361 = vmatprep.mubr.bf16.mxu1 %v14439_v20 }
 0x33a   :  { %4362 = vmatmul.mubr.bf16.gmra.mrb[48].mxu1 %v13089_v57 }
 0x33b   :  { %4371 = vmatprep.mubr.bf16.mxu1 %v14439_v20 }
 0x342   :  { %4372 = vmatmul.mubr.bf16.gmra.mrb[52].mxu1 %v13093_v59 }
 0x343   :  { %4381 = vmatprep.mubr.bf16.mxu1 %v14439_v20 }
 0x34a   :  { %4382 = vmatmul.mubr.bf16.gmra.mrb[56].mxu1 %v13121_v10 }
 0x34b   :  { %4391 = vmatprep.mubr.bf16.mxu1 %v14439_v20 }
 0x352   :  { %4392 = vmatmul.mubr.bf16.gmra.mrb[60].mxu1 %v13125_v11 }
 0x353   :  { %4401 = vmatprep.mubr.bf16.mxu1 %v14439_v20 }
 0x35a   :  { %4402 = vmatmul.mubr.bf16.gmra.mrb[64].mxu1 %v13146_v27 }
 0x35b   :  { %4411 = vmatprep.mubr.bf16.mxu1 %v14439_v20 }
 0x362   :  { %4412 = vmatmul.mubr.bf16.gmra.mrb[68].mxu1 %v13283_v25 }
 0x363   :  { %11002 = vmatprep.mubr.bf16.mxu1 %v12999_v21  ;;  %v12434_v21 = vld [vmem:[#allocation4 + $0x348] ss:$12 sps:$4 sm:$0xff]  }
 0x36a   :  { %11003 = vmatmul.mubr.bf16.vlgmr.msra.gmra.mrb[72].mxu1 %v13003_v23  ;;  %v12437_v23 = vld [vmem:[#allocation4 + $0x360] ss:$12 sps:$4 sm:$0xff]  }
 0x36b   :  { %4785 = vmatpush1.bf16.msra.mxu1 %v12425_v12  ;;  %11006 = vmatprep.mubr.bf16.mxu1 %v13029_v33  ;;  %v12442_v12 = vld [vmem:[#allocation4 + $0x37c] ss:$12 sps:$4 sm:$0xff]   ;;  %v12440_v33 = vld [vmem:[#allocation4 + $0x378] ss:$12 sps:$4 sm:$0xff]  }
 0x36c   :  { %4786 = vmatprep.subr.bf16.mxu1 %v12430_v56  ;;  %v12459_v56 = vld [vmem:[#allocation6 + $0x108] sm:$0xff]  }
 0x36f   :  { %4787 = vmatpush1.bf16.msra.mxu1 %v12428_v3  ;;  %v12456_v3 = vld [vmem:[#allocation4 + $0x3b0] ss:$12 sps:$4 sm:$0xff]  }
 0x370   :  { %4788 = vmatprep.subr.bf16.mxu1 %v12433_v1  ;;  %v12445_v1 = vld [vmem:[#allocation4 + $0x394] ss:$12 sps:$4 sm:$0xff]  }
 0x372   :  { %11007 = vmatmul.mubr.bf16.gmra.mrb[76].mxu1 %v13033_v35  ;;  %v12443_v35 = vld [vmem:[#allocation4 + $0x390] ss:$12 sps:$4 sm:$0xff]  }
 0x373   :  { %4789 = vmatpush1.bf16.msra.mxu1 %v12431_v54  ;;  %11010 = vmatprep.mubr.bf16.mxu1 %v13059_v45  ;;  %v12448_v54 = vld [vmem:[#allocation4 + $0x3ac] ss:$12 sps:$4 sm:$0xff]   ;;  %v12446_v45 = vld [vmem:[#allocation4 + $0x3a8] ss:$12 sps:$4 sm:$0xff]  }
 0x374   :  { %4790 = vmatprep.subr.bf16.mxu1 %v12436_v63  ;;  %v12455_v63 = vld [vmem:[#allocation4 + $0x398] ss:$12 sps:$4 sm:$0xff]  }
 0x377   :  { %4791 = vmatpush1.bf16.msra.mxu1 %v12434_v21  ;;  %v12460_v21 = vld [vmem:[#allocation6 + $0xc8] sm:$0xff]  }
 0x378   :  { %4792 = vmatprep.subr.bf16.mxu1 %v12439_v58  ;;  %v12449_v58 = vld [vmem:[#allocation4 + $0x308] ss:$12 sps:$4 sm:$0xff]  }
 0x37a   :  { %11011 = vmatmul.mubr.bf16.gmra.mrb[80].mxu1 %v13063_v47  ;;  %v12450_v47 = vld [vmem:[#allocation4 + $0x320] ss:$12 sps:$4 sm:$0xff]  }
 0x37b   :  { %11014 = vmatprep.mubr.bf16.mxu1 %v13089_v57  ;;  %4793 = vmatpush1.bf16.msra.mxu1 %v12437_v23  ;;  %v12451_v57 = vld [vmem:[#allocation4 + $0x338] ss:$12 sps:$4 sm:$0xff]   ;;  %v12461_v23 = vld [vmem:[#allocation6 + $0x110] sm:$0xff]  }
 0x37c   :  { %4794 = vmatprep.subr.bf16.mxu1 %v12442_v12  ;;  %v12462_v12 = vld [vmem:[#allocation6 + $0xd0] sm:$0xff]  }
 0x37f   :  { %4795 = vmatpush1.bf16.msra.mxu1 %v12440_v33  ;;  %v12463_v33 = vld [vmem:[#allocation6 + $0x118] sm:$0xff]  }
 0x380   :  { %4796 = vmatprep.subr.bf16.mxu1 %v12445_v1  ;;  %v12464_v1 = vld [vmem:[#allocation6 + $0xd8] sm:$0xff]  }
 0x382   :  { %11015 = vmatmul.mubr.bf16.gmra.mrb[84].mxu1 %v13093_v59  ;;  %v12452_v59 = vld [vmem:[#allocation4 + $0x350] ss:$12 sps:$4 sm:$0xff]  }
 0x383   :  { %11018 = vmatprep.mubr.bf16.mxu1 %v13121_v10  ;;  %4797 = vmatpush1.bf16.msra.mxu1 %v12443_v35  ;;  %v12457_v10 = vld [vmem:[#allocation6 + $0x100] sm:$0xff]  }
 0x384   :  { %4798 = vmatprep.subr.bf16.mxu1 %v12448_v54  ;;  %10101 = vmatprep.subr.bf16.mxu0 %v12457_v10  ;;  %v12465_v35 = vld [vmem:[#allocation6 + $0x120] sm:$0xff]   ;;  %v12476_v10 = vld [vmem:[#allocation7 + $0x250] sm:$0xff]  }
 0x385   :  { %v12467_v54 = vld [vmem:[#allocation6 + $0xe0] sm:$0xff]  }
 0x387   :  { %4799 = vmatpush1.bf16.msra.mxu1 %v12446_v45  ;;  %v12468_v45 = vld [vmem:[#allocation7 + $0x240] sm:$0xff]  }
 0x388   :  { %11026 = vmatprep.subr.bf16.mxu1 %v12449_v58 }
 0x38a   :  { %11019 = vmatmul.mubr.bf16.gmra.mrb[88].mxu1 %v13125_v11  ;;  %v12458_v11 = vld [vmem:[#allocation6 + $0xc0] sm:$0xff]  }
 0x38b   :  { %11022 = vmatprep.mubr.bf16.mxu1 %v13146_v27  ;;  %v12453_v27 = vld [vmem:[#allocation4 + $0x368] ss:$12 sps:$4 sm:$0xff]   ;;  %10102 = vmatpush3.bf16.msra.mxu0 %v12458_v11  ;;  %v12477_v11 = vld [vmem:[#allocation6 + $0x138] sm:$0xff]  }
 0x38c   :  { %10103 = vmatprep.subr.bf16.mxu0 %v12459_v56  ;;  %v12484_v56 = vld [vmem:[#allocation7 + $0x268] sm:$0xff]  }
 0x38f   :  { %10104 = vmatpush3.bf16.msra.mxu0 %v12460_v21  ;;  %v12485_v21 = vld [vmem:[#allocation7 + $0x2b0] sm:$0xff]  }
 0x390   :  { %10105 = vmatprep.subr.bf16.mxu0 %v12461_v23  ;;  %v12486_v23 = vld [vmem:[#allocation7 + $0x270] sm:$0xff]  }
 0x392   :  { %11023 = vmatmul.mubr.bf16.gmra.mrb[92].mxu1 %v13283_v25  ;;  %v12454_v25 = vld [vmem:[#allocation4 + $0x380] ss:$12 sps:$4 sm:$0xff]  }
 0x393   :  { %4816 = vmatprep.mubr.bf16.mxu1 %v14439_v20  ;;  %10106 = vmatpush3.bf16.msra.mxu0 %v12462_v12  ;;  %v12487_v12 = vld [vmem:[#allocation7 + $0x2b8] sm:$0xff]  }
 0x394   :  { %10107 = vmatprep.subr.bf16.mxu0 %v12463_v33  ;;  %v13707_v33 = vld [vmem:[#allocation6 + $0x140] sm:$0xff]  }
 0x397   :  { %10108 = vmatpush3.bf16.msra.mxu0 %v12464_v1 }
 0x398   :  { %10109 = vmatprep.subr.bf16.mxu0 %v12465_v35 }
 0x39a   :  { %4817 = vmatmul.mubr.bf16.vlgmr.msra.gmra.mrb[24].mxu1 %v13161_v5 }
 0x39b   :  { %11027 = vmatpush3.bf16.msra.mxu1 %v12449_v58  ;;  %4826 = vmatprep.mubr.bf16.mxu1 %v14439_v20  ;;  %v12470_v58 = vld [vmem:[#allocation7 + $0x288] sm:$0xff]  }
 0x39c   :  { %11028 = vmatprep.subr.bf16.mxu1 %v12450_v47  ;;  %10110 = vmatpush3.bf16.msra.mxu0 %v12467_v54 }
 0x39f   :  { %11029 = vmatpush3.bf16.msra.mxu1 %v12450_v47  ;;  %v12471_v47 = vld [vmem:[#allocation6 + $0xe8] sm:$0xff]  }
 0x3a0   :  { %11030 = vmatprep.subr.bf16.mxu1 %v12451_v57 }
 0x3a2   :  { %4827 = vmatmul.mubr.bf16.gmra.mrb[28].mxu1 %v13169_v6 }
 0x3a3   :  { %4836 = vmatprep.mubr.bf16.mxu1 %v14439_v20  ;;  %11031 = vmatpush3.bf16.msra.mxu1 %v12451_v57  ;;  %v12472_v57 = vld [vmem:[#allocation7 + $0x248] sm:$0xff]  }
 0x3a4   :  { %11032 = vmatprep.subr.bf16.mxu1 %v12452_v59 }
 0x3a7   :  { %11033 = vmatpush3.bf16.msra.mxu1 %v12452_v59  ;;  %v12474_v59 = vld [vmem:[#allocation7 + $0x290] sm:$0xff]  }
 0x3a8   :  { %11034 = vmatprep.subr.bf16.mxu1 %v12453_v27 }
 0x3aa   :  { %4837 = vmatmul.mubr.bf16.gmra.mrb[32].mxu1 %v13173_v13 }
 0x3ab   :  { %4846 = vmatprep.mubr.bf16.mxu1 %v14439_v20  ;;  %11035 = vmatpush3.bf16.msra.mxu1 %v12453_v27  ;;  %v12478_v27 = vld [vmem:[#allocation7 + $0x298] sm:$0xff]  }
 0x3ac   :  { %11036 = vmatprep.subr.bf16.mxu1 %v12454_v25 }
 0x3af   :  { %11037 = vmatpush3.bf16.msra.mxu1 %v12454_v25  ;;  %v12479_v25 = vld [vmem:[#allocation6 + $0xf8] sm:$0xff]  }
 0x3b0   :  { %11038 = vmatprep.subr.bf16.mxu1 %v12455_v63 }
 0x3b2   :  { %4847 = vmatmul.mubr.bf16.gmra.mrb[36].mxu1 %v13181_v18 }
 0x3b3   :  { %4856 = vmatprep.mubr.bf16.mxu1 %v14439_v20  ;;  %11039 = vmatpush3.bf16.msra.mxu1 %v12455_v63  ;;  %v12480_v63 = vld [vmem:[#allocation7 + $0x258] sm:$0xff]  }
 0x3b4   :  { %11040 = vmatprep.subr.bf16.mxu1 %v12456_v3 }
 0x3b7   :  { %11041 = vmatpush3.bf16.msra.mxu1 %v12456_v3  ;;  %v12483_v3 = vld [vmem:[#allocation7 + $0x2a8] sm:$0xff]  }
 0x3ba   :  { %4857 = vmatmul.mubr.bf16.gmra.mrb[40].mxu1 %v13185_v26 }
 0x3bb   :  { %4866 = vmatprep.mubr.bf16.mxu1 %v14439_v20 }
 0x3c2   :  { %4867 = vmatmul.mubr.bf16.gmra.mrb[44].mxu1 %v13193_v31 }
 0x3c3   :  { %4876 = vmatprep.mubr.bf16.mxu1 %v14439_v20 }
 0x3ca   :  { %4877 = vmatmul.mubr.bf16.gmra.mrb[48].mxu1 %v13197_v38 }
 0x3cb   :  { %4886 = vmatprep.mubr.bf16.mxu1 %v14439_v20 }
 0x3d2   :  { %4887 = vmatmul.mubr.bf16.gmra.mrb[52].mxu1 %v13205_v42 }
 0x3d3   :  { %4896 = vmatprep.mubr.bf16.mxu1 %v14439_v20 }
 0x3da   :  { %4897 = vmatmul.mubr.bf16.gmra.mrb[56].mxu1 %v13209_v49 }
 0x3db   :  { %4906 = vmatprep.mubr.bf16.mxu1 %v14439_v20 }
 0x3e2   :  { %4907 = vmatmul.mubr.bf16.gmra.mrb[60].mxu1 %v13217_v50 }
 0x3e3   :  { %4916 = vmatprep.mubr.bf16.mxu1 %v14439_v20 }
 0x3ea   :  { %4917 = vmatmul.mubr.bf16.gmra.mrb[64].mxu1 %v13250_v15 }
 0x3eb   :  { %4926 = vmatprep.mubr.bf16.mxu1 %v14439_v20  ;;  %v12466_v20 = vld [vmem:[#allocation7 + $0x280] sm:$0xff]  }
 0x3ec   :  { %10517 = vmatprep.subr.bf16.mxu1 %v12466_v20 }
 0x3f2   :  { %4927 = vmatmul.mubr.bf16.gmra.mrb[68].mxu1 %v13313_v16 }
 0x3f3   :  { %11042 = vmatprep.mubr.bf16.mxu1 %v13161_v5  ;;  %v12469_v5 = vld [vmem:[#allocation6 + $0x128] sm:$0xff]  }
 0x3f4   :  { %10111 = vmatprep.subr.bf16.mxu0 %v12469_v5 }
 0x3f5   :  { %10112 = vmatpush3.bf16.msra.mxu0 %v12471_v47  ;;  %v13720_v47 = vld [vmem:[%s14404_s3] sm:$0x7] }
 0x3fa   :  { %11043 = vmatmul.mubr.bf16.vlgmr.msra.gmra.mrb[72].mxu1 %v13169_v6  ;;  %v12473_v6 = vld [vmem:[#allocation6 + $0x130] sm:$0xff]  }
 0x3fb   :  { %11046 = vmatprep.mubr.bf16.mxu1 %v13173_v13  ;;  %10518 = vmatpush3.bf16.msra.mxu1 %v12468_v45  ;;  %v12475_v13 = vld [vmem:[#allocation6 + $0xf0] sm:$0xff]  }
 0x3fc   :  { %10519 = vmatprep.subr.bf16.mxu1 %v12470_v58  ;;  %10113 = vmatprep.subr.bf16.mxu0 %v12473_v6 }
 0x3fd   :  { %10114 = vmatpush3.bf16.msra.mxu0 %v12475_v13 }
 0x3fe   :  { %10115 = vmatprep.subr.bf16.mxu0 %v12477_v11 }
 0x3ff   :  { %10520 = vmatpush3.bf16.msra.mxu1 %v12472_v57 }
 0x400   :  { %10521 = vmatprep.subr.bf16.mxu1 %v12474_v59 }
 0x401   :  { %10116 = vmatpush3.bf16.msra.mxu0 %v12479_v25 }
 0x402   :  { %11047 = vmatmul.mubr.bf16.gmra.mrb[76].mxu1 %v13181_v18  ;;  %v12481_v18 = vld [vmem:[#allocation7 + $0x2a0] sm:$0xff]   ;;  %11066 = vmatprep.subr.bf16.mxu0 %v13707_v33 }
 0x403   :  { %11050 = vmatprep.mubr.bf16.mxu1 %v13185_v26  ;;  %10522 = vmatpush3.bf16.msra.mxu1 %v12476_v10  ;;  %v12482_v26 = vld [vmem:[#allocation7 + $0x260] sm:$0xff]  }
 0x404   :  { %10523 = vmatprep.subr.bf16.mxu1 %v12478_v27 }
 0x407   :  { %10524 = vmatpush3.bf16.msra.mxu1 %v12480_v63 }
 0x408   :  { %10525 = vmatprep.subr.bf16.mxu1 %v12481_v18 }
 0x40a   :  { %11051 = vmatmul.mubr.bf16.gmra.mrb[80].mxu1 %v13193_v31  ;;  %v12488_v31 = vld [vmem:[#allocation7 + $0x278] sm:$0xff]  }
 0x40b   :  { %11054 = vmatprep.mubr.bf16.mxu1 %v13197_v38  ;;  %10526 = vmatpush3.bf16.msra.mxu1 %v12482_v26  ;;  %v12489_v38 = vld [vmem:[#allocation7 + $0x340] sm:$0xff]  }
 0x40c   :  { %10527 = vmatprep.subr.bf16.mxu1 %v12483_v3 }
 0x40f   :  { %10528 = vmatpush3.bf16.msra.mxu1 %v12484_v56 }
 0x410   :  { %10529 = vmatprep.subr.bf16.mxu1 %v12485_v21 }
 0x412   :  { %11055 = vmatmul.mubr.bf16.gmra.mrb[84].mxu1 %v13205_v42  ;;  %v5248_v42 = vlaneseq }
 0x413   :  { %11058 = vmatprep.mubr.bf16.mxu1 %v13209_v49  ;;  %10530 = vmatpush3.bf16.msra.mxu1 %v12486_v23 }
 0x414   :  { %10531 = vmatprep.subr.bf16.mxu1 %v12487_v12  ;;  %v13711_v20 = vshrl.u32 %v5248_v42, 7 }
 0x416   :  { %v5250_v58 = vsub.s32 0, %v13711_v20  ;;  %v5254_v57 = vsub.s32 1, %v13711_v20 }
 0x417   :  { %10532 = vmatpush3.bf16.msra.mxu1 %v12488_v31 }
 0x418   :  { %10569 = vmatprep.subr.bf16.mxu1 %v12489_v38 }
 0x41a   :  { %11059 = vmatmul.mubr.bf16.gmra.mrb[88].mxu1 %v13217_v50 }
 0x41b   :  { %11062 = vmatprep.mubr.bf16.mxu1 %v13250_v15 }
 0x422   :  { %11063 = vmatmul.mubr.bf16.gmra.mrb[92].mxu1 %v13313_v16 }
 0x46d   :  { %v4818_v49 = vpop.f32.mrb[24].mxu1 }
 0x46e   :  { %v5139_v1 = vmax.f32 %v13528_v53, %v4818_v49  ;;  %v4820_v35 = vpop.f32.mrb[25].mxu1 }
 0x46f   :  { %v5140_v54 = vmax.f32 %v13530_v61, %v4820_v35  ;;  %v4822_v50 = vpop.f32.mrb[26].mxu1  ;;  %v13724_v61 = vrot.slane %v13720_v47, %v5250_v58 }
 0x470   :  { %v5142_v15 = vmax.f32 %v13532_v44, %v4822_v50  ;;  %v4824_v45 = vpop.f32.mrb[27].mxu1 }
 0x471   :  { %v5143_v16 = vmax.f32 %v13535_v46, %v4824_v45  ;;  %v13728_v46 = vrot.slane %v13720_v47, %v5254_v57 }
 0x472   :  { %v5211_v5 = vmax.f32 %v5139_v1, %v5142_v15 }
 0x473   :  { %v5212_v53 = vmax.f32 %v5140_v54, %v5143_v16 }
 0x474   :  { %v5263_v63 = vadd.f32 %v13724_v61, %v5211_v5 }
 0x475   :  { %v4828_v6 = vpop.f32.mrb[28].mxu1  ;;  %v5264_v26 = vadd.f32 %v13728_v46, %v5212_v53 }
 0x476   :  { %v5145_v44 = vmax.f32 %v13538_v28, %v4828_v6  ;;  %v4830_v59 = vpop.f32.mrb[29].mxu1  ;;  %v5299_v23 = vmax.f32 %v5263_v63, 0.0 }
 0x477   :  { %v5146_v13 = vmax.f32 %v13540_v30, %v4830_v59  ;;  %v4832_v10 = vpop.f32.mrb[30].mxu1 }
 0x478   :  { %v5148_v11 = vmax.f32 %v13542_v37, %v4832_v10  ;;  %v4834_v27 = vpop.f32.mrb[31].mxu1  ;;  %v5300_v37 = vmax.f32 %v5264_v26, 0.0  ;;  %v12507_v26 = vld [vmem:[#allocation6 + $0x150] sm:$0xff]  }
 0x479   :  { %v5149_v25 = vmax.f32 %v13545_v40, %v4834_v27  ;;  %v12504_v27 = vld [vmem:[#allocation6 + $0x148] sm:$0xff]  }
 0x47a   :  { %v5214_v18 = vmax.f32 %v5145_v44, %v5148_v11 }
 0x47b   :  { %v5215_v3 = vmax.f32 %v5146_v13, %v5149_v25 }
 0x47c   :  { %v5266_v28 = vadd.f32 %v13724_v61, %v5214_v18 }
 0x47d   :  { %v5267_v56 = vadd.f32 %v13728_v46, %v5215_v3  ;;  %v4838_v21 = vpop.f32.mrb[32].mxu1 }
 0x47e   :  { %v5302_v12 = vmax.f32 %v5266_v28, 0.0  ;;  %v5151_v30 = vmax.f32 %v13548_v48, %v4838_v21  ;;  %v4840_v31 = vpop.f32.mrb[33].mxu1 }
 0x47f   :  { %v5303_v38 = vmax.f32 %v5267_v56, 0.0  ;;  %v5152_v40 = vmax.f32 %v13550_v0, %v4840_v31  ;;  %v4842_v42 = vpop.f32.mrb[34].mxu1 }
 0x480   :  { %v13739_v49 = vpack.c.bf16 %v5302_v12, %v5299_v23  ;;  %v5154_v1 = vmax.f32 %v13552_v43, %v4842_v42  ;;  %v4844_v35 = vpop.f32.mrb[35].mxu1 }
 0x481   :  { %v5155_v54 = vmax.f32 %v13555_v41, %v4844_v35  ;;  %v13743_v50 = vpack.c.bf16 %v5303_v38, %v5300_v37  ;;  %v12509_v35 = vld [vmem:[#allocation6 + $0x160] sm:$0xff]  }
 0x482   :  { %v5217_v15 = vmax.f32 %v5151_v30, %v5154_v1 }
 0x483   :  { %v5218_v45 = vmax.f32 %v5152_v40, %v5155_v54 }
 0x484   :  { %v5269_v16 = vadd.f32 %v13724_v61, %v5217_v15 }
 0x485   :  { %v5270_v48 = vadd.f32 %v13728_v46, %v5218_v45  ;;  %v4848_v5 = vpop.f32.mrb[36].mxu1 }
 0x486   :  { %v5305_v58 = vmax.f32 %v5269_v16, 0.0  ;;  %v5157_v0 = vmax.f32 %v13558_v36, %v4848_v5  ;;  %v4850_v53 = vpop.f32.mrb[37].mxu1 }
 0x487   :  { %v5306_v57 = vmax.f32 %v5270_v48, 0.0  ;;  %v5158_v6 = vmax.f32 %v13560_v34, %v4850_v53  ;;  %v4852_v43 = vpop.f32.mrb[38].mxu1 }
 0x488   :  { %v13749_v44 = vpack.c.bf16 %v5305_v58, %v5302_v12  ;;  %v5160_v41 = vmax.f32 %v13562_v32, %v4852_v43  ;;  %v4854_v59 = vpop.f32.mrb[39].mxu1  ;;  %v12492_v43 = vld [vmem:[#allocation7 + $0x308] sm:$0xff]  }
 0x489   :  { %v5161_v13 = vmax.f32 %v13565_v29, %v4854_v59  ;;  %v13753_v10 = vpack.c.bf16 %v5306_v57, %v5303_v38 }
 0x48a   :  { %v5220_v11 = vmax.f32 %v5157_v0, %v5160_v41  ;;  %v12490_v0 = vld [vmem:[#allocation7 + $0x300] sm:$0xff]  }
 0x48b   :  { %v5221_v25 = vmax.f32 %v5158_v6, %v5161_v13  ;;  %5632 = vmatprep.mubr.bf16.mxu0 %v13753_v10 }
 0x48c   :  { %v5272_v36 = vadd.f32 %v13724_v61, %v5220_v11  ;;  %5633 = vmatmul.mubr.bf16.vlgmr.msra.gmra.mrb[48].mxu0 %v13749_v44  ;;  %v12493_v11 = vld [vmem:[#allocation7 + $0x350] sm:$0xff]  }
 0x48d   :  { %v5273_v34 = vadd.f32 %v13728_v46, %v5221_v25  ;;  %v4858_v63 = vpop.f32.mrb[40].mxu1  ;;  %11067 = vmatpush3.bf16.msra.mxu0 %v13707_v33 }
 0x48e   :  { %v5308_v32 = vmax.f32 %v5272_v36, 0.0  ;;  %v5163_v18 = vmax.f32 %v13568_v39, %v4858_v63  ;;  %v4860_v29 = vpop.f32.mrb[41].mxu1  ;;  %11068 = vmatprep.subr.bf16.mxu0 %v12504_v27  ;;  %v12508_v39 = vld [vmem:[#allocation6 + $0x158] sm:$0xff]  }
 0x48f   :  { %v5309_v3 = vmax.f32 %v5273_v34, 0.0  ;;  %v5164_v28 = vmax.f32 %v13570_v17, %v4860_v29  ;;  %v4862_v56 = vpop.f32.mrb[42].mxu1 }
 0x490   :  { %v13762_v21 = vpack.c.bf16 %v5308_v32, %v5305_v58  ;;  %v5166_v23 = vmax.f32 %v13572_v24, %v4862_v56  ;;  %v4864_v12 = vpop.f32.mrb[43].mxu1  ;;  %v12512_v56 = vld [vmem:[#allocation6 + $0x178] sm:$0xff]  }
 0x491   :  { %v13765_v30 = vpack.c.bf16 %v5309_v3, %v5306_v57  ;;  %v5167_v31 = vmax.f32 %v13575_v22, %v4864_v12  ;;  %11069 = vmatpush3.bf16.msra.mxu0 %v12504_v27  ;;  %v12510_v57 = vld [vmem:[#allocation6 + $0x168] sm:$0xff]   ;;  %v12511_v27 = vld [vmem:[#allocation6 + $0x170] sm:$0xff]  }
 0x492   :  { %v5223_v33 = vmax.f32 %v5163_v18, %v5166_v23  ;;  %11070 = vmatprep.subr.bf16.mxu0 %v12507_v26 }
 0x493   :  { %v5224_v37 = vmax.f32 %v5164_v28, %v5167_v31  ;;  %v12495_v28 = vld [vmem:[#allocation7 + $0x358] sm:$0xff]  }
 0x494   :  { %v5275_v38 = vadd.f32 %v13724_v61, %v5223_v33 }
 0x495   :  { %v5276_v40 = vadd.f32 %v13728_v46, %v5224_v37  ;;  %v4868_v17 = vpop.f32.mrb[44].mxu1  ;;  %11071 = vmatpush3.bf16.msra.mxu0 %v12507_v26  ;;  %v12497_v37 = vld [vmem:[#allocation7 + $0x360] sm:$0xff]  }
 0x496   :  { %v5311_v42 = vmax.f32 %v5275_v38, 0.0  ;;  %v5169_v1 = vmax.f32 %v13578_v7, %v4868_v17  ;;  %v4870_v24 = vpop.f32.mrb[45].mxu1  ;;  %11072 = vmatprep.subr.bf16.mxu0 %v12508_v39  ;;  %v12491_v7 = vld [vmem:[#allocation7 + $0x348] sm:$0xff]   ;;  %v12513_v38 = vld [vmem:[#allocation6 + $0x40] sm:$0xff]  }
 0x497   :  { %v5312_v54 = vmax.f32 %v5276_v40, 0.0  ;;  %v5170_v22 = vmax.f32 %v13580_v51, %v4870_v24  ;;  %v4872_v15 = vpop.f32.mrb[46].mxu1  ;;  %v14456_v17 = vld [vmem:[#allocation36_spill] sm:$0xff] }
 0x498   :  { %v13772_v45 = vpack.c.bf16 %v5311_v42, %v5308_v32  ;;  %v5172_v16 = vmax.f32 %v13582_v52, %v4872_v15  ;;  %v4874_v48 = vpop.f32.mrb[47].mxu1 }
 0x499   :  { %v13775_v5 = vpack.c.bf16 %v5312_v54, %v5309_v3  ;;  %v5173_v58 = vmax.f32 %v13585_v60, %v4874_v48  ;;  %11073 = vmatpush3.bf16.msra.mxu0 %v12508_v39 }
 0x49a   :  { %v5226_v53 = vmax.f32 %v5169_v1, %v5172_v16  ;;  %11074 = vmatprep.subr.bf16.mxu0 %v12509_v35  ;;  %v14458_v16 = vld [vmem:[#allocation38_spill] sm:$0xff] }
 0x49b   :  { %v5227_v6 = vmax.f32 %v5170_v22, %v5173_v58  ;;  %5640 = vmatprep.mubr.bf16.mxu0 %v13775_v5  ;;  %8207 = vmatprep.mubr.bf16.mxu1 %v13775_v5 }
 0x49c   :  { %v5278_v51 = vadd.f32 %v13724_v61, %v5226_v53  ;;  %5641 = vmatmul.mubr.bf16.gmra.mrb[52].mxu0 %v13772_v45  ;;  %8208 = vmatmul.mubr.bf16.vlgmr.msra.gmra.mrb[96].mxu1 %v13772_v45 }
 0x49d   :  { %v5279_v52 = vadd.f32 %v13728_v46, %v5227_v6  ;;  %v4878_v60 = vpop.f32.mrb[48].mxu1  ;;  %10570 = vmatpush3.bf16.msra.mxu1 %v12490_v0  ;;  %11075 = vmatpush3.bf16.msra.mxu0 %v12509_v35  ;;  %v14457_v35 = vld [vmem:[#allocation37_spill] sm:$0xff] }
 0x49e   :  { %v5314_v41 = vmax.f32 %v5278_v51, 0.0  ;;  %v5175_v59 = vmax.f32 %v13588_v19, %v4878_v60  ;;  %v4880_v13 = vpop.f32.mrb[49].mxu1  ;;  %10571 = vmatprep.subr.bf16.mxu1 %v12491_v7  ;;  %11076 = vmatprep.subr.bf16.mxu0 %v12510_v57  ;;  %v12494_v19 = vld [vmem:[#allocation7 + $0x310] sm:$0xff]   ;;  %v12499_v0 = vld [vmem:[#allocation7 + $0x368] sm:$0xff]   ;;  %v14459_v60 = vld [vmem:[#allocation39_spill] sm:$0xff] }
 0x49f   :  { %v5315_v25 = vmax.f32 %v5279_v52, 0.0  ;;  %v5176_v36 = vmax.f32 %v13590_v9, %v4880_v13  ;;  %v4882_v34 = vpop.f32.mrb[50].mxu1  ;;  %v12500_v51 = vld [vmem:[#allocation7 + $0x328] sm:$0xff]  }
 0x4a0   :  { %v13786_v63 = vpack.c.bf16 %v5314_v41, %v5311_v42  ;;  %v5178_v32 = vmax.f32 %v13592_v8, %v4882_v34  ;;  %v4884_v18 = vpop.f32.mrb[51].mxu1  ;;  %v12496_v8 = vld [vmem:[#allocation7 + $0x318] sm:$0xff]  }
 0x4a1   :  { %v13789_v29 = vpack.c.bf16 %v5315_v25, %v5312_v54  ;;  %v5179_v26 = vmax.f32 %v13595_v4, %v4884_v18  ;;  %10572 = vmatpush3.bf16.msra.mxu1 %v12492_v43  ;;  %11077 = vmatpush3.bf16.msra.mxu0 %v12510_v57 }
 0x4a2   :  { %v5229_v3 = vmax.f32 %v5175_v59, %v5178_v32  ;;  %10573 = vmatprep.subr.bf16.mxu1 %v12493_v11  ;;  %11078 = vmatprep.subr.bf16.mxu0 %v12511_v27  ;;  %v12502_v59 = vld [vmem:[#allocation7 + $0x370] sm:$0xff]  }
 0x4a3   :  { %v5230_v23 = vmax.f32 %v5176_v36, %v5179_v26  ;;  %v14460_v36 = vld [vmem:[#allocation40_spill] sm:$0xff]  ;;  %v14461_v26 = vld [vmem:[#allocation41_spill] sm:$0xff] }
 0x4a4   :  { %v5281_v9 = vadd.f32 %v13724_v61, %v5229_v3  ;;  %v12503_v3 = vld [vmem:[#allocation7 + $0x330] sm:$0xff]  }
 0x4a5   :  { %v5282_v12 = vadd.f32 %v13728_v46, %v5230_v23  ;;  %v4888_v31 = vpop.f32.mrb[52].mxu1  ;;  %10574 = vmatpush3.bf16.msra.mxu1 %v12494_v19  ;;  %11079 = vmatpush3.bf16.msra.mxu0 %v12511_v27 }
 0x4a6   :  { %v5317_v33 = vmax.f32 %v5281_v9, 0.0  ;;  %v5181_v4 = vmax.f32 %v13598_v2, %v4888_v31  ;;  %v4890_v39 = vpop.f32.mrb[53].mxu1  ;;  %10575 = vmatprep.subr.bf16.mxu1 %v12495_v28  ;;  %11080 = vmatprep.subr.bf16.mxu0 %v12512_v56  ;;  %v12498_v2 = vld [vmem:[#allocation7 + $0x320] sm:$0xff]   ;;  %v12506_v31 = vld [vmem:[#allocation7 + $0x338] sm:$0xff]  }
 0x4a7   :  { %v5318_v40 = vmax.f32 %v5282_v12, 0.0  ;;  %v5182_v42 = vmax.f32 %v14456_v17, %v4890_v39  ;;  %v4892_v1 = vpop.f32.mrb[54].mxu1 }
 0x4a8   :  { %v13796_v24 = vpack.c.bf16 %v5317_v33, %v5314_v41  ;;  %v5184_v54 = vmax.f32 %v14457_v35, %v4892_v1  ;;  %v4894_v22 = vpop.f32.mrb[55].mxu1  ;;  %v14464_v1 = vld [vmem:[#allocation44_spill] sm:$0xff] }
 0x4a9   :  { %v13799_v15 = vpack.c.bf16 %v5318_v40, %v5315_v25  ;;  %v5185_v48 = vmax.f32 %v14458_v16, %v4894_v22  ;;  %10576 = vmatpush3.bf16.msra.mxu1 %v12496_v8  ;;  %11081 = vmatpush3.bf16.msra.mxu0 %v12512_v56  ;;  %v12505_v56 = vld [vmem:[#allocation7 + $0x378] sm:$0xff]   ;;  %v14465_v16 = vld [vmem:[#allocation45_spill] sm:$0xff] }
 0x4aa   :  { %v5232_v58 = vmax.f32 %v5181_v4, %v5184_v54  ;;  %10577 = vmatprep.subr.bf16.mxu1 %v12497_v37  ;;  %10153 = vmatprep.subr.bf16.mxu0 %v12513_v38  ;;  %v14463_v38 = vld [vmem:[#allocation43_spill] sm:$0xff] }
 0x4ab   :  { %v5233_v53 = vmax.f32 %v5182_v42, %v5185_v48  ;;  %5648 = vmatprep.mubr.bf16.mxu0 %v13799_v15  ;;  %8215 = vmatprep.mubr.bf16.mxu1 %v13799_v15 }
 0x4ac   :  { %v5284_v7 = vadd.f32 %v13724_v61, %v5232_v58  ;;  %5649 = vmatmul.mubr.bf16.gmra.mrb[56].mxu0 %v13796_v24  ;;  %8216 = vmatmul.mubr.bf16.gmra.mrb[100].mxu1 %v13796_v24 }
 0x4ad   :  { %v5285_v57 = vadd.f32 %v13728_v46, %v5233_v53  ;;  %v4898_v6 = vpop.f32.mrb[56].mxu1  ;;  %10578 = vmatpush3.bf16.msra.mxu1 %v12498_v2 }
 0x4ae   :  { %v5320_v52 = vmax.f32 %v5284_v7, 0.0  ;;  %v5187_v43 = vmax.f32 %v14459_v60, %v4898_v6  ;;  %v4900_v41 = vpop.f32.mrb[57].mxu1  ;;  %10579 = vmatprep.subr.bf16.mxu1 %v12499_v0 }
 0x4af   :  { %v5321_v13 = vmax.f32 %v5285_v57, 0.0  ;;  %v5188_v11 = vmax.f32 %v13610_v55, %v4900_v41  ;;  %v4902_v27 = vpop.f32.mrb[58].mxu1 }
 0x4b0   :  { %v13810_v25 = vpack.c.bf16 %v5320_v52, %v5317_v33  ;;  %v5190_v34 = vmax.f32 %v14460_v36, %v4902_v27  ;;  %v4904_v32 = vpop.f32.mrb[59].mxu1  ;;  %v14462_v33 = vld [vmem:[#allocation42_spill] sm:$0xff]  ;;  %v14467_v36 = vld [vmem:[#allocation47_spill] sm:$0xff] }
 0x4b1   :  { %v13813_v18 = vpack.c.bf16 %v5321_v13, %v5318_v40  ;;  %v5191_v19 = vmax.f32 %v14461_v26, %v4904_v32  ;;  %10580 = vmatpush3.bf16.msra.mxu1 %v12500_v51 }
 0x4b2   :  { %v5235_v28 = vmax.f32 %v5187_v43, %v5190_v34  ;;  %10581 = vmatprep.subr.bf16.mxu1 %v12502_v59  ;;  %v14466_v59 = vld [vmem:[#allocation46_spill] sm:$0xff] }
 0x4b3   :  { %v5236_v23 = vmax.f32 %v5188_v11, %v5191_v19 }
 0x4b4   :  { %v5287_v9 = vadd.f32 %v13724_v61, %v5235_v28 }
 0x4b5   :  { %v5288_v55 = vadd.f32 %v13728_v46, %v5236_v23  ;;  %v4908_v12 = vpop.f32.mrb[60].mxu1  ;;  %10582 = vmatpush3.bf16.msra.mxu1 %v12503_v3 }
 0x4b6   :  { %v5323_v8 = vmax.f32 %v5287_v9, 0.0  ;;  %v5193_v4 = vmax.f32 %v14462_v33, %v4908_v12  ;;  %v4910_v39 = vpop.f32.mrb[61].mxu1  ;;  %10583 = vmatprep.subr.bf16.mxu1 %v12505_v56  ;;  %v14468_v56 = vld [vmem:[#allocation48_spill] sm:$0xff] }
 0x4b7   :  { %v5324_v37 = vmax.f32 %v5288_v55, 0.0  ;;  %v5194_v40 = vmax.f32 %v14463_v38, %v4910_v39  ;;  %v4912_v17 = vpop.f32.mrb[62].mxu1  ;;  %v14469_v55 = vld [vmem:[#allocation49_spill] sm:$0xff] }
 0x4b8   :  { %v13820_v42 = vpack.c.bf16 %v5323_v8, %v5320_v52  ;;  %v5196_v35 = vmax.f32 %v14464_v1, %v4912_v17  ;;  %v4914_v54 = vpop.f32.mrb[63].mxu1 }
 0x4b9   :  { %v13823_v22 = vpack.c.bf16 %v5324_v37, %v5321_v13  ;;  %v5197_v48 = vmax.f32 %v14465_v16, %v4914_v54  ;;  %10584 = vmatpush3.bf16.msra.mxu1 %v12506_v31  ;;  %v5258_v54 = vsub.s32 2, %v13711_v20 }
 0x4ba   :  { %v5238_v2 = vmax.f32 %v5193_v4, %v5196_v35 }
 0x4bb   :  { %v5239_v58 = vmax.f32 %v5194_v40, %v5197_v48  ;;  %5656 = vmatprep.mubr.bf16.mxu0 %v13823_v22  ;;  %8223 = vmatprep.mubr.bf16.mxu1 %v13823_v22 }
 0x4bc   :  { %v5290_v0 = vadd.f32 %v13724_v61, %v5238_v2  ;;  %5657 = vmatmul.mubr.bf16.gmra.mrb[60].mxu0 %v13820_v42  ;;  %8224 = vmatmul.mubr.bf16.gmra.mrb[104].mxu1 %v13820_v42 }
 0x4bd   :  { %v5291_v53 = vadd.f32 %v13728_v46, %v5239_v58  ;;  %v4918_v7 = vpop.f32.mrb[64].mxu1  ;;  %v14472_v58 = vld [vmem:[#allocation12_spill] sm:$0xff] }
 0x4be   :  { %v5326_v57 = vmax.f32 %v5290_v0, 0.0  ;;  %v5199_v6 = vmax.f32 %v13628_v62, %v4918_v7  ;;  %v4920_v51 = vpop.f32.mrb[65].mxu1 }
 0x4bf   :  { %v5327_v52 = vmax.f32 %v5291_v53, 0.0  ;;  %v5200_v60 = vmax.f32 %v13630_v14, %v4920_v51  ;;  %v4922_v43 = vpop.f32.mrb[66].mxu1 }
 0x4c0   :  { %v13834_v41 = vpack.c.bf16 %v5326_v57, %v5323_v8  ;;  %v5202_v13 = vmax.f32 %v14466_v59, %v4922_v43  ;;  %v4924_v11 = vpop.f32.mrb[67].mxu1  ;;  %v14470_v8 = vld [vmem:[#allocation50_spill] sm:$0xff] }
 0x4c1   :  { %v13837_v27 = vpack.c.bf16 %v5327_v52, %v5324_v37  ;;  %v5203_v34 = vmax.f32 %v14467_v36, %v4924_v11  ;;  %v14471_v37 = vld [vmem:[#allocation51_spill] sm:$0xff] }
 0x4c2   :  { %v5241_v32 = vmax.f32 %v5199_v6, %v5202_v13 }
 0x4c3   :  { %v5242_v26 = vmax.f32 %v5200_v60, %v5203_v34 }
 0x4c4   :  { %v5293_v19 = vadd.f32 %v13724_v61, %v5241_v32 }
 0x4c5   :  { %v5294_v62 = vadd.f32 %v13728_v46, %v5242_v26  ;;  %v4928_v3 = vpop.f32.mrb[68].mxu1 }
 0x4c6   :  { %v5329_v28 = vmax.f32 %v5293_v19, 0.0  ;;  %v5205_v14 = vmax.f32 %v14468_v56, %v4928_v3  ;;  %v4930_v23 = vpop.f32.mrb[69].mxu1  ;;  %v14476_v19 = vld [vmem:[#allocation16_spill] sm:$0xff]  ;;  %v14477_v56 = vld [vmem:[#allocation17_spill] sm:$0xff] }
 0x4c7   :  { %v5330_v9 = vmax.f32 %v5294_v62, 0.0  ;;  %v5206_v12 = vmax.f32 %v14469_v55, %v4930_v23  ;;  %v4932_v31 = vpop.f32.mrb[70].mxu1 }
 0x4c8   :  { %v5208_v33 = vmax.f32 %v14470_v8, %v4932_v31  ;;  %v4934_v4 = vpop.f32.mrb[71].mxu1  ;;  %v13845_v39 = vpack.c.bf16 %v5329_v28, %v5326_v57  ;;  %v14473_v57 = vld [vmem:[#allocation13_spill] sm:$0xff]  ;;  %v14479_v31 = vld [vmem:[#allocation19_spill] sm:$0xff] }
 0x4c9   :  { %v5209_v38 = vmax.f32 %v14471_v37, %v4934_v4  ;;  %v13848_v40 = vpack.c.bf16 %v5330_v9, %v5327_v52  ;;  %v14474_v52 = vld [vmem:[#allocation14_spill] sm:$0xff] }
 0x4ca   :  { %v5244_v17 = vmax.f32 %v5205_v14, %v5208_v33 }
 0x4cb   :  { %v5245_v1 = vmax.f32 %v5206_v12, %v5209_v38  ;;  %8231 = vmatprep.mubr.bf16.mxu1 %v13848_v40 }
 0x4cc   :  { %v5296_v35 = vadd.f32 %v13724_v61, %v5244_v17  ;;  %8232 = vmatmul.mubr.bf16.gmra.mrb[108].mxu1 %v13845_v39  ;;  %v13860_v61 = vrot.slane %v13720_v47, %v5258_v54  ;;  %v14480_v54 = vld [vmem:[#allocation20_spill] sm:$0xff] }
 0x4cd   :  { %v5297_v16 = vadd.f32 %v13728_v46, %v5245_v1  ;;  %v11044_v48 = vpop.f32.mrb[72].mxu1  ;;  %8538 = vmatprep.mubr.bf16.mxu1 %v13789_v29  ;;  %v14475_v46 = vld [vmem:[#allocation15_spill] sm:$0xff] }
 0x4ce   :  { %v5332_v2 = vmax.f32 %v5296_v35, 0.0  ;;  %v5147_v0 = vmax.f32 %v14472_v58, %v11044_v48  ;;  %v4971_v53 = vpop.f32.mrb[73].mxu1  ;;  %v14481_v58 = vld [vmem:[#allocation21_spill] sm:$0xff] }
 0x4cf   :  { %v5333_v7 = vmax.f32 %v5297_v16, 0.0  ;;  %v5141_v6 = vmax.f32 %v14473_v57, %v4971_v53  ;;  %v11045_v51 = vpop.f32.mrb[74].mxu1 }
 0x4d0   :  { %v5150_v60 = vmax.f32 %v14474_v52, %v11045_v51  ;;  %v4974_v43 = vpop.f32.mrb[75].mxu1  ;;  %v13862_v20 = vpack.c.bf16 %v5332_v2, %v5329_v28  ;;  %v14483_v52 = vld [vmem:[#allocation23_spill] sm:$0xff] }
 0x4d1   :  { %v5144_v59 = vmax.f32 %v14475_v46, %v4974_v43  ;;  %v13865_v13 = vpack.c.bf16 %v5333_v7, %v5330_v9  ;;  %v14478_v9 = vld [vmem:[#allocation18_spill] sm:$0xff] }
 0x4d2   :  { %v5216_v11 = vmax.f32 %v5147_v0, %v5150_v60  ;;  %v14482_v7 = vld [vmem:[#allocation22_spill] sm:$0xff] }
 0x4d3   :  { %v5213_v36 = vmax.f32 %v5141_v6, %v5144_v59 }
 0x4d4   :  { %v5268_v34 = vadd.f32 %v13860_v61, %v5216_v11  ;;  %8539 = vmatmul.mubr.bf16.vlgmr.msra.gmra.mrb[112].mxu1 %v13786_v63 }
 0x4d5   :  { %v5265_v32 = vadd.f32 %v13860_v61, %v5213_v36  ;;  %v11048_v26 = vpop.f32.mrb[76].mxu1  ;;  %8546 = vmatprep.mubr.bf16.mxu1 %v13813_v18 }
 0x4d6   :  { %v5304_v47 = vmax.f32 %v5268_v34, 0.0  ;;  %v5159_v62 = vmax.f32 %v14476_v19, %v11048_v26  ;;  %v4987_v3 = vpop.f32.mrb[77].mxu1  ;;  %v14484_v26 = vld [vmem:[#allocation24_spill] sm:$0xff] }
 0x4d7   :  { %v5301_v28 = vmax.f32 %v5265_v32, 0.0  ;;  %v5153_v14 = vmax.f32 %v14477_v56, %v4987_v3  ;;  %v11049_v23 = vpop.f32.mrb[78].mxu1 }
 0x4d8   :  { %v5162_v55 = vmax.f32 %v14478_v9, %v11049_v23  ;;  %v4990_v12 = vpop.f32.mrb[79].mxu1 }
 0x4d9   :  { %v5156_v8 = vmax.f32 %v14479_v31, %v4990_v12  ;;  %v13875_v33 = vpack.c.bf16 %v5304_v47, %v5301_v28 }
 0x4da   :  { %v5222_v4 = vmax.f32 %v5159_v62, %v5162_v55  ;;  %v12514_v55 = vld [vmem:[#allocation6] sm:$0xff]  }
 0x4db   :  { %v5219_v37 = vmax.f32 %v5153_v14, %v5156_v8  ;;  %v14486_v14 = vld [vmem:[#allocation26_spill] sm:$0xff]  ;;  %v14487_v8 = vld [vmem:[#allocation27_spill] sm:$0xff] }
 0x4dc   :  { %v5274_v38 = vadd.f32 %v13860_v61, %v5222_v4  ;;  %8547 = vmatmul.mubr.bf16.gmra.mrb[116].mxu1 %v13810_v25 }
 0x4dd   :  { %v5271_v17 = vadd.f32 %v13860_v61, %v5219_v37  ;;  %v11052_v1 = vpop.f32.mrb[80].mxu1  ;;  %8554 = vmatprep.mubr.bf16.mxu1 %v13837_v27  ;;  %v12515_v37 = vld [vmem:[#allocation6 + $0x48] sm:$0xff]  }
 0x4de   :  { %v5310_v35 = vmax.f32 %v5274_v38, 0.0  ;;  %v5171_v16 = vmax.f32 %v14480_v54, %v11052_v1  ;;  %v5003_v48 = vpop.f32.mrb[81].mxu1  ;;  %v12516_v54 = vld [vmem:[#allocation6 + $0x8] sm:$0xff]  }
 0x4df   :  { %v5307_v2 = vmax.f32 %v5271_v17, 0.0  ;;  %v5165_v0 = vmax.f32 %v14481_v58, %v5003_v48  ;;  %v11053_v53 = vpop.f32.mrb[82].mxu1  ;;  %v14488_v58 = vld [vmem:[#allocation28_spill] sm:$0xff] }
 0x4e0   :  { %v5174_v57 = vmax.f32 %v14482_v7, %v11053_v53  ;;  %v5006_v6 = vpop.f32.mrb[83].mxu1 }
 0x4e1   :  { %v13884_v51 = vpack.c.bf16 %v5310_v35, %v5307_v2  ;;  %v5168_v60 = vmax.f32 %v14483_v52, %v5006_v6  ;;  %v13887_v43 = vpack.c.bf16 %v5307_v2, %v5304_v47  ;;  %v14485_v47 = vld [vmem:[#allocation25_spill] sm:$0xff]  ;;  %v12517_v2 = vld [vmem:[#allocation6 + $0x50] sm:$0xff]  }
 0x4e2   :  { %v5228_v46 = vmax.f32 %v5171_v16, %v5174_v57  ;;  %v14489_v57 = vld [vmem:[#allocation29_spill] sm:$0xff] }
 0x4e3   :  { %v5225_v59 = vmax.f32 %v5165_v0, %v5168_v60  ;;  %11082 = vmatprep.mubr.bf16.mxu0 %v13887_v43  ;;  %v14490_v60 = vld [vmem:[#allocation30_spill] sm:$0xff] }
 0x4e4   :  { %v5280_v11 = vadd.f32 %v13860_v61, %v5228_v46  ;;  %8555 = vmatmul.mubr.bf16.gmra.mrb[120].mxu1 %v13834_v41 }
 0x4e5   :  { %v5277_v36 = vadd.f32 %v13860_v61, %v5225_v59  ;;  %v11056_v34 = vpop.f32.mrb[84].mxu1  ;;  %8562 = vmatprep.mubr.bf16.mxu1 %v13865_v13 }
 0x4e6   :  { %v5316_v32 = vmax.f32 %v5280_v11, 0.0  ;;  %v5183_v19 = vmax.f32 %v14484_v26, %v11056_v34  ;;  %v5019_v62 = vpop.f32.mrb[85].mxu1  ;;  %v12518_v11 = vld [vmem:[#allocation6 + $0x10] sm:$0xff]   ;;  %v14491_v26 = vld [vmem:[#allocation31_spill] sm:$0xff] }
 0x4e7   :  { %v5313_v3 = vmax.f32 %v5277_v36, 0.0  ;;  %v5177_v28 = vmax.f32 %v14485_v47, %v5019_v62  ;;  %v11057_v56 = vpop.f32.mrb[86].mxu1  ;;  %v12519_v62 = vld [vmem:[#allocation6 + $0x58] sm:$0xff]  }
 0x4e8   :  { %v5186_v23 = vmax.f32 %v14486_v14, %v11057_v56  ;;  %v5022_v9 = vpop.f32.mrb[87].mxu1  ;;  %v12520_v56 = vld [vmem:[#allocation6 + $0x18] sm:$0xff]  }
 0x4e9   :  { %v13897_v12 = vpack.c.bf16 %v5316_v32, %v5313_v3  ;;  %v13899_v31 = vpack.c.bf16 %v5313_v3, %v5310_v35  ;;  %v5180_v4 = vmax.f32 %v14487_v8, %v5022_v9  ;;  %v12521_v9 = vld [vmem:[#allocation6 + $0x60] sm:$0xff]  }
 0x4ea   :  { %v5234_v38 = vmax.f32 %v5183_v19, %v5186_v23 }
 0x4eb   :  { %v5231_v17 = vmax.f32 %v5177_v28, %v5180_v4  ;;  %11083 = vmatmul.mubr.bf16.vlgmr.msra.gmra.mrb[64].mxu0 %v13899_v31 }
 0x4ec   :  { %v5286_v1 = vadd.f32 %v13860_v61, %v5234_v38  ;;  %10154 = vmatpush3.bf16.msra.mxu0 %v12514_v55  ;;  %8563 = vmatmul.mubr.bf16.gmra.mrb[124].mxu1 %v13862_v20  ;;  %v14493_v38 = vld [vmem:[#allocation33_spill] sm:$0xff] }
 0x4ed   :  { %v5283_v16 = vadd.f32 %v13860_v61, %v5231_v17  ;;  %v11060_v48 = vpop.f32.mrb[88].mxu1  ;;  %10155 = vmatprep.subr.bf16.mxu0 %v12515_v37 }
 0x4ee   :  { %v5322_v35 = vmax.f32 %v5286_v1, 0.0  ;;  %v5195_v0 = vmax.f32 %v14488_v58, %v11060_v48  ;;  %v5035_v53 = vpop.f32.mrb[89].mxu1 }
 0x4ef   :  { %v5319_v7 = vmax.f32 %v5283_v16, 0.0  ;;  %v5189_v6 = vmax.f32 %v14489_v57, %v5035_v53  ;;  %v11061_v52 = vpop.f32.mrb[90].mxu1  ;;  %v14495_v53 = vld [vmem:[#allocation35_spill] sm:$0xff]  ;;  %v12523_v57 = vld [vmem:[#allocation6 + $0x68] sm:$0xff]  }
 0x4f0   :  { %v5198_v46 = vmax.f32 %v14490_v60, %v11061_v52  ;;  %10156 = vmatpush3.bf16.msra.mxu0 %v12516_v54  ;;  %v5038_v59 = vpop.f32.mrb[91].mxu1  ;;  %v14494_v54 = vld [vmem:[#allocation34_spill] sm:$0xff] }
 0x4f1   :  { %v13909_v36 = vpack.c.bf16 %v5322_v35, %v5319_v7  ;;  %v13911_v34 = vpack.c.bf16 %v5319_v7, %v5316_v32  ;;  %v5192_v19 = vmax.f32 %v14491_v26, %v5038_v59  ;;  %10157 = vmatprep.subr.bf16.mxu0 %v12517_v2  ;;  %v14492_v32 = vld [vmem:[#allocation32_spill] sm:$0xff] }
 0x4f2   :  { %v5240_v3 = vmax.f32 %v5195_v0, %v5198_v46  ;;  %v12522_v2 = vld [vmem:[#allocation6 + $0x20] sm:$0xff]   ;;  %v12524_v46 = vld [vmem:[#allocation6 + $0x28] sm:$0xff]  }
 0x4f3   :  { %v5237_v47 = vmax.f32 %v5189_v6, %v5192_v19  ;;  %11086 = vmatprep.mubr.bf16.mxu0 %v13911_v34  ;;  %v12526_v19 = vld [vmem:[#allocation6 + $0x30] sm:$0xff]  }
 0x4f4   :  { %v5292_v28 = vadd.f32 %v13860_v61, %v5240_v3  ;;  %10158 = vmatpush3.bf16.msra.mxu0 %v12518_v11 }
 0x4f5   :  { %v5289_v14 = vadd.f32 %v13860_v61, %v5237_v47  ;;  %v11064_v23 = vpop.f32.mrb[92].mxu1  ;;  %10159 = vmatprep.subr.bf16.mxu0 %v12519_v62  ;;  %v12527_v62 = vld [vmem:[#allocation6 + $0x78] sm:$0xff]  }
 0x4f6   :  { %v5328_v55 = vmax.f32 %v5292_v28, 0.0  ;;  %v5207_v8 = vmax.f32 %v14492_v32, %v11064_v23  ;;  %v5051_v4 = vpop.f32.mrb[93].mxu1  ;;  %v12528_v28 = vld [vmem:[#allocation6 + $0x38] sm:$0xff]   ;;  %v12535_v32 = vld [vmem:[#allocation6 + $0xb0] sm:$0xff]  }
 0x4f7   :  { %v5325_v37 = vmax.f32 %v5289_v14, 0.0  ;;  %v5201_v17 = vmax.f32 %v14493_v38, %v5051_v4  ;;  %v11065_v1 = vpop.f32.mrb[94].mxu1  ;;  %v12530_v14 = vld [vmem:[#allocation6 + $0x88] sm:$0xff]   ;;  %v12532_v23 = vld [vmem:[#allocation6 + $0x98] sm:$0xff]   ;;  %v12537_v4 = vld [vmem:[#allocation6 + $0x1c0] sm:$0xff]  }
 0x4f8   :  { %v5210_v16 = vmax.f32 %v14494_v54, %v11065_v1  ;;  %10160 = vmatpush3.bf16.msra.mxu0 %v12520_v56  ;;  %v5054_v48 = vpop.f32.mrb[95].mxu1  ;;  %v12529_v56 = vld [vmem:[#allocation6 + $0x80] sm:$0xff]   ;;  %v12539_v38 = vld [vmem:[#allocation6 + $0x1c8] sm:$0xff]   ;;  %v12541_v1 = vld [vmem:[#allocation6 + $0x1d0] sm:$0xff]  }
 0x4f9   :  { %v13920_v58 = vpack.c.bf16 %v5325_v37, %v5322_v35  ;;  %v13922_v0 = vpack.c.bf16 %v5328_v55, %v5325_v37  ;;  %v5204_v7 = vmax.f32 %v14495_v53, %v5054_v48  ;;  %10161 = vmatprep.subr.bf16.mxu0 %v12521_v9  ;;  %v12525_v35 = vld [vmem:[#allocation6 + $0x70] sm:$0xff]   ;;  %v12533_v9 = vld [vmem:[#allocation6 + $0xa0] sm:$0xff]   ;;  %v12544_v48 = vld [vmem:[#allocation6 + $0x198] sm:$0xff]  }
 0x4fa   :  { %v5246_v6 = vmax.f32 %v5207_v8, %v5210_v16  ;;  %v12536_v8 = vld [vmem:[#allocation6 + $0xb8] sm:$0xff]   ;;  %v12538_v37 = vld [vmem:[#allocation6 + $0x180] sm:$0xff]   ;;  %v12542_v54 = vld [vmem:[#allocation6 + $0x190] sm:$0xff]  }
 0x4fb   :  { %v5243_v52 = vmax.f32 %v5201_v17, %v5204_v7  ;;  %11087 = vmatmul.mubr.bf16.gmra.mrb[68].mxu0 %v13920_v58  ;;  %v12540_v17 = vld [vmem:[#allocation6 + $0x188] sm:$0xff]   ;;  %v12543_v16 = vld [vmem:[#allocation6 + $0x1d8] sm:$0xff]   ;;  %v12546_v53 = vld [vmem:[#allocation6 + $0x1a0] sm:$0xff]  }
 0x4fc   :  { %v5298_v60 = vadd.f32 %v13860_v61, %v5246_v6  ;;  %10162 = vmatpush3.bf16.msra.mxu0 %v12522_v2  ;;  %5906 = vmatprep.mubr.bf16.mxu0 %v13743_v50  ;;  %v12545_v2 = vld [vmem:[#allocation6 + $0x1e0] sm:$0xff]   ;;  %v12547_v7 = vld [vmem:[#allocation6 + $0x1e8] sm:$0xff]   ;;  %v12549_v6 = vld [vmem:[#allocation6 + $0x1f0] sm:$0xff]  }
 0x4fd   :  { %v5295_v59 = vadd.f32 %v13860_v61, %v5243_v52  ;;  %10163 = vmatprep.subr.bf16.mxu0 %v12523_v57  ;;  %v12531_v61 = vld [vmem:[#allocation6 + $0x90] sm:$0xff]   ;;  %v12548_v57 = vld [vmem:[#allocation6 + $0x1a8] sm:$0xff]  }
 0x4fe   :  { %v5334_v11 = vmax.f32 %v5298_v60, 0.0  ;;  %v12550_v52 = vld [vmem:[#allocation6 + $0x1b0] sm:$0xff]   ;;  %v12551_v60 = vld [vmem:[#allocation6 + $0x1f8] sm:$0xff]  }
 0x4ff   :  { %v5331_v26 = vmax.f32 %v5295_v59, 0.0  ;;  %v12553_v59 = vld [vmem:[#allocation6 + $0x200] sm:$0xff]  }
 0x500   :  { %10164 = vmatpush3.bf16.msra.mxu0 %v12524_v46  ;;  %v12552_v46 = vld [vmem:[#allocation6 + $0x1b8] sm:$0xff]  }
 0x501   :  { %10165 = vmatprep.subr.bf16.mxu0 %v12525_v35  ;;  %v13929_v3 = vpack.c.bf16 %v5331_v26, %v5328_v55  ;;  %v13931_v47 = vpack.c.bf16 %v5334_v11, %v5331_v26  ;;  %v12534_v55 = vld [vmem:[#allocation6 + $0xa8] sm:$0xff]   ;;  %v12555_v11 = vld [vmem:[#allocation6 + $0x210] sm:$0xff]   ;;  %v12556_v26 = vld [vmem:[#allocation6 + $0x218] sm:$0xff]  }
 0x502   :  { %v12554_v35 = vld [vmem:[#allocation6 + $0x208] sm:$0xff]  }
 0x504   :  { %10166 = vmatpush3.bf16.msra.mxu0 %v12526_v19  ;;  %v12557_v19 = vld [vmem:[#allocation6 + $0x220] sm:$0xff]  }
 0x505   :  { %10167 = vmatprep.subr.bf16.mxu0 %v12527_v62  ;;  %v12558_v62 = vld [vmem:[#allocation6 + $0x228] sm:$0xff]  }
 0x508   :  { %10168 = vmatpush3.bf16.msra.mxu0 %v12528_v28  ;;  %v12559_v28 = vld [vmem:[#allocation6 + $0x230] sm:$0xff]  }
 0x509   :  { %11090 = vmatprep.subr.bf16.mxu0 %v12529_v56 }
 0x50b   :  { %5907 = vmatmul.mubr.bf16.vlgmr.msra.gmra.mrb[72].mxu0 %v13739_v49 }
 0x50c   :  { %5914 = vmatprep.mubr.bf16.mxu0 %v13765_v30  ;;  %11091 = vmatpush3.bf16.msra.mxu0 %v12529_v56 }
 0x50d   :  { %11092 = vmatprep.subr.bf16.mxu0 %v12530_v14 }
 0x510   :  { %11093 = vmatpush3.bf16.msra.mxu0 %v12530_v14 }
 0x511   :  { %11094 = vmatprep.subr.bf16.mxu0 %v12531_v61 }
 0x513   :  { %5915 = vmatmul.mubr.bf16.gmra.mrb[76].mxu0 %v13762_v21 }
 0x514   :  { %5922 = vmatprep.mubr.bf16.mxu0 %v13789_v29  ;;  %11095 = vmatpush3.bf16.msra.mxu0 %v12531_v61 }
 0x515   :  { %11096 = vmatprep.subr.bf16.mxu0 %v12532_v23 }
 0x518   :  { %11097 = vmatpush3.bf16.msra.mxu0 %v12532_v23 }
 0x519   :  { %11098 = vmatprep.subr.bf16.mxu0 %v12533_v9 }
 0x51b   :  { %5923 = vmatmul.mubr.bf16.gmra.mrb[80].mxu0 %v13786_v63 }
 0x51c   :  { %5930 = vmatprep.mubr.bf16.mxu0 %v13813_v18  ;;  %11099 = vmatpush3.bf16.msra.mxu0 %v12533_v9  ;;  %v12560_v9 = vld [vmem:[#allocation6 + $0x238] sm:$0xff]  }
 0x51d   :  { %11100 = vmatprep.subr.bf16.mxu0 %v12534_v55 }
 0x520   :  { %11101 = vmatpush3.bf16.msra.mxu0 %v12534_v55 }
 0x521   :  { %11102 = vmatprep.subr.bf16.mxu0 %v12535_v32 }
 0x523   :  { %5931 = vmatmul.mubr.bf16.gmra.mrb[84].mxu0 %v13810_v25 }
 0x524   :  { %11103 = vmatpush3.bf16.msra.mxu0 %v12535_v32  ;;  %11106 = vmatprep.mubr.bf16.mxu0 %v13875_v33 }
 0x525   :  { %11104 = vmatprep.subr.bf16.mxu0 %v12536_v8 }
 0x528   :  { %11105 = vmatpush3.bf16.msra.mxu0 %v12536_v8  ;;  %v12561_v8 = vld [vmem:[#allocation6 + $0x280] sm:$0xff]  }
 0x529   :  { %10205 = vmatprep.subr.bf16.mxu0 %v12537_v4  ;;  %v12562_v4 = vld [vmem:[#allocation6 + $0x240] sm:$0xff]  }
 0x52b   :  { %11107 = vmatmul.mubr.bf16.vlgmr.msra.gmra.mrb[64].mxu0 %v13884_v51 }
 0x52c   :  { %11110 = vmatprep.mubr.bf16.mxu0 %v13897_v12  ;;  %10206 = vmatpush3.bf16.msra.mxu0 %v12538_v37  ;;  %v12563_v37 = vld [vmem:[#allocation6 + $0x288] sm:$0xff]  }
 0x52d   :  { %10207 = vmatprep.subr.bf16.mxu0 %v12539_v38  ;;  %v12564_v38 = vld [vmem:[#allocation6 + $0x248] sm:$0xff]  }
 0x530   :  { %10208 = vmatpush3.bf16.msra.mxu0 %v12540_v17  ;;  %v12565_v17 = vld [vmem:[#allocation6 + $0x290] sm:$0xff]  }
 0x531   :  { %10209 = vmatprep.subr.bf16.mxu0 %v12541_v1 }
 0x533   :  { %11111 = vmatmul.mubr.bf16.gmra.mrb[68].mxu0 %v13909_v36 }
 0x534   :  { %10210 = vmatpush3.bf16.msra.mxu0 %v12542_v54  ;;  %6232 = vmatprep.mubr.bf16.mxu0 %v13765_v30 }
 0x535   :  { %10211 = vmatprep.subr.bf16.mxu0 %v12543_v16 }
 0x538   :  { %10212 = vmatpush3.bf16.msra.mxu0 %v12544_v48 }
 0x539   :  { %10213 = vmatprep.subr.bf16.mxu0 %v12545_v2  ;;  %v12566_v2 = vld [vmem:[#allocation6 + $0x250] sm:$0xff]  }
 0x53c   :  { %10214 = vmatpush3.bf16.msra.mxu0 %v12546_v53 }
 0x53d   :  { %10215 = vmatprep.subr.bf16.mxu0 %v12547_v7 }
 0x540   :  { %10216 = vmatpush3.bf16.msra.mxu0 %v12548_v57 }
 0x541   :  { %10217 = vmatprep.subr.bf16.mxu0 %v12549_v6 }
 0x544   :  { %10218 = vmatpush3.bf16.msra.mxu0 %v12550_v52  ;;  %v12567_v52 = vld [vmem:[#allocation6 + $0x298] sm:$0xff]  }
 0x545   :  { %10219 = vmatprep.subr.bf16.mxu0 %v12551_v60 }
 0x548   :  { %10220 = vmatpush3.bf16.msra.mxu0 %v12552_v46 }
 0x549   :  { %11114 = vmatprep.subr.bf16.mxu0 %v12553_v59 }
 0x54b   :  { %6233 = vmatmul.mubr.bf16.vlgmr.msra.gmra.mrb[88].mxu0 %v13762_v21 }
 0x54c   :  { %6240 = vmatprep.mubr.bf16.mxu0 %v13789_v29  ;;  %11115 = vmatpush3.bf16.msra.mxu0 %v12553_v59 }
 0x54d   :  { %11116 = vmatprep.subr.bf16.mxu0 %v12554_v35 }
 0x550   :  { %11117 = vmatpush3.bf16.msra.mxu0 %v12554_v35 }
 0x551   :  { %11118 = vmatprep.subr.bf16.mxu0 %v12555_v11 }
 0x553   :  { %6241 = vmatmul.mubr.bf16.gmra.mrb[92].mxu0 %v13786_v63 }
 0x554   :  { %6248 = vmatprep.mubr.bf16.mxu0 %v13813_v18  ;;  %11119 = vmatpush3.bf16.msra.mxu0 %v12555_v11  ;;  %v12568_v11 = vld [vmem:[#allocation6 + $0x258] sm:$0xff]  }
 0x555   :  { %11120 = vmatprep.subr.bf16.mxu0 %v12556_v26 }
 0x558   :  { %11121 = vmatpush3.bf16.msra.mxu0 %v12556_v26  ;;  %v12569_v26 = vld [vmem:[#allocation6 + $0x2a0] sm:$0xff]  }
 0x559   :  { %11122 = vmatprep.subr.bf16.mxu0 %v12557_v19 }
 0x55b   :  { %6249 = vmatmul.mubr.bf16.gmra.mrb[96].mxu0 %v13810_v25 }
 0x55c   :  { %6256 = vmatprep.mubr.bf16.mxu0 %v13837_v27  ;;  %11123 = vmatpush3.bf16.msra.mxu0 %v12557_v19  ;;  %v12570_v19 = vld [vmem:[#allocation6 + $0x260] sm:$0xff]  }
 0x55d   :  { %11124 = vmatprep.subr.bf16.mxu0 %v12558_v62 }
 0x55f   :  { %v10117_v56 = vpop.f32.mrb[48].mxu0 }
 0x560   :  { %11125 = vmatpush3.bf16.msra.mxu0 %v12558_v62  ;;  %v10118_v14 = vpop.f32.mrb[49].mxu0  ;;  %v12571_v62 = vld [vmem:[#allocation6 + $0x2a8] sm:$0xff]  }
 0x561   :  { %v13951_v61 = vadd.f32 %v10118_v14, %v10117_v56  ;;  %v10120_v23 = vpop.f32.mrb[50].mxu0  ;;  %11126 = vmatprep.subr.bf16.mxu0 %v12559_v28  ;;  %v12573_v56 = vld [vmem:[#allocation6 + $0x2b0] sm:$0xff]  }
 0x562   :  { %v10121_v55 = vpop.f32.mrb[51].mxu0 }
 0x563   :  { %v13953_v32 = vadd.f32 %v10121_v55, %v10120_v23  ;;  %6257 = vmatmul.mubr.bf16.gmra.mrb[100].mxu0 %v13834_v41 }
 0x564   :  { %11127 = vmatpush3.bf16.msra.mxu0 %v12559_v28  ;;  %11130 = vmatprep.mubr.bf16.mxu0 %v13884_v51  ;;  %v12572_v28 = vld [vmem:[#allocation6 + $0x268] sm:$0xff]  }
 0x565   :  { %11128 = vmatprep.subr.bf16.mxu0 %v12560_v9 }
 0x568   :  { %11129 = vmatpush3.bf16.msra.mxu0 %v12560_v9 }
 0x569   :  { %10257 = vmatprep.subr.bf16.mxu0 %v12561_v8  ;;  %v12574_v8 = vld [vmem:[#allocation6 + $0x270] sm:$0xff]  }
 0x56b   :  { %11131 = vmatmul.mubr.bf16.vlgmr.msra.gmra.mrb[64].mxu0 %v13897_v12 }
 0x56c   :  { %11134 = vmatprep.mubr.bf16.mxu0 %v13909_v36  ;;  %10258 = vmatpush3.bf16.msra.mxu0 %v12562_v4 }
 0x56d   :  { %10259 = vmatprep.subr.bf16.mxu0 %v12563_v37 }
 0x56f   :  { %v10123_v1 = vpop.f32.mrb[52].mxu0  ;;  %v10533_v54 = vpop.f32.mrb[96].mxu1 }
 0x570   :  { %10260 = vmatpush3.bf16.msra.mxu0 %v12564_v38  ;;  %v10124_v16 = vpop.f32.mrb[53].mxu0  ;;  %v10534_v48 = vpop.f32.mrb[97].mxu1 }
 0x571   :  { %v13959_v53 = vadd.f32 %v10124_v16, %v10123_v1  ;;  %v13961_v7 = vadd.f32 %v10534_v48, %v10533_v54  ;;  %v10126_v57 = vpop.f32.mrb[54].mxu0  ;;  %v10536_v6 = vpop.f32.mrb[98].mxu1  ;;  %10261 = vmatprep.subr.bf16.mxu0 %v12565_v17  ;;  %v12575_v1 = vld [vmem:[#allocation6 + $0x2b8] sm:$0xff]  }
 0x572   :  { %v10127_v60 = vpop.f32.mrb[55].mxu0  ;;  %v10537_v46 = vpop.f32.mrb[99].mxu1 }
 0x573   :  { %v13963_v59 = vadd.f32 %v10127_v60, %v10126_v57  ;;  %11135 = vmatmul.mubr.bf16.gmra.mrb[68].mxu0 %v13922_v0  ;;  %v13966_v35 = vadd.f32 %v10537_v46, %v10536_v6  ;;  %v12576_v57 = vld [vmem:[#allocation6 + $0x278] sm:$0xff]   ;;  %v12577_v6 = vld [vmem:[#allocation6 + $0x2c0] sm:$0xff]   ;;  %v12579_v60 = vld [vmem:[#allocation6 + $0x2d0] sm:$0xff]  }
 0x574   :  { %10262 = vmatpush3.bf16.msra.mxu0 %v12566_v2  ;;  %6566 = vmatprep.mubr.bf16.mxu0 %v13775_v5 }
 0x575   :  { %10263 = vmatprep.subr.bf16.mxu0 %v12567_v52  ;;  %v12578_v52 = vld [vmem:[#allocation6 + $0x2c8] sm:$0xff]  }
 0x578   :  { %10264 = vmatpush3.bf16.msra.mxu0 %v12568_v11 }
 0x579   :  { %10265 = vmatprep.subr.bf16.mxu0 %v12569_v26 }
 0x57c   :  { %10266 = vmatpush3.bf16.msra.mxu0 %v12570_v19 }
 0x57d   :  { %10267 = vmatprep.subr.bf16.mxu0 %v12571_v62 }
 0x57f   :  { %v10129_v14 = vpop.f32.mrb[56].mxu0  ;;  %v10539_v23 = vpop.f32.mrb[100].mxu1 }
 0x580   :  { %10268 = vmatpush3.bf16.msra.mxu0 %v12572_v28  ;;  %v10130_v9 = vpop.f32.mrb[57].mxu0  ;;  %v10540_v55 = vpop.f32.mrb[101].mxu1 }
 0x581   :  { %v13969_v4 = vadd.f32 %v10130_v9, %v10129_v14  ;;  %v13971_v37 = vadd.f32 %v10540_v55, %v10539_v23  ;;  %v10132_v38 = vpop.f32.mrb[58].mxu0  ;;  %v10542_v17 = vpop.f32.mrb[102].mxu1  ;;  %10269 = vmatprep.subr.bf16.mxu0 %v12573_v56  ;;  %v12580_v23 = vld [vmem:[#allocation6 + $0x2d8] sm:$0xff]  }
 0x582   :  { %v10133_v54 = vpop.f32.mrb[59].mxu0  ;;  %v10543_v16 = vpop.f32.mrb[103].mxu1 }
 0x583   :  { %v13973_v48 = vadd.f32 %v10133_v54, %v10132_v38  ;;  %v13975_v2 = vadd.f32 %v10543_v16, %v10542_v17  ;;  %v12581_v17 = vld [vmem:[#allocation6 + $0x2e0] sm:$0xff]   ;;  %v12583_v54 = vld [vmem:[#allocation6 + $0x2f0] sm:$0xff]  }
 0x584   :  { %10270 = vmatpush3.bf16.msra.mxu0 %v12574_v8 }
 0x585   :  { %10271 = vmatprep.subr.bf16.mxu0 %v12575_v1  ;;  %v12582_v1 = vld [vmem:[#allocation6 + $0x2e8] sm:$0xff]  }
 0x588   :  { %10272 = vmatpush3.bf16.msra.mxu0 %v12576_v57 }
 0x589   :  { %11138 = vmatprep.subr.bf16.mxu0 %v12577_v6 }
 0x58b   :  { %6567 = vmatmul.mubr.bf16.vlgmr.msra.gmra.mrb[104].mxu0 %v13772_v45 }
 0x58c   :  { %6574 = vmatprep.mubr.bf16.mxu0 %v13799_v15  ;;  %11139 = vmatpush3.bf16.msra.mxu0 %v12577_v6 }
 0x58d   :  { %11140 = vmatprep.subr.bf16.mxu0 %v12578_v52 }
 0x58f   :  { %v10135_v46 = vpop.f32.mrb[60].mxu0  ;;  %v10545_v11 = vpop.f32.mrb[104].mxu1 }
 0x590   :  { %11141 = vmatpush3.bf16.msra.mxu0 %v12578_v52  ;;  %v10136_v26 = vpop.f32.mrb[61].mxu0  ;;  %v10546_v19 = vpop.f32.mrb[105].mxu1 }
 0x591   :  { %v13979_v62 = vadd.f32 %v10136_v26, %v10135_v46  ;;  %v13981_v28 = vadd.f32 %v10546_v19, %v10545_v11  ;;  %v10138_v56 = vpop.f32.mrb[62].mxu0  ;;  %v10548_v14 = vpop.f32.mrb[106].mxu1  ;;  %11142 = vmatprep.subr.bf16.mxu0 %v12579_v60 }
 0x592   :  { %v10139_v9 = vpop.f32.mrb[63].mxu0  ;;  %v10549_v55 = vpop.f32.mrb[107].mxu1 }
 0x593   :  { %v13983_v8 = vadd.f32 %v10139_v9, %v10138_v56  ;;  %6575 = vmatmul.mubr.bf16.gmra.mrb[108].mxu0 %v13796_v24  ;;  %v13986_v38 = vadd.f32 %v10549_v55, %v10548_v14  ;;  %v12586_v56 = vld [vmem:[#allocation6 + $0x300] sm:$0xff]   ;;  %v12587_v9 = vld [vmem:[#allocation6 + $0x348] sm:$0xff]  }
 0x594   :  { %6582 = vmatprep.mubr.bf16.mxu0 %v13823_v22  ;;  %11143 = vmatpush3.bf16.msra.mxu0 %v12579_v60  ;;  %v12584_v60 = vld [vmem:[#allocation6 + $0x2f8] sm:$0xff]  }
 0x595   :  { %14496 = vst [vmem:[#allocation36_spill] sm:$0xff] %v13986_v38  ;;  %11144 = vmatprep.subr.bf16.mxu0 %v12580_v23 }
 0x598   :  { %11145 = vmatpush3.bf16.msra.mxu0 %v12580_v23 }
 0x599   :  { %11146 = vmatprep.subr.bf16.mxu0 %v12581_v17 }
 0x59b   :  { %6583 = vmatmul.mubr.bf16.gmra.mrb[112].mxu0 %v13820_v42 }
 0x59c   :  { %6590 = vmatprep.mubr.bf16.mxu0 %v13848_v40  ;;  %11147 = vmatpush3.bf16.msra.mxu0 %v12581_v17  ;;  %v12585_v40 = vld [vmem:[#allocation6 + $0x340] sm:$0xff]   ;;  %v12588_v17 = vld [vmem:[#allocation6 + $0x308] sm:$0xff]  }
 0x59d   :  { %11148 = vmatprep.subr.bf16.mxu0 %v12582_v1 }
 0x59f   :  { %v10551_v16 = vpop.f32.mrb[108].mxu1 }
 0x5a0   :  { %11149 = vmatpush3.bf16.msra.mxu0 %v12582_v1  ;;  %v10552_v57 = vpop.f32.mrb[109].mxu1  ;;  %v12589_v1 = vld [vmem:[#allocation6 + $0x350] sm:$0xff]  }
 0x5a1   :  { %v13991_v6 = vadd.f32 %v10552_v57, %v10551_v16  ;;  %v10554_v52 = vpop.f32.mrb[110].mxu1  ;;  %11150 = vmatprep.subr.bf16.mxu0 %v12583_v54  ;;  %v12590_v57 = vld [vmem:[#allocation6 + $0x310] sm:$0xff]  }
 0x5a2   :  { %v10555_v46 = vpop.f32.mrb[111].mxu1 }
 0x5a3   :  { %14497 = vst [vmem:[#allocation37_spill] sm:$0xff] %v13991_v6  ;;  %6591 = vmatmul.mubr.bf16.gmra.mrb[116].mxu0 %v13845_v39  ;;  %v13994_v11 = vadd.f32 %v10555_v46, %v10554_v52  ;;  %v12591_v46 = vld [vmem:[#allocation6 + $0x358] sm:$0xff]   ;;  %v12598_v6 = vld [vmem:[#allocation6 + $0x330] sm:$0xff]  }
 0x5a4   :  { %11151 = vmatpush3.bf16.msra.mxu0 %v12583_v54  ;;  %11154 = vmatprep.mubr.bf16.mxu0 %v13899_v31 }
 0x5a5   :  { %14498 = vst [vmem:[#allocation38_spill] sm:$0xff] %v13994_v11  ;;  %11152 = vmatprep.subr.bf16.mxu0 %v12584_v60 }
 0x5a7   :  { %v10585_v26 = vpop.f32.mrb[112].mxu1 }
 0x5a8   :  { %11153 = vmatpush3.bf16.msra.mxu0 %v12584_v60  ;;  %v10586_v19 = vpop.f32.mrb[113].mxu1 }
 0x5a9   :  { %v13997_v14 = vadd.f32 %v10586_v19, %v10585_v26  ;;  %v10588_v23 = vpop.f32.mrb[114].mxu1  ;;  %10309 = vmatprep.subr.bf16.mxu0 %v12585_v40  ;;  %v12592_v19 = vld [vmem:[#allocation6 + $0x318] sm:$0xff]  }
 0x5aa   :  { %v10589_v55 = vpop.f32.mrb[115].mxu1 }
 0x5ab   :  { %11155 = vmatmul.mubr.bf16.vlgmr.msra.gmra.mrb[64].mxu0 %v13911_v34  ;;  %v14000_v39 = vadd.f32 %v10589_v55, %v10588_v23  ;;  %v12594_v55 = vld [vmem:[#allocation6 + $0x320] sm:$0xff]  }
 0x5ac   :  { %11158 = vmatprep.mubr.bf16.mxu0 %v13920_v58  ;;  %10310 = vmatpush3.bf16.msra.mxu0 %v12586_v56  ;;  %v12593_v56 = vld [vmem:[#allocation6 + $0x360] sm:$0xff]  }
 0x5ad   :  { %10311 = vmatprep.subr.bf16.mxu0 %v12587_v9 }
 0x5af   :  { %v10591_v54 = vpop.f32.mrb[116].mxu1 }
 0x5b0   :  { %10312 = vmatpush3.bf16.msra.mxu0 %v12588_v17  ;;  %v10592_v16 = vpop.f32.mrb[117].mxu1 }
 0x5b1   :  { %v14003_v52 = vadd.f32 %v10592_v16, %v10591_v54  ;;  %v10594_v60 = vpop.f32.mrb[118].mxu1  ;;  %10313 = vmatprep.subr.bf16.mxu0 %v12589_v1  ;;  %v12595_v1 = vld [vmem:[#allocation6 + $0x368] sm:$0xff]  }
 0x5b2   :  { %v10595_v40 = vpop.f32.mrb[119].mxu1 }
 0x5b3   :  { %11159 = vmatmul.mubr.bf16.gmra.mrb[68].mxu0 %v13929_v3  ;;  %v14006_v26 = vadd.f32 %v10595_v40, %v10594_v60  ;;  %v12596_v60 = vld [vmem:[#allocation6 + $0x328] sm:$0xff]  }
 0x5b4   :  { %10314 = vmatpush3.bf16.msra.mxu0 %v12590_v57  ;;  %6900 = vmatprep.mubr.bf16.mxu0 %v13789_v29  ;;  %v12597_v57 = vld [vmem:[#allocation6 + $0x370] sm:$0xff]  }
 0x5b5   :  { %10315 = vmatprep.subr.bf16.mxu0 %v12591_v46 }
 0x5b7   :  { %v10597_v23 = vpop.f32.mrb[120].mxu1 }
 0x5b8   :  { %10316 = vmatpush3.bf16.msra.mxu0 %v12592_v19  ;;  %v10598_v9 = vpop.f32.mrb[121].mxu1 }
 0x5b9   :  { %v14009_v17 = vadd.f32 %v10598_v9, %v10597_v23  ;;  %v10600_v54 = vpop.f32.mrb[122].mxu1  ;;  %10317 = vmatprep.subr.bf16.mxu0 %v12593_v56  ;;  %v12599_v23 = vld [vmem:[#allocation6 + $0x378] sm:$0xff]  }
 0x5ba   :  { %v10601_v16 = vpop.f32.mrb[123].mxu1  ;;  %v12600_v56 = vld [vmem:[#allocation6 + $0x338] sm:$0xff]  }
 0x5bb   :  { %14499 = vst [vmem:[#allocation39_spill] sm:$0xff] %v14009_v17  ;;  %v14011_v11 = vadd.f32 %v10601_v16, %v10600_v54  ;;  %v12601_v54 = vld [vmem:[#allocation6 + $0x380] sm:$0xff]   ;;  %v12604_v16 = vld [vmem:[#allocation6 + $0x398] sm:$0xff]  }
 0x5bc   :  { %10318 = vmatpush3.bf16.msra.mxu0 %v12594_v55  ;;  %v12602_v55 = vld [vmem:[#allocation6 + $0x388] sm:$0xff]  }
 0x5bd   :  { %10319 = vmatprep.subr.bf16.mxu0 %v12595_v1  ;;  %v12603_v1 = vld [vmem:[#allocation6 + $0x390] sm:$0xff]  }
 0x5bf   :  { %v10603_v40 = vpop.f32.mrb[124].mxu1 }
 0x5c0   :  { %10320 = vmatpush3.bf16.msra.mxu0 %v12596_v60  ;;  %v10604_v46 = vpop.f32.mrb[125].mxu1  ;;  %v12606_v60 = vld [vmem:[#allocation6 + $0x3a8] sm:$0xff]  }
 0x5c1   :  { %v14013_v38 = vadd.f32 %v10604_v46, %v10603_v40  ;;  %v10606_v19 = vpop.f32.mrb[126].mxu1  ;;  %10321 = vmatprep.subr.bf16.mxu0 %v12597_v57  ;;  %v12607_v57 = vld [vmem:[#allocation6 + $0x3b0] sm:$0xff]  }
 0x5c2   :  { %v10607_v9 = vpop.f32.mrb[127].mxu1 }
 0x5c3   :  { %v14015_v17 = vadd.f32 %v10607_v9, %v10606_v19 }
 0x5c4   :  { %10322 = vmatpush3.bf16.msra.mxu0 %v12598_v6  ;;  %v12605_v6 = vld [vmem:[#allocation6 + $0x3a0] sm:$0xff]  }
 0x5c5   :  { %14500 = vst [vmem:[#allocation40_spill] sm:$0xff] %v14015_v17  ;;  %10323 = vmatprep.subr.bf16.mxu0 %v12599_v23 }
 0x5c8   :  { %10324 = vmatpush3.bf16.msra.mxu0 %v12600_v56  ;;  %v12608_v56 = vld [vmem:[#allocation6 + $0x3b8] sm:$0xff]  }
 0x5c9   :  { %11162 = vmatprep.subr.bf16.mxu0 %v12601_v54 }
 0x5cb   :  { %6901 = vmatmul.mubr.bf16.vlgmr.msra.gmra.mrb[120].mxu0 %v13786_v63 }
 0x5cc   :  { %6908 = vmatprep.mubr.bf16.mxu0 %v13813_v18  ;;  %11163 = vmatpush3.bf16.msra.mxu0 %v12601_v54 }
 0x5cd   :  { %11164 = vmatprep.subr.bf16.mxu0 %v12602_v55 }
 0x5d0   :  { %11165 = vmatpush3.bf16.msra.mxu0 %v12602_v55 }
 0x5d1   :  { %11166 = vmatprep.subr.bf16.mxu0 %v12603_v1 }
 0x5d3   :  { %6909 = vmatmul.mubr.bf16.gmra.mrb[124].mxu0 %v13810_v25 }
 0x5d4   :  { %6916 = vmatprep.mubr.bf16.mxu0 %v13837_v27  ;;  %11167 = vmatpush3.bf16.msra.mxu0 %v12603_v1 }
 0x5d5   :  { %11168 = vmatprep.subr.bf16.mxu0 %v12604_v16 }
 0x5d8   :  { %11169 = vmatpush3.bf16.msra.mxu0 %v12604_v16 }
 0x5d9   :  { %11170 = vmatprep.subr.bf16.mxu0 %v12605_v6 }
 0x5db   :  { %6917 = vmatmul.mubr.bf16.gmra.mrb[128].mxu0 %v13834_v41 }
 0x5dc   :  { %6924 = vmatprep.mubr.bf16.mxu0 %v13865_v13  ;;  %11171 = vmatpush3.bf16.msra.mxu0 %v12605_v6  ;;  %v12609_v13 = vld [vmem:[#allocation7 + $0x100] sm:$0xff]  }
 0x5dd   :  { %11172 = vmatprep.subr.bf16.mxu0 %v12606_v60 }
 0x5de   :  { %v10169_v40 = vpop.f32.mrb[72].mxu0 }
 0x5df   :  { %v10170_v46 = vpop.f32.mrb[73].mxu0 }
 0x5e0   :  { %v10171_v19 = vadd.f32 %v10170_v46, %v10169_v40  ;;  %v10172_v23 = vpop.f32.mrb[74].mxu0  ;;  %11173 = vmatpush3.bf16.msra.mxu0 %v12606_v60  ;;  %v12610_v46 = vld [vmem:[#allocation7 + $0xc0] sm:$0xff]  }
 0x5e1   :  { %v10173_v9 = vpop.f32.mrb[75].mxu0  ;;  %11174 = vmatprep.subr.bf16.mxu0 %v12607_v57 }
 0x5e2   :  { %v14024_v54 = vadd.f32 %v10171_v19, %v13951_v61  ;;  %v10174_v55 = vadd.f32 %v10173_v9, %v10172_v23  ;;  %v12611_v61 = vld [vmem:[#allocation7 + $0x108] sm:$0xff]   ;;  %v12613_v23 = vld [vmem:[#allocation7 + $0x110] sm:$0xff]  }
 0x5e3   :  { %6925 = vmatmul.mubr.bf16.gmra.mrb[132].mxu0 %v13862_v20 }
 0x5e4   :  { %v14028_v1 = vadd.f32 %v10174_v55, %v13953_v32  ;;  %11175 = vmatpush3.bf16.msra.mxu0 %v12607_v57  ;;  %11178 = vmatprep.mubr.bf16.mxu0 %v13897_v12  ;;  %v12612_v57 = vld [vmem:[#allocation7 + $0xc8] sm:$0xff]  }
 0x5e5   :  { %11176 = vmatprep.subr.bf16.mxu0 %v12608_v56 }
 0x5e6   :  { %v10175_v16 = vpop.f32.mrb[76].mxu0 }
 0x5e7   :  { %v10176_v6 = vpop.f32.mrb[77].mxu0 }
 0x5e8   :  { %v10177_v60 = vadd.f32 %v10176_v6, %v10175_v16  ;;  %v10178_v40 = vpop.f32.mrb[78].mxu0  ;;  %11177 = vmatpush3.bf16.msra.mxu0 %v12608_v56  ;;  %v12614_v16 = vld [vmem:[#allocation7 + $0xd0] sm:$0xff]  }
 0x5e9   :  { %v10179_v17 = vpop.f32.mrb[79].mxu0  ;;  %10361 = vmatprep.subr.bf16.mxu0 %v12609_v13 }
 0x5ea   :  { %v14032_v19 = vadd.f32 %v10177_v60, %v13959_v53  ;;  %v10180_v20 = vadd.f32 %v10179_v17, %v10178_v40  ;;  %v12615_v17 = vld [vmem:[#allocation7 + $0x118] sm:$0xff]  }
 0x5eb   :  { %11179 = vmatmul.mubr.bf16.vlgmr.msra.gmra.mrb[64].mxu0 %v13909_v36  ;;  %v12616_v40 = vld [vmem:[#allocation7 + $0xd8] sm:$0xff]  }
 0x5ec   :  { %v14036_v32 = vadd.f32 %v10180_v20, %v13963_v59  ;;  %11182 = vmatprep.mubr.bf16.mxu0 %v13922_v0  ;;  %10362 = vmatpush3.bf16.msra.mxu0 %v12610_v46  ;;  %v12617_v46 = vld [vmem:[#allocation7 + $0x120] sm:$0xff]  }
 0x5ed   :  { %10363 = vmatprep.subr.bf16.mxu0 %v12611_v61 }
 0x5ee   :  { %v10181_v9 = vpop.f32.mrb[80].mxu0 }
 0x5ef   :  { %v10182_v56 = vpop.f32.mrb[81].mxu0 }
 0x5f0   :  { %v10183_v55 = vadd.f32 %v10182_v56, %v10181_v9  ;;  %v10184_v13 = vpop.f32.mrb[82].mxu0  ;;  %10364 = vmatpush3.bf16.msra.mxu0 %v12612_v57  ;;  %v12618_v9 = vld [vmem:[#allocation7 + $0xe0] sm:$0xff]   ;;  %v12619_v56 = vld [vmem:[#allocation7 + $0x128] sm:$0xff]  }
 0x5f1   :  { %v10185_v53 = vpop.f32.mrb[83].mxu0  ;;  %10365 = vmatprep.subr.bf16.mxu0 %v12613_v23 }
 0x5f2   :  { %v14040_v6 = vadd.f32 %v10183_v55, %v13969_v4  ;;  %v10186_v59 = vadd.f32 %v10185_v53, %v10184_v13  ;;  %v12622_v53 = vld [vmem:[#allocation7 + $0xf0] sm:$0xff]  }
 0x5f3   :  { %11183 = vmatmul.mubr.bf16.gmra.mrb[68].mxu0 %v13931_v47 }
 0x5f4   :  { %v14044_v60 = vadd.f32 %v10186_v59, %v13973_v48  ;;  %10366 = vmatpush3.bf16.msra.mxu0 %v12614_v16  ;;  %7279 = vmatprep.mubr.bf16.mxu0 %v13753_v10  ;;  %v12620_v10 = vld [vmem:[#allocation7 + $0xe8] sm:$0xff]   ;;  %v12621_v16 = vld [vmem:[#allocation7 + $0x130] sm:$0xff]   ;;  %v12624_v59 = vld [vmem:[#allocation7 + $0xf8] sm:$0xff]  }
 0x5f5   :  { %10367 = vmatprep.subr.bf16.mxu0 %v12615_v17  ;;  %v12623_v17 = vld [vmem:[#allocation7 + $0x138] sm:$0xff]  }
 0x5f6   :  { %v10187_v61 = vpop.f32.mrb[84].mxu0 }
 0x5f7   :  { %v10188_v20 = vpop.f32.mrb[85].mxu0 }
 0x5f8   :  { %v10189_v57 = vadd.f32 %v10188_v20, %v10187_v61  ;;  %v10190_v23 = vpop.f32.mrb[86].mxu0  ;;  %10368 = vmatpush3.bf16.msra.mxu0 %v12616_v40  ;;  %v12625_v40 = vld [vmem:[#allocation7 + $0x140] sm:$0xff]   ;;  %v12630_v20 = vld [vmem:[#allocation7 + $0x168] sm:$0xff]  }
 0x5f9   :  { %v10191_v4 = vpop.f32.mrb[87].mxu0  ;;  %10369 = vmatprep.subr.bf16.mxu0 %v12617_v46  ;;  %v12628_v46 = vld [vmem:[#allocation7 + $0x158] sm:$0xff]   ;;  %v12629_v61 = vld [vmem:[#allocation7 + $0x160] sm:$0xff]  }
 0x5fa   :  { %v14048_v55 = vadd.f32 %v10189_v57, %v13979_v62  ;;  %v10192_v48 = vadd.f32 %v10191_v4, %v10190_v23  ;;  %v12626_v62 = vld [vmem:[#allocation7 + $0x148] sm:$0xff]  }
 0x5fc   :  { %v14051_v13 = vadd.f32 %v10192_v48, %v13983_v8  ;;  %10370 = vmatpush3.bf16.msra.mxu0 %v12618_v9  ;;  %v12627_v8 = vld [vmem:[#allocation7 + $0x150] sm:$0xff]  }
 0x5fd   :  { %10371 = vmatprep.subr.bf16.mxu0 %v12619_v56 }
 0x600   :  { %10372 = vmatpush3.bf16.msra.mxu0 %v12620_v10 }
 0x601   :  { %10373 = vmatprep.subr.bf16.mxu0 %v12621_v16 }
 0x604   :  { %10374 = vmatpush3.bf16.msra.mxu0 %v12622_v53 }
 0x605   :  { %10375 = vmatprep.subr.bf16.mxu0 %v12623_v17  ;;  %v12634_v17 = vld [vmem:[#allocation7] sm:$0xff]  }
 0x608   :  { %10376 = vmatpush3.bf16.msra.mxu0 %v12624_v59 }
 0x609   :  { %11186 = vmatprep.subr.bf16.mxu0 %v12625_v40 }
 0x60b   :  { %7280 = vmatmul.mubr.bf16.vlgmr.msra.gmra.mrb[136].mxu0 %v13749_v44  ;;  %v12631_v44 = vld [vmem:[#allocation7 + $0x170] sm:$0xff]  }
 0x60c   :  { %7287 = vmatprep.mubr.bf16.mxu0 %v13775_v5  ;;  %11187 = vmatpush3.bf16.msra.mxu0 %v12625_v40 }
 0x60d   :  { %11188 = vmatprep.subr.bf16.mxu0 %v12626_v62 }
 0x610   :  { %11189 = vmatpush3.bf16.msra.mxu0 %v12626_v62  ;;  %v12637_v62 = vld [vmem:[#allocation7 + $0x50] sm:$0xff]  }
 0x611   :  { %11190 = vmatprep.subr.bf16.mxu0 %v12627_v8 }
 0x613   :  { %7288 = vmatmul.mubr.bf16.gmra.mrb[140].mxu0 %v13772_v45 }
 0x614   :  { %7295 = vmatprep.mubr.bf16.mxu0 %v13799_v15  ;;  %11191 = vmatpush3.bf16.msra.mxu0 %v12627_v8  ;;  %v12632_v15 = vld [vmem:[#allocation7 + $0x178] sm:$0xff]  }
 0x615   :  { %11192 = vmatprep.subr.bf16.mxu0 %v12628_v46 }
 0x618   :  { %11193 = vmatpush3.bf16.msra.mxu0 %v12628_v46 }
 0x619   :  { %11194 = vmatprep.subr.bf16.mxu0 %v12629_v61 }
 0x61b   :  { %7296 = vmatmul.mubr.bf16.gmra.mrb[144].mxu0 %v13796_v24 }
 0x61c   :  { %7303 = vmatprep.mubr.bf16.mxu0 %v13823_v22  ;;  %11195 = vmatpush3.bf16.msra.mxu0 %v12629_v61  ;;  %v12633_v22 = vld [vmem:[#allocation7 + $0x40] sm:$0xff]  }
 0x61d   :  { %11196 = vmatprep.subr.bf16.mxu0 %v12630_v20 }
 0x61e   :  { %v10221_v5 = vpop.f32.mrb[88].mxu0 }
 0x61f   :  { %v10222_v57 = vpop.f32.mrb[89].mxu0 }
 0x620   :  { %v10223_v23 = vadd.f32 %v10222_v57, %v10221_v5  ;;  %v10224_v9 = vpop.f32.mrb[90].mxu0  ;;  %11197 = vmatpush3.bf16.msra.mxu0 %v12630_v20  ;;  %v12639_v5 = vld [vmem:[#allocation7 + $0x58] sm:$0xff]  }
 0x621   :  { %v10225_v45 = vpop.f32.mrb[91].mxu0  ;;  %11198 = vmatprep.subr.bf16.mxu0 %v12631_v44 }
 0x622   :  { %v14060_v4 = vadd.f32 %v14024_v54, %v10223_v23  ;;  %v10226_v56 = vadd.f32 %v10225_v45, %v10224_v9  ;;  %v12635_v54 = vld [vmem:[#allocation7 + $0x48] sm:$0xff]   ;;  %v12640_v9 = vld [vmem:[#allocation7 + $0x18] sm:$0xff]   ;;  %v12641_v45 = vld [vmem:[#allocation7 + $0x60] sm:$0xff]  }
 0x623   :  { %7304 = vmatmul.mubr.bf16.gmra.mrb[148].mxu0 %v13820_v42 }
 0x624   :  { %v14064_v24 = vadd.f32 %v14028_v1, %v10226_v56  ;;  %11199 = vmatpush3.bf16.msra.mxu0 %v12631_v44  ;;  %11202 = vmatprep.mubr.bf16.mxu0 %v13887_v43  ;;  %v12636_v43 = vld [vmem:[#allocation7 + $0x8] sm:$0xff]   ;;  %v12638_v44 = vld [vmem:[#allocation7 + $0x10] sm:$0xff]  }
 0x625   :  { %11200 = vmatprep.subr.bf16.mxu0 %v12632_v15 }
 0x626   :  { %v10227_v48 = vpop.f32.mrb[92].mxu0 }
 0x627   :  { %v10228_v10 = vpop.f32.mrb[93].mxu0 }
 0x628   :  { %v10229_v16 = vadd.f32 %v10228_v10, %v10227_v48  ;;  %v10230_v53 = vpop.f32.mrb[94].mxu0  ;;  %11201 = vmatpush3.bf16.msra.mxu0 %v12632_v15  ;;  %v12642_v10 = vld [vmem:[#allocation7 + $0x20] sm:$0xff]  }
 0x629   :  { %v10231_v59 = vpop.f32.mrb[95].mxu0  ;;  %10413 = vmatprep.subr.bf16.mxu0 %v12633_v22 }
 0x62a   :  { %v14068_v40 = vadd.f32 %v14032_v19, %v10229_v16  ;;  %v10232_v42 = vadd.f32 %v10231_v59, %v10230_v53  ;;  %v12643_v16 = vld [vmem:[#allocation7 + $0x68] sm:$0xff]   ;;  %v12645_v59 = vld [vmem:[#allocation7 + $0x70] sm:$0xff]  }
 0x62b   :  { %11203 = vmatmul.mubr.bf16.vlgmr.msra.gmra.mrb[152].mxu0 %v13899_v31 }
 0x62c   :  { %v14072_v1 = vadd.f32 %v14036_v32, %v10232_v42  ;;  %11206 = vmatprep.mubr.bf16.mxu0 %v13911_v34  ;;  %10414 = vmatpush3.bf16.msra.mxu0 %v12634_v17  ;;  %v12647_v42 = vld [vmem:[#allocation7 + $0x78] sm:$0xff]  }
 0x62d   :  { %10415 = vmatprep.subr.bf16.mxu0 %v12635_v54  ;;  %v12646_v54 = vld [vmem:[#allocation7 + $0x30] sm:$0xff]  }
 0x62e   :  { %v10233_v8 = vpop.f32.mrb[96].mxu0 }
 0x62f   :  { %v10234_v46 = vpop.f32.mrb[97].mxu0 }
 0x630   :  { %v10235_v61 = vadd.f32 %v10234_v46, %v10233_v8  ;;  %v10236_v20 = vpop.f32.mrb[98].mxu0  ;;  %10416 = vmatpush3.bf16.msra.mxu0 %v12636_v43  ;;  %v12648_v43 = vld [vmem:[#allocation7 + $0x38] sm:$0xff]   ;;  %v12653_v46 = vld [vmem:[#allocation7 + $0xa0] sm:$0xff]  }
 0x631   :  { %v10237_v19 = vpop.f32.mrb[99].mxu0  ;;  %10417 = vmatprep.subr.bf16.mxu0 %v12637_v62  ;;  %v12649_v62 = vld [vmem:[#allocation7 + $0x80] sm:$0xff]   ;;  %v12652_v8 = vld [vmem:[#allocation7 + $0x98] sm:$0xff]  }
 0x632   :  { %v14076_v57 = vadd.f32 %v14040_v6, %v10235_v61  ;;  %v10238_v32 = vadd.f32 %v10237_v19, %v10236_v20  ;;  %v12654_v61 = vld [vmem:[#allocation7 + $0xa8] sm:$0xff]  }
 0x633   :  { %11207 = vmatmul.mubr.bf16.gmra.mrb[156].mxu0 %v13920_v58 }
 0x634   :  { %v14080_v23 = vadd.f32 %v14044_v60, %v10238_v32  ;;  %10418 = vmatpush3.bf16.msra.mxu0 %v12638_v44  ;;  %7553 = vmatprep.mubr.bf16.mxu0 %v13743_v50  ;;  %v12644_v50 = vld [vmem:[#allocation7 + $0x28] sm:$0xff]  }
 0x635   :  { %10419 = vmatprep.subr.bf16.mxu0 %v12639_v5 }
 0x636   :  { %v10239_v15 = vpop.f32.mrb[100].mxu0 }
 0x637   :  { %v10240_v56 = vpop.f32.mrb[101].mxu0 }
 0x638   :  { %v10241_v22 = vadd.f32 %v10240_v56, %v10239_v15  ;;  %v10242_v48 = vpop.f32.mrb[102].mxu0  ;;  %10420 = vmatpush3.bf16.msra.mxu0 %v12640_v9  ;;  %v12656_v9 = vld [vmem:[#allocation7 + $0xb8] sm:$0xff]  }
 0x639   :  { %v10243_v6 = vpop.f32.mrb[103].mxu0  ;;  %10421 = vmatprep.subr.bf16.mxu0 %v12641_v45 }
 0x63a   :  { %v14084_v53 = vadd.f32 %v14048_v55, %v10241_v22  ;;  %v10244_v60 = vadd.f32 %v10243_v6, %v10242_v48  ;;  %v12650_v55 = vld [vmem:[#allocation7 + $0x88] sm:$0xff]   ;;  %v12657_v22 = vld [vmem:[#allocation7 + $0x1c0] sm:$0xff]  }
 0x63c   :  { %v14087_v17 = vadd.f32 %v14051_v13, %v10244_v60  ;;  %10422 = vmatpush3.bf16.msra.mxu0 %v12642_v10  ;;  %v12651_v13 = vld [vmem:[#allocation7 + $0x90] sm:$0xff]   ;;  %v12658_v60 = vld [vmem:[#allocation7 + $0x180] sm:$0xff]  }
 0x63d   :  { %10423 = vmatprep.subr.bf16.mxu0 %v12643_v16 }
 0x640   :  { %10424 = vmatpush3.bf16.msra.mxu0 %v12644_v50 }
 0x641   :  { %10425 = vmatprep.subr.bf16.mxu0 %v12645_v59 }
 0x644   :  { %10426 = vmatpush3.bf16.msra.mxu0 %v12646_v54 }
 0x645   :  { %10427 = vmatprep.subr.bf16.mxu0 %v12647_v42  ;;  %v12661_v42 = vld [vmem:[#allocation7 + $0x1d0] sm:$0xff]  }
 0x648   :  { %10428 = vmatpush3.bf16.msra.mxu0 %v12648_v43 }
 0x649   :  { %11210 = vmatprep.subr.bf16.mxu0 %v12649_v62 }
 0x64b   :  { %7554 = vmatmul.mubr.bf16.vlgmr.msra.gmra.mrb[160].mxu0 %v13739_v49  ;;  %v12655_v49 = vld [vmem:[#allocation7 + $0xb0] sm:$0xff]  }
 0x64c   :  { %7561 = vmatprep.mubr.bf16.mxu0 %v13765_v30  ;;  %11211 = vmatpush3.bf16.msra.mxu0 %v12649_v62 }
 0x64d   :  { %11212 = vmatprep.subr.bf16.mxu0 %v12650_v55 }
 0x650   :  { %11213 = vmatpush3.bf16.msra.mxu0 %v12650_v55 }
 0x651   :  { %11214 = vmatprep.subr.bf16.mxu0 %v12651_v13 }
 0x653   :  { %7562 = vmatmul.mubr.bf16.gmra.mrb[164].mxu0 %v13762_v21 }
 0x654   :  { %7569 = vmatprep.mubr.bf16.mxu0 %v13789_v29  ;;  %11215 = vmatpush3.bf16.msra.mxu0 %v12651_v13 }
 0x655   :  { %11216 = vmatprep.subr.bf16.mxu0 %v12652_v8 }
 0x658   :  { %11217 = vmatpush3.bf16.msra.mxu0 %v12652_v8  ;;  %v12662_v8 = vld [vmem:[#allocation7 + $0x190] sm:$0xff]  }
 0x659   :  { %11218 = vmatprep.subr.bf16.mxu0 %v12653_v46 }
 0x65b   :  { %7570 = vmatmul.mubr.bf16.gmra.mrb[168].mxu0 %v13786_v63 }
 0x65c   :  { %7577 = vmatprep.mubr.bf16.mxu0 %v13813_v18  ;;  %11219 = vmatpush3.bf16.msra.mxu0 %v12653_v46  ;;  %v12663_v46 = vld [vmem:[#allocation7 + $0x1d8] sm:$0xff]  }
 0x65d   :  { %11220 = vmatprep.subr.bf16.mxu0 %v12654_v61 }
 0x65e   :  { %v10273_v20 = vpop.f32.mrb[104].mxu0 }
 0x65f   :  { %v10274_v44 = vpop.f32.mrb[105].mxu0 }
 0x660   :  { %v10275_v19 = vadd.f32 %v10274_v44, %v10273_v20  ;;  %v10276_v5 = vpop.f32.mrb[106].mxu0  ;;  %11221 = vmatpush3.bf16.msra.mxu0 %v12654_v61  ;;  %v12664_v20 = vld [vmem:[#allocation7 + $0x198] sm:$0xff]   ;;  %v12665_v44 = vld [vmem:[#allocation7 + $0x1e0] sm:$0xff]  }
 0x661   :  { %v10277_v32 = vpop.f32.mrb[107].mxu0  ;;  %11222 = vmatprep.subr.bf16.mxu0 %v12655_v49 }
 0x662   :  { %v14096_v45 = vadd.f32 %v14060_v4, %v10275_v19  ;;  %v10278_v15 = vadd.f32 %v10277_v32, %v10276_v5  ;;  %v12659_v4 = vld [vmem:[#allocation7 + $0x1c8] sm:$0xff]  }
 0x663   :  { %7578 = vmatmul.mubr.bf16.gmra.mrb[172].mxu0 %v13810_v25 }
 0x664   :  { %v14100_v56 = vadd.f32 %v14064_v24, %v10278_v15  ;;  %11223 = vmatpush3.bf16.msra.mxu0 %v12655_v49  ;;  %11226 = vmatprep.mubr.bf16.mxu0 %v13875_v33  ;;  %v12660_v33 = vld [vmem:[#allocation7 + $0x188] sm:$0xff]   ;;  %v12666_v15 = vld [vmem:[#allocation7 + $0x1a0] sm:$0xff]  }
 0x665   :  { %11224 = vmatprep.subr.bf16.mxu0 %v12656_v9 }
 0x666   :  { %v10279_v48 = vpop.f32.mrb[108].mxu0 }
 0x667   :  { %v10280_v10 = vpop.f32.mrb[109].mxu0 }
 0x668   :  { %v10281_v6 = vadd.f32 %v10280_v10, %v10279_v48  ;;  %v10282_v16 = vpop.f32.mrb[110].mxu0  ;;  %11225 = vmatpush3.bf16.msra.mxu0 %v12656_v9 }
 0x669   :  { %v10283_v50 = vpop.f32.mrb[111].mxu0  ;;  %10465 = vmatprep.subr.bf16.mxu0 %v12657_v22  ;;  %v12667_v22 = vld [vmem:[#allocation7 + $0x1e8] sm:$0xff]  }
 0x66a   :  { %v14104_v59 = vadd.f32 %v14068_v40, %v10281_v6  ;;  %v10284_v54 = vadd.f32 %v10283_v50, %v10282_v16  ;;  %v12669_v6 = vld [vmem:[#allocation7 + $0x1f0] sm:$0xff]   ;;  %v12672_v50 = vld [vmem:[#allocation7 + $0x1b8] sm:$0xff]  }
 0x66b   :  { %11227 = vmatmul.mubr.bf16.vlgmr.msra.gmra.mrb[152].mxu0 %v13884_v51  ;;  %v12670_v16 = vld [vmem:[#allocation7 + $0x1b0] sm:$0xff]  }
 0x66c   :  { %v14108_v24 = vadd.f32 %v14072_v1, %v10284_v54  ;;  %11230 = vmatprep.mubr.bf16.mxu0 %v13897_v12  ;;  %10466 = vmatpush3.bf16.msra.mxu0 %v12658_v60  ;;  %v12671_v60 = vld [vmem:[#allocation7 + $0x1f8] sm:$0xff]  }
 0x66d   :  { %10467 = vmatprep.subr.bf16.mxu0 %v12659_v4  ;;  %v12673_v4 = vld [vmem:[#allocation7 + $0x200] sm:$0xff]   ;;  %v12676_v54 = vld [vmem:[#allocation7 + $0x218] sm:$0xff]  }
 0x66e   :  { %v10285_v43 = vpop.f32.mrb[112].mxu0 }
 0x66f   :  { %v10286_v62 = vpop.f32.mrb[113].mxu0 }
 0x670   :  { %v10287_v55 = vadd.f32 %v10286_v62, %v10285_v43  ;;  %v10288_v13 = vpop.f32.mrb[114].mxu0  ;;  %10468 = vmatpush3.bf16.msra.mxu0 %v12660_v33  ;;  %v12677_v33 = vld [vmem:[#allocation7 + $0x220] sm:$0xff]  }
 0x671   :  { %v10289_v40 = vpop.f32.mrb[115].mxu0  ;;  %10469 = vmatprep.subr.bf16.mxu0 %v12661_v42  ;;  %v12678_v42 = vld [vmem:[#allocation7 + $0x228] sm:$0xff]  }
 0x672   :  { %v14112_v61 = vadd.f32 %v14076_v57, %v10287_v55  ;;  %v10290_v1 = vadd.f32 %v10289_v40, %v10288_v13 }
 0x673   :  { %11231 = vmatmul.mubr.bf16.gmra.mrb[156].mxu0 %v13909_v36 }
 0x674   :  { %v14116_v49 = vadd.f32 %v14080_v23, %v10290_v1  ;;  %10470 = vmatpush3.bf16.msra.mxu0 %v12662_v8  ;;  %7876 = vmatprep.mubr.bf16.mxu0 %v13765_v30  ;;  %v12668_v30 = vld [vmem:[#allocation7 + $0x1a8] sm:$0xff]  }
 0x675   :  { %10471 = vmatprep.subr.bf16.mxu0 %v12663_v46 }
 0x676   :  { %v10291_v19 = vpop.f32.mrb[116].mxu0 }
 0x677   :  { %v10292_v5 = vpop.f32.mrb[117].mxu0 }
 0x678   :  { %v10293_v32 = vadd.f32 %v10292_v5, %v10291_v19  ;;  %v10294_v9 = vpop.f32.mrb[118].mxu0  ;;  %10472 = vmatpush3.bf16.msra.mxu0 %v12664_v20  ;;  %v12682_v19 = vld [vmem:[#allocation7 + $0x2c8] sm:$0xff]  }
 0x679   :  { %v10295_v57 = vpop.f32.mrb[119].mxu0  ;;  %10473 = vmatprep.subr.bf16.mxu0 %v12665_v44 }
 0x67a   :  { %v14120_v48 = vadd.f32 %v14084_v53, %v10293_v32  ;;  %v10296_v23 = vadd.f32 %v10295_v57, %v10294_v9  ;;  %v12674_v53 = vld [vmem:[#allocation7 + $0x208] sm:$0xff]  }
 0x67c   :  { %v14123_v10 = vadd.f32 %v14087_v17, %v10296_v23  ;;  %10474 = vmatpush3.bf16.msra.mxu0 %v12666_v15  ;;  %v12675_v17 = vld [vmem:[#allocation7 + $0x210] sm:$0xff]  }
 0x67d   :  { %10475 = vmatprep.subr.bf16.mxu0 %v12667_v22  ;;  %v12684_v22 = vld [vmem:[#allocation7 + $0x2d8] sm:$0xff]  }
 0x680   :  { %10476 = vmatpush3.bf16.msra.mxu0 %v12668_v30  ;;  %v12685_v30 = vld [vmem:[#allocation7 + $0x2e0] sm:$0xff]  }
 0x681   :  { %10477 = vmatprep.subr.bf16.mxu0 %v12669_v6 }
 0x684   :  { %10478 = vmatpush3.bf16.msra.mxu0 %v12670_v16 }
 0x685   :  { %10479 = vmatprep.subr.bf16.mxu0 %v12671_v60 }
 0x688   :  { %10480 = vmatpush3.bf16.msra.mxu0 %v12672_v50 }
 0x689   :  { %11234 = vmatprep.subr.bf16.mxu0 %v12673_v4 }
 0x68b   :  { %7877 = vmatmul.mubr.bf16.vlgmr.msra.gmra.mrb[176].mxu0 %v13762_v21  ;;  %v12679_v21 = vld [vmem:[#allocation7 + $0x230] sm:$0xff]  }
 0x68c   :  { %7884 = vmatprep.mubr.bf16.mxu0 %v13789_v29  ;;  %11235 = vmatpush3.bf16.msra.mxu0 %v12673_v4 }
 0x68d   :  { %11236 = vmatprep.subr.bf16.mxu0 %v12674_v53 }
 0x690   :  { %11237 = vmatpush3.bf16.msra.mxu0 %v12674_v53  ;;  %v12686_v53 = vld [vmem:[#allocation7 + $0x2e8] sm:$0xff]  }
 0x691   :  { %11238 = vmatprep.subr.bf16.mxu0 %v12675_v17 }
 0x693   :  { %7885 = vmatmul.mubr.bf16.gmra.mrb[180].mxu0 %v13786_v63 }
 0x694   :  { %7892 = vmatprep.mubr.bf16.mxu0 %v13813_v18  ;;  %11239 = vmatpush3.bf16.msra.mxu0 %v12675_v17  ;;  %v12680_v18 = vld [vmem:[#allocation7 + $0x238] sm:$0xff]  }
 0x695   :  { %11240 = vmatprep.subr.bf16.mxu0 %v12676_v54 }
 0x698   :  { %11241 = vmatpush3.bf16.msra.mxu0 %v12676_v54 }
 0x699   :  { %11242 = vmatprep.subr.bf16.mxu0 %v12677_v33 }
 0x69b   :  { %7893 = vmatmul.mubr.bf16.gmra.mrb[184].mxu0 %v13810_v25 }
 0x69c   :  { %7900 = vmatprep.mubr.bf16.mxu0 %v13837_v27  ;;  %11243 = vmatpush3.bf16.msra.mxu0 %v12677_v33  ;;  %v12681_v27 = vld [vmem:[#allocation7 + $0x2c0] sm:$0xff]  }
 0x69d   :  { %11244 = vmatprep.subr.bf16.mxu0 %v12678_v42 }
 0x69e   :  { %v10325_v29 = vpop.f32.mrb[120].mxu0 }
 0x69f   :  { %v10326_v43 = vpop.f32.mrb[121].mxu0 }
 0x6a0   :  { %v10327_v62 = vadd.f32 %v10326_v43, %v10325_v29  ;;  %v10328_v55 = vpop.f32.mrb[122].mxu0  ;;  %11245 = vmatpush3.bf16.msra.mxu0 %v12678_v42 }
 0x6a1   :  { %v10329_v63 = vpop.f32.mrb[123].mxu0  ;;  %11246 = vmatprep.subr.bf16.mxu0 %v12679_v21 }
 0x6a2   :  { %v10330_v13 = vadd.f32 %v10329_v63, %v10328_v55  ;;  %v11414_v8 = vadd.f32 %v14096_v45, %v10327_v62  ;;  %v12688_v55 = vld [vmem:[#allocation7 + $0x2f8] sm:$0xff]  }
 0x6a3   :  { %7901 = vmatmul.mubr.bf16.gmra.mrb[188].mxu0 %v13834_v41 }
 0x6a4   :  { %11247 = vmatpush3.bf16.msra.mxu0 %v12679_v21  ;;  %11250 = vmatprep.mubr.bf16.mxu0 %v13884_v51  ;;  %v11424_v25 = vadd.f32 %v14100_v56, %v10330_v13  ;;  %v12683_v51 = vld [vmem:[#allocation7 + $0x2d0] sm:$0xff]  }
 0x6a5   :  { %11248 = vmatprep.subr.bf16.mxu0 %v12680_v18 }
 0x6a6   :  { %v10331_v40 = vpop.f32.mrb[124].mxu0 }
 0x6a7   :  { %v10332_v46 = vpop.f32.mrb[125].mxu0 }
 0x6a8   :  { %v10333_v1 = vadd.f32 %v10332_v46, %v10331_v40  ;;  %v10334_v20 = vpop.f32.mrb[126].mxu0  ;;  %11249 = vmatpush3.bf16.msra.mxu0 %v12680_v18 }
 0x6a9   :  { %v10335_v44 = vpop.f32.mrb[127].mxu0  ;;  %11258 = vmatprep.subr.bf16.mxu0 %v12681_v27 }
 0x6aa   :  { %v10336_v5 = vadd.f32 %v10335_v44, %v10334_v20  ;;  %v11409_v45 = vadd.f32 %v14104_v59, %v10333_v1  ;;  %v12690_v1 = vld [vmem:[#allocation7 + $0x388] sm:$0xff]   ;;  %v12692_v44 = vld [vmem:[#allocation7 + $0x398] sm:$0xff]  }
 0x6ab   :  { %11251 = vmatmul.mubr.bf16.vlgmr.msra.gmra.mrb[152].mxu0 %v13897_v12 }
 0x6ac   :  { %11254 = vmatprep.mubr.bf16.mxu0 %v13909_v36  ;;  %11259 = vmatpush3.bf16.msra.mxu0 %v12681_v27  ;;  %v11419_v41 = vadd.f32 %v14108_v24, %v10336_v5  ;;  %v12694_v5 = vld [vmem:[#allocation7 + $0x3a8] sm:$0xff]  }
 0x6ad   :  { %11260 = vmatprep.subr.bf16.mxu0 %v12682_v19 }
 0x6ae   :  { %v10337_v56 = vpop.f32.mrb[128].mxu0 }
 0x6af   :  { %v10338_v32 = vpop.f32.mrb[129].mxu0 }
 0x6b0   :  { %v10339_v9 = vadd.f32 %v10338_v32, %v10337_v56  ;;  %v10340_v15 = vpop.f32.mrb[130].mxu0  ;;  %11261 = vmatpush3.bf16.msra.mxu0 %v12682_v19  ;;  %v12693_v19 = vld [vmem:[#allocation7 + $0x3a0] sm:$0xff]  }
 0x6b1   :  { %v10341_v57 = vpop.f32.mrb[131].mxu0  ;;  %11262 = vmatprep.subr.bf16.mxu0 %v12683_v51 }
 0x6b2   :  { %v10342_v23 = vadd.f32 %v10341_v57, %v10340_v15  ;;  %v11434_v59 = vadd.f32 %v14112_v61, %v10339_v9 }
 0x6b3   :  { %11255 = vmatmul.mubr.bf16.gmra.mrb[156].mxu0 %v13922_v0 }
 0x6b4   :  { %11263 = vmatpush3.bf16.msra.mxu0 %v12683_v51  ;;  %11274 = vmatprep.mubr.bf16.mxu0 %v13899_v31  ;;  %v11444_v24 = vadd.f32 %v14116_v49, %v10342_v23  ;;  %v12687_v31 = vld [vmem:[#allocation7 + $0x2f0] sm:$0xff]  }
 0x6b5   :  { %11264 = vmatprep.subr.bf16.mxu0 %v12684_v22 }
 0x6b6   :  { %v10343_v6 = vpop.f32.mrb[132].mxu0 }
 0x6b7   :  { %v10344_v16 = vpop.f32.mrb[133].mxu0 }
 0x6b8   :  { %v10345_v60 = vadd.f32 %v10344_v16, %v10343_v6  ;;  %v10346_v50 = vpop.f32.mrb[134].mxu0  ;;  %11265 = vmatpush3.bf16.msra.mxu0 %v12684_v22 }
 0x6b9   :  { %v10347_v4 = vpop.f32.mrb[135].mxu0  ;;  %11266 = vmatprep.subr.bf16.mxu0 %v12685_v30 }
 0x6ba   :  { %v10348_v17 = vadd.f32 %v10347_v4, %v10346_v50  ;;  %v11429_v61 = vadd.f32 %v14120_v48, %v10345_v60  ;;  %v12689_v48 = vld [vmem:[#allocation7 + $0x380] sm:$0xff]  }
 0x6bc   :  { %11267 = vmatpush3.bf16.msra.mxu0 %v12685_v30  ;;  %v11439_v54 = vadd.f32 %v14123_v10, %v10348_v17 }
 0x6bd   :  { %11268 = vmatprep.subr.bf16.mxu0 %v12686_v53 }
 0x6be   :  { %v11180_v33 = vpop.f32.mrb[64].mxu0 }
 0x6bf   :  { %v14145_v49 = vadd.f32 %v11409_v45, %v11180_v33  ;;  %v6967_v42 = vpop.f32.mrb[65].mxu0  ;;  %v12700_v33 = vld [vmem:[%s14408_s7 + $0x8] sm:$0xff]  }
 0x6c0   :  { %v14147_v21 = vadd.f32 %v11414_v8, %v6967_v42  ;;  %v11181_v29 = vpop.f32.mrb[66].mxu0  ;;  %11269 = vmatpush3.bf16.msra.mxu0 %v12686_v53  ;;  %v12701_v42 = vld [vmem:[%s14408_s7 + $0x50] sm:$0xff]  }
 0x6c1   :  { %v14149_v43 = vadd.f32 %v11419_v41, %v11181_v29  ;;  %v6970_v62 = vpop.f32.mrb[67].mxu0  ;;  %11270 = vmatprep.subr.bf16.mxu0 %v12687_v31  ;;  %v12702_v29 = vld [vmem:[%s14408_s7 + $0x10] sm:$0xff]  }
 0x6c2   :  { %v14151_v63 = vadd.f32 %v11424_v25, %v6970_v62  ;;  %v12691_v25 = vld [vmem:[#allocation7 + $0x390] sm:$0xff]   ;;  %v12703_v62 = vld [vmem:[%s14408_s7 + $0x58] sm:$0xff]  }
 0x6c4   :  { %11271 = vmatpush3.bf16.msra.mxu0 %v12687_v31  ;;  %v12844_v31 = vmov 0.0  }
 0x6c5   :  { %11272 = vmatprep.subr.bf16.mxu0 %v12688_v55  ;;  %11306 = vmatprep.subr.bf16.mxu1 %v12844_v31 }
 0x6c6   :  { %v11184_v10 = vpop.f32.mrb[68].mxu0  ;;  %11322 = vmatprep.mubr.msk.bf16.mxu1 %vm12845_vm0, %v12844_v31 }
 0x6c7   :  { %v14153_v18 = vadd.f32 %v11429_v61, %v11184_v10  ;;  %v6983_v13 = vpop.f32.mrb[69].mxu0 }
 0x6c8   :  { %v14155_v27 = vadd.f32 %v11434_v59, %v6983_v13  ;;  %v11185_v8 = vpop.f32.mrb[70].mxu0  ;;  %11273 = vmatpush3.bf16.msra.mxu0 %v12688_v55  ;;  %v12704_v55 = vld [vmem:[%s14408_s7 + $0x18] sm:$0xff]  }
 0x6c9   :  { %v14157_v40 = vadd.f32 %v11439_v54, %v11185_v8  ;;  %v6986_v46 = vpop.f32.mrb[71].mxu0  ;;  %11282 = vmatprep.subr.bf16.mxu0 %v12689_v48 }
 0x6ca   :  { %v14159_v20 = vadd.f32 %v11444_v24, %v6986_v46 }
 0x6cb   :  { %11275 = vmatmul.mubr.bf16.vlgmr.msra.gmra.mrb[152].mxu0 %v13911_v34  ;;  %v12695_v34 = vld [vmem:[#allocation7 + $0x3b0] sm:$0xff]  }
 0x6cc   :  { %11278 = vmatprep.mubr.bf16.mxu0 %v13920_v58  ;;  %11283 = vmatpush3.bf16.msra.mxu0 %v12689_v48  ;;  %v12705_v48 = vld [vmem:[%s14408_s7 + $0x60] sm:$0xff]  }
 0x6cd   :  { %11284 = vmatprep.subr.bf16.mxu0 %v12690_v1 }
 0x6d0   :  { %11285 = vmatpush3.bf16.msra.mxu0 %v12690_v1 }
 0x6d1   :  { %11286 = vmatprep.subr.bf16.mxu0 %v12691_v25 }
 0x6d3   :  { %11279 = vmatmul.mubr.bf16.gmra.mrb[156].mxu0 %v13929_v3  ;;  %v12696_v3 = vld [vmem:[#allocation7 + $0x3b8] sm:$0xff]  }
 0x6d4   :  { %11287 = vmatpush3.bf16.msra.mxu0 %v12691_v25  ;;  %11298 = vmatprep.mubr.bf16.mxu0 %v13897_v12 }
 0x6d5   :  { %11288 = vmatprep.subr.bf16.mxu0 %v12692_v44 }
 0x6d8   :  { %11289 = vmatpush3.bf16.msra.mxu0 %v12692_v44 }
 0x6d9   :  { %11290 = vmatprep.subr.bf16.mxu0 %v12693_v19 }
 0x6dc   :  { %11291 = vmatpush3.bf16.msra.mxu0 %v12693_v19 }
 0x6dd   :  { %11292 = vmatprep.subr.bf16.mxu0 %v12694_v5 }
 0x6de   :  { %v10377_v58 = vpop.f32.mrb[136].mxu0 }
 0x6df   :  { %v10378_v45 = vpop.f32.mrb[137].mxu0 }
 0x6e0   :  { %v14165_v41 = vadd.f32 %v10378_v45, %v10377_v58  ;;  %v10380_v51 = vpop.f32.mrb[138].mxu0  ;;  %11293 = vmatpush3.bf16.msra.mxu0 %v12694_v5 }
 0x6e1   :  { %v10381_v56 = vpop.f32.mrb[139].mxu0  ;;  %11294 = vmatprep.subr.bf16.mxu0 %v12695_v34 }
 0x6e2   :  { %v10382_v32 = vadd.f32 %v10381_v56, %v10380_v51 }
 0x6e4   :  { %11295 = vmatpush3.bf16.msra.mxu0 %v12695_v34 }
 0x6e5   :  { %11296 = vmatprep.subr.bf16.mxu0 %v12696_v3 }
 0x6e6   :  { %v10383_v12 = vpop.f32.mrb[140].mxu0 }
 0x6e7   :  { %v10384_v9 = vpop.f32.mrb[141].mxu0 }
 0x6e8   :  { %v14167_v15 = vadd.f32 %v10384_v9, %v10383_v12  ;;  %v10386_v57 = vpop.f32.mrb[142].mxu0  ;;  %11297 = vmatpush3.bf16.msra.mxu0 %v12696_v3 }
 0x6e9   :  { %v10387_v22 = vpop.f32.mrb[143].mxu0  ;;  %11326 = vmatprep.subr.bf16.mxu0 %v12844_v31 }
 0x6ea   :  { %v10388_v23 = vadd.f32 %v10387_v22, %v10386_v57 }
 0x6eb   :  { %11299 = vmatmul.mubr.bf16.vlgmr.msra.gmra.mrb[152].mxu0 %v13909_v36  ;;  %v12697_v36 = vld [vmem:[%s14408_s7 + $0x40] sm:$0xff]  }
 0x6ec   :  { %11302 = vmatprep.mubr.bf16.mxu0 %v13922_v0  ;;  %v12698_v0 = vld [vmem:[%s14408_s7] sm:$0xff]   ;;  %11307 = vmatpush3.bf16.msra.mxu1 %v12697_v36 }
 0x6ed   :  { %11327 = vmatpush3.bf16.msra.mxu0 %v12698_v0  ;;  %11308 = vmatprep.subr.bf16.mxu1 %v12844_v31  ;;  %v12706_v0 = vld [vmem:[%s14408_s7 + $0x20] sm:$0xff]  }
 0x6ee   :  { %v10389_v59 = vpop.f32.mrb[144].mxu0  ;;  %11328 = vmatprep.subr.bf16.mxu0 %v12844_v31 }
 0x6ef   :  { %v10390_v24 = vpop.f32.mrb[145].mxu0 }
 0x6f0   :  { %v10391_v30 = vadd.f32 %v10390_v24, %v10389_v59  ;;  %v10392_v6 = vpop.f32.mrb[146].mxu0 }
 0x6f1   :  { %v10393_v16 = vpop.f32.mrb[147].mxu0  ;;  %11329 = vmatpush3.bf16.msra.mxu0 %v12700_v33  ;;  %v12712_v33 = vld [vmem:[%s14408_s7 + $0x38] sm:$0xff]  }
 0x6f2   :  { %v10394_v60 = vadd.f32 %v10393_v16, %v10392_v6  ;;  %11330 = vmatprep.subr.bf16.mxu0 %v12844_v31 }
 0x6f3   :  { %11303 = vmatmul.mubr.bf16.gmra.mrb[156].mxu0 %v13931_v47  ;;  %v12699_v47 = vld [vmem:[%s14408_s7 + $0x48] sm:$0xff]  }
 0x6f4   :  { %11309 = vmatpush3.bf16.msra.mxu1 %v12699_v47  ;;  %v12711_v47 = vld [vmem:[%s14408_s7 + $0x78] sm:$0xff]   ;;  %11342 = vmatprep.mubr.msk.bf16.mxu0 %vm12845_vm0, %v12844_v31 }
 0x6f5   :  { %11310 = vmatprep.subr.bf16.mxu1 %v12844_v31  ;;  %11331 = vmatpush3.bf16.msra.mxu0 %v12702_v29 }
 0x6f6   :  { %v10395_v50 = vpop.f32.mrb[148].mxu0  ;;  %11332 = vmatprep.subr.bf16.mxu0 %v12844_v31 }
 0x6f7   :  { %v10396_v4 = vpop.f32.mrb[149].mxu0 }
 0x6f8   :  { %v14172_v53 = vadd.f32 %v10396_v4, %v10395_v50  ;;  %v10398_v17 = vpop.f32.mrb[150].mxu0  ;;  %11311 = vmatpush3.bf16.msra.mxu1 %v12701_v42 }
 0x6f9   :  { %v10399_v61 = vpop.f32.mrb[151].mxu0  ;;  %11312 = vmatprep.subr.bf16.mxu1 %v12844_v31  ;;  %11333 = vmatpush3.bf16.msra.mxu0 %v12704_v55 }
 0x6fa   :  { %v10400_v54 = vadd.f32 %v10399_v61, %v10398_v17  ;;  %11334 = vmatprep.subr.bf16.mxu0 %v12844_v31 }
 0x6fc   :  { %11313 = vmatpush3.bf16.msra.mxu1 %v12703_v62 }
 0x6fd   :  { %11314 = vmatprep.subr.bf16.mxu1 %v12844_v31  ;;  %11335 = vmatpush3.bf16.msra.mxu0 %v12706_v0 }
 0x6fe   :  { %11336 = vmatprep.subr.bf16.mxu0 %v12844_v31 }
 0x700   :  { %11315 = vmatpush3.bf16.msra.mxu1 %v12705_v48 }
 0x701   :  { %11316 = vmatprep.subr.bf16.mxu1 %v12844_v31 }
 0x71e   :  { %v10429_v10 = vpop.f32.mrb[160].mxu0 }
 0x71f   :  { %v10430_v13 = vpop.f32.mrb[161].mxu0 }
 0x720   :  { %v10431_v8 = vadd.f32 %v10430_v13, %v10429_v10  ;;  %v10432_v46 = vpop.f32.mrb[162].mxu0 }
 0x721   :  { %v10433_v1 = vpop.f32.mrb[163].mxu0 }
 0x722   :  { %v11451_v25 = vadd.f32 %v10431_v8, %v14165_v41  ;;  %v10434_v44 = vadd.f32 %v10433_v1, %v10432_v46 }
 0x724   :  { %v11461_v19 = vadd.f32 %v10434_v44, %v10382_v32 }
 0x726   :  { %v10435_v5 = vpop.f32.mrb[164].mxu0 }
 0x727   :  { %v10436_v34 = vpop.f32.mrb[165].mxu0 }
 0x728   :  { %v10437_v58 = vadd.f32 %v10436_v34, %v10435_v5  ;;  %v10438_v45 = vpop.f32.mrb[166].mxu0 }
 0x729   :  { %v10439_v51 = vpop.f32.mrb[167].mxu0 }
 0x72a   :  { %v11446_v56 = vadd.f32 %v10437_v58, %v14167_v15  ;;  %v10440_v3 = vadd.f32 %v10439_v51, %v10438_v45 }
 0x72c   :  { %v11456_v12 = vadd.f32 %v10440_v3, %v10388_v23 }
 0x72e   :  { %v10441_v9 = vpop.f32.mrb[168].mxu0 }
 0x72f   :  { %v10442_v57 = vpop.f32.mrb[169].mxu0 }
 0x730   :  { %v10443_v22 = vadd.f32 %v10442_v57, %v10441_v9  ;;  %v10444_v59 = vpop.f32.mrb[170].mxu0 }
 0x731   :  { %v10445_v24 = vpop.f32.mrb[171].mxu0 }
 0x732   :  { %v14214_v6 = vadd.f32 %v10443_v22, %v10391_v30  ;;  %v10446_v16 = vadd.f32 %v10445_v24, %v10444_v59  ;;  %v12707_v30 = vld [vmem:[%s14408_s7 + $0x68] sm:$0xff]  }
 0x733   :  { %11317 = vmatpush3.bf16.msra.mxu1 %v12707_v30 }
 0x734   :  { %v14216_v41 = vadd.f32 %v10446_v16, %v10394_v60  ;;  %v12708_v60 = vld [vmem:[%s14408_s7 + $0x28] sm:$0xff]   ;;  %11318 = vmatprep.subr.bf16.mxu1 %v12844_v31 }
 0x735   :  { %11337 = vmatpush3.bf16.msra.mxu0 %v12708_v60 }
 0x736   :  { %v10447_v32 = vpop.f32.mrb[172].mxu0  ;;  %11338 = vmatprep.subr.bf16.mxu0 %v12844_v31 }
 0x737   :  { %v10448_v50 = vpop.f32.mrb[173].mxu0 }
 0x738   :  { %v10449_v4 = vadd.f32 %v10448_v50, %v10447_v32  ;;  %v10450_v17 = vpop.f32.mrb[174].mxu0 }
 0x739   :  { %v10451_v61 = vpop.f32.mrb[175].mxu0 }
 0x73a   :  { %v14219_v36 = vadd.f32 %v10449_v4, %v14172_v53  ;;  %v10452_v15 = vadd.f32 %v10451_v61, %v10450_v17  ;;  %v12709_v53 = vld [vmem:[%s14408_s7 + $0x70] sm:$0xff]   ;;  %v14502_v61 = vld [vmem:[#allocation36_spill] sm:$0xff] }
 0x73b   :  { %11319 = vmatpush3.bf16.msra.mxu1 %v12709_v53 }
 0x73c   :  { %v14221_v23 = vadd.f32 %v10452_v15, %v10400_v54  ;;  %v12710_v54 = vld [vmem:[%s14408_s7 + $0x30] sm:$0xff]   ;;  %11320 = vmatprep.subr.bf16.mxu1 %v12844_v31 }
 0x73d   :  { %11339 = vmatpush3.bf16.msra.mxu0 %v12710_v54  ;;  %v14503_v54 = vld [vmem:[#allocation37_spill] sm:$0xff] }
 0x73e   :  { %11340 = vmatprep.subr.bf16.mxu0 %v12844_v31 }
 0x73f   :  { %11321 = vmatpush3.bf16.msra.mxu1 %v12711_v47  ;;  %v14504_v47 = vld [vmem:[#allocation38_spill] sm:$0xff] }
 0x740   :  { %11346 = vmatprep.subr.bf16.mxu1 %v12844_v31 }
 0x741   :  { %11341 = vmatpush3.bf16.msra.mxu0 %v12712_v33 }
 0x742   :  { %11366 = vmatprep.subr.bf16.mxu0 %v12844_v31 }
 0x75e   :  { %v10481_v42 = vpop.f32.mrb[176].mxu0 }
 0x75f   :  { %v10482_v29 = vpop.f32.mrb[177].mxu0 }
 0x760   :  { %v10483_v62 = vadd.f32 %v10482_v29, %v10481_v42  ;;  %v10484_v55 = vpop.f32.mrb[178].mxu0  ;;  %v14505_v42 = vld [vmem:[#allocation40_spill] sm:$0xff] }
 0x761   :  { %v10485_v48 = vpop.f32.mrb[179].mxu0 }
 0x762   :  { %v11452_v10 = vadd.f32 %v11451_v25, %v10483_v62  ;;  %v10486_v13 = vadd.f32 %v10485_v48, %v10484_v55 }
 0x764   :  { %v11462_v8 = vadd.f32 %v11461_v19, %v10486_v13  ;;  %v11453_v46 = vadd.f32 %v11452_v10, %v13961_v7 }
 0x766   :  { %v10487_v1 = vpop.f32.mrb[180].mxu0  ;;  %v11454_v44 = vadd.f32 %v11453_v46, %v13997_v14  ;;  %v11463_v5 = vadd.f32 %v11462_v8, %v13966_v35 }
 0x767   :  { %v10488_v34 = vpop.f32.mrb[181].mxu0 }
 0x768   :  { %v10489_v58 = vadd.f32 %v10488_v34, %v10487_v1  ;;  %v10490_v45 = vpop.f32.mrb[182].mxu0  ;;  %v11464_v51 = vadd.f32 %v11463_v5, %v14000_v39 }
 0x769   :  { %v10491_v3 = vpop.f32.mrb[183].mxu0 }
 0x76a   :  { %v11447_v9 = vadd.f32 %v11446_v56, %v10489_v58  ;;  %v10492_v57 = vadd.f32 %v10491_v3, %v10490_v45 }
 0x76c   :  { %v11457_v22 = vadd.f32 %v11456_v12, %v10492_v57  ;;  %v11448_v25 = vadd.f32 %v11447_v9, %v13971_v37  ;;  %v14501_v37 = vld [vmem:[#allocation39_spill] sm:$0xff] }
 0x76e   :  { %v10493_v59 = vpop.f32.mrb[184].mxu0  ;;  %v11449_v19 = vadd.f32 %v11448_v25, %v14003_v52  ;;  %v11458_v7 = vadd.f32 %v11457_v22, %v13975_v2 }
 0x76f   :  { %v10494_v24 = vpop.f32.mrb[185].mxu0 }
 0x770   :  { %v10495_v14 = vadd.f32 %v10494_v24, %v10493_v59  ;;  %v10496_v16 = vpop.f32.mrb[186].mxu0  ;;  %v11459_v35 = vadd.f32 %v11458_v7, %v14006_v26  ;;  %v12713_v7 = vld [vmem:[%s14408_s7 + $0x80] sm:$0xff]  }
 0x771   :  { %v10497_v32 = vpop.f32.mrb[187].mxu0 }
 0x772   :  { %v11472_v50 = vadd.f32 %v14214_v6, %v10495_v14  ;;  %v10498_v39 = vadd.f32 %v10497_v32, %v10496_v16  ;;  %v12714_v16 = vld [vmem:[%s14408_s7 + $0xc0] sm:$0xff]  }
 0x774   :  { %v11482_v56 = vadd.f32 %v14216_v41, %v10498_v39  ;;  %v11473_v12 = vadd.f32 %v11472_v50, %v13981_v28  ;;  %v12718_v39 = vld [vmem:[%s14408_s7 + $0xd0] sm:$0xff]  }
 0x776   :  { %v10499_v4 = vpop.f32.mrb[188].mxu0  ;;  %v11474_v17 = vadd.f32 %v11473_v12, %v14501_v37  ;;  %v11483_v52 = vadd.f32 %v11482_v56, %v14502_v61  ;;  %v12719_v56 = vld [vmem:[%s14408_s7 + $0x98] sm:$0xff]   ;;  %v12722_v37 = vld [vmem:[%s14408_s7 + $0xe0] sm:$0xff]   ;;  %v12724_v61 = vld [vmem:[%s14408_s7 + $0xe8] sm:$0xff]  }
 0x777   :  { %v10500_v15 = vpop.f32.mrb[189].mxu0  ;;  %v12720_v12 = vld [vmem:[%s14408_s7 + $0xd8] sm:$0xff]  }
 0x778   :  { %v10501_v2 = vadd.f32 %v10500_v15, %v10499_v4  ;;  %v10502_v0 = vpop.f32.mrb[190].mxu0  ;;  %v11484_v30 = vadd.f32 %v11483_v52, %v14011_v11  ;;  %v12721_v4 = vld [vmem:[%s14408_s7 + $0xa0] sm:$0xff]   ;;  %v12725_v52 = vld [vmem:[%s14408_s7 + $0xb0] sm:$0xff]  }
 0x779   :  { %v10503_v60 = vpop.f32.mrb[191].mxu0 }
 0x77a   :  { %v11467_v26 = vadd.f32 %v14219_v36, %v10501_v2  ;;  %v10504_v53 = vadd.f32 %v10503_v60, %v10502_v0  ;;  %v12726_v2 = vld [vmem:[%s14408_s7 + $0xf0] sm:$0xff]  }
 0x77c   :  { %v11477_v6 = vadd.f32 %v14221_v23, %v10504_v53  ;;  %v11468_v41 = vadd.f32 %v11467_v26, %v14503_v54  ;;  %v12728_v26 = vld [vmem:[%s14408_s7 + $0xf8] sm:$0xff]  }
 0x77e   :  { %v11469_v28 = vadd.f32 %v11468_v41, %v14013_v38  ;;  %v11478_v33 = vadd.f32 %v11477_v6, %v14504_v47  ;;  %v14281_v38 = vld [vmem:[%s14407_s6] ss:$0 sm:$0xff]  ;;  %v12731_v47 = vld [vmem:[%s14410_s9 + $0x10] sm:$0xff]  }
 0x77f   :  { %v12729_v41 = vld [vmem:[%s14410_s9] sm:$0xff]  }
 0x780   :  { %v11479_v29 = vadd.f32 %v11478_v33, %v14505_v42  ;;  %v12732_v33 = vld [vmem:[%s14410_s9 + $0x18] sm:$0xff]   ;;  %v12733_v42 = vld [vmem:[%s14410_s9 + $0x20] sm:$0xff]  }
 0x7be   :  { %v11300_v62 = vpop.f32.mrb[152].mxu0 }
 0x7bf   :  { %v11450_v55 = vadd.f32 %v11449_v19, %v11300_v62  ;;  %v8605_v48 = vpop.f32.mrb[153].mxu0  ;;  %v12735_v62 = vld [vmem:[%s14410_s9 + $0x30] sm:$0xff]  }
 0x7c0   :  { %v11455_v10 = vadd.f32 %v11454_v44, %v8605_v48  ;;  %v11301_v13 = vpop.f32.mrb[154].mxu0 }
 0x7c1   :  { %v8647_v11 = vmax.f32 %v14145_v49, %v11450_v55  ;;  %v11460_v8 = vadd.f32 %v11459_v35, %v11301_v13  ;;  %v8608_v36 = vpop.f32.mrb[155].mxu0  ;;  %v12736_v55 = vld [vmem:[%s14410_s9 + $0x38] sm:$0xff]  }
 0x7c2   :  { %v8645_v46 = vmax.f32 %v14147_v21, %v11455_v10  ;;  %v11465_v23 = vadd.f32 %v11464_v51, %v8608_v36 }
 0x7c3   :  { %v8648_v1 = vmax.f32 %v14149_v43, %v11460_v8 }
 0x7c4   :  { %v8646_v5 = vmax.f32 %v14151_v63, %v11465_v23 }
 0x7c5   :  { %v8654_v34 = vmax.f32 %v8647_v11, %v8648_v1 }
 0x7c6   :  { %v8653_v58 = vmax.f32 %v8645_v46, %v8646_v5  ;;  %v11304_v44 = vpop.f32.mrb[156].mxu0 }
 0x7c7   :  { %v8664_v45 = vadd.f32 %v14281_v38, %v8654_v34  ;;  %v11470_v49 = vadd.f32 %v11469_v28, %v11304_v44  ;;  %v8621_v3 = vpop.f32.mrb[157].mxu0  ;;  %v12730_v28 = vld [vmem:[%s14410_s9 + $0x8] sm:$0xff]  }
 0x7c8   :  { %v8663_v9 = vadd.f32 %v14281_v38, %v8653_v58  ;;  %v11475_v21 = vadd.f32 %v11474_v17, %v8621_v3  ;;  %v11305_v51 = vpop.f32.mrb[158].mxu0  ;;  %v12723_v17 = vld [vmem:[%s14408_s7 + $0xa8] sm:$0xff]  }
 0x7c9   :  { %v8668_v57 = vmax.f32 %v8664_v45, 0.0  ;;  %v8651_v43 = vmax.f32 %v14153_v18, %v11470_v49  ;;  %v11480_v22 = vadd.f32 %v11479_v29, %v11305_v51  ;;  %v8624_v25 = vpop.f32.mrb[159].mxu0  ;;  %v12734_v29 = vld [vmem:[%s14410_s9 + $0x28] sm:$0xff]  }
 0x7ca   :  { %v8667_v59 = vmax.f32 %v8663_v9, 0.0  ;;  %v8649_v19 = vmax.f32 %v14155_v27, %v11475_v21  ;;  %v11485_v63 = vadd.f32 %v11484_v30, %v8624_v25  ;;  %v12715_v27 = vld [vmem:[%s14408_s7 + $0x88] sm:$0xff]   ;;  %v12727_v30 = vld [vmem:[%s14408_s7 + $0xb8] sm:$0xff]  }
 0x7cb   :  { %v8688_v24 = vpack.c.bf16 %v8668_v57, %v8668_v57  ;;  %v8652_v14 = vmax.f32 %v14157_v40, %v11480_v22  ;;  %v12716_v40 = vld [vmem:[%s14408_s7 + $0xc8] sm:$0xff]   ;;  %v9892_v22 = vld [vmem:[%s14411_s10] ss:$0 sm:$0xff] }
 0x7cc   :  { %v8671_v35 = vpack.c.bf16 %v8667_v59, %v8667_v59  ;;  %v8650_v18 = vmax.f32 %v14159_v20, %v11485_v63  ;;  %v12717_v20 = vld [vmem:[%s14408_s7 + $0x90] sm:$0xff]  }
 0x7cd   :  { %v8656_v32 = vmax.f32 %v8651_v43, %v8652_v14  ;;  %11323 = vmatmul.mubr.bf16.vlgmr.msra.gmra.mrb[128].mxu1 %v8688_v24 }
 0x7ce   :  { %v8655_v50 = vmax.f32 %v8649_v19, %v8650_v18  ;;  %11347 = vmatpush3.bf16.msra.mxu1 %v12713_v7  ;;  %11343 = vmatmul.mubr.bf16.vlgmr.msra.gmra.mrb[192].mxu0 %v8671_v35 }
 0x7cf   :  { %11367 = vmatpush3.bf16.msra.mxu0 %v12714_v16  ;;  %11348 = vmatprep.subr.bf16.mxu1 %v12844_v31  ;;  %v8666_v0 = vadd.f32 %v14281_v38, %v8656_v32 }
 0x7d0   :  { %11368 = vmatprep.subr.bf16.mxu0 %v12844_v31  ;;  %11362 = vmatprep.mubr.msk.bf16.mxu1 %vm12845_vm0, %v12844_v31  ;;  %v8665_v15 = vadd.f32 %v14281_v38, %v8655_v50 }
 0x7d1   :  { %11382 = vmatprep.mubr.msk.bf16.mxu0 %vm12845_vm0, %v12844_v31  ;;  %v8670_v53 = vmax.f32 %v8666_v0, 0.0 }
 0x7d2   :  { %11349 = vmatpush3.bf16.msra.mxu1 %v12715_v27  ;;  %v8669_v60 = vmax.f32 %v8665_v15, 0.0 }
 0x7d3   :  { %11369 = vmatpush3.bf16.msra.mxu0 %v12716_v40  ;;  %11350 = vmatprep.subr.bf16.mxu1 %v12844_v31  ;;  %v8989_v54 = vpack.c.bf16 %v8670_v53, %v8670_v53 }
 0x7d4   :  { %11370 = vmatprep.subr.bf16.mxu0 %v12844_v31  ;;  %v8882_v6 = vpack.c.bf16 %v8669_v60, %v8669_v60 }
 0x7d6   :  { %11351 = vmatpush3.bf16.msra.mxu1 %v12717_v20 }
 0x7d7   :  { %11371 = vmatpush3.bf16.msra.mxu0 %v12718_v39  ;;  %11352 = vmatprep.subr.bf16.mxu1 %v12844_v31 }
 0x7d8   :  { %11372 = vmatprep.subr.bf16.mxu0 %v12844_v31 }
 0x7da   :  { %11353 = vmatpush3.bf16.msra.mxu1 %v12719_v56 }
 0x7db   :  { %11373 = vmatpush3.bf16.msra.mxu0 %v12720_v12  ;;  %11354 = vmatprep.subr.bf16.mxu1 %v12844_v31 }
 0x7dc   :  { %11374 = vmatprep.subr.bf16.mxu0 %v12844_v31 }
 0x7de   :  { %11355 = vmatpush3.bf16.msra.mxu1 %v12721_v4 }
 0x7df   :  { %11375 = vmatpush3.bf16.msra.mxu0 %v12722_v37  ;;  %11356 = vmatprep.subr.bf16.mxu1 %v12844_v31 }
 0x7e0   :  { %11376 = vmatprep.subr.bf16.mxu0 %v12844_v31 }
 0x7e2   :  { %11357 = vmatpush3.bf16.msra.mxu1 %v12723_v17 }
 0x7e3   :  { %11377 = vmatpush3.bf16.msra.mxu0 %v12724_v61  ;;  %11358 = vmatprep.subr.bf16.mxu1 %v12844_v31 }
 0x7e4   :  { %11378 = vmatprep.subr.bf16.mxu0 %v12844_v31 }
 0x7e6   :  { %11359 = vmatpush3.bf16.msra.mxu1 %v12725_v52 }
 0x7e7   :  { %11379 = vmatpush3.bf16.msra.mxu0 %v12726_v2  ;;  %11360 = vmatprep.subr.bf16.mxu1 %v12844_v31 }
 0x7e8   :  { %11380 = vmatprep.subr.bf16.mxu0 %v12844_v31 }
 0x7ea   :  { %11361 = vmatpush3.bf16.msra.mxu1 %v12727_v30 }
 0x7eb   :  { %11381 = vmatpush3.bf16.msra.mxu0 %v12728_v26  ;;  %11386 = vmatprep.subr.bf16.mxu1 %v12844_v31 }
 0x7ed   :  { %11363 = vmatmul.mubr.bf16.vlgmr.msra.gmra.mrb[132].mxu1 %v8882_v6 }
 0x7ee   :  { %11383 = vmatmul.mubr.bf16.vlgmr.msra.gmra.mrb[196].mxu0 %v8989_v54  ;;  %11402 = vmatprep.mubr.msk.bf16.mxu1 %vm12845_vm0, %v12844_v31 }
 0x7ef   :  { %11387 = vmatpush3.bf16.msra.mxu1 %v12729_v41 }
 0x7f0   :  { %11388 = vmatprep.subr.bf16.mxu1 %v12844_v31 }
 0x7f3   :  { %11389 = vmatpush3.bf16.msra.mxu1 %v12730_v28 }
 0x7f4   :  { %11390 = vmatprep.subr.bf16.mxu1 %v12844_v31 }
 0x7f7   :  { %11391 = vmatpush3.bf16.msra.mxu1 %v12731_v47 }
 0x7f8   :  { %11392 = vmatprep.subr.bf16.mxu1 %v12844_v31 }
 0x7fb   :  { %11393 = vmatpush3.bf16.msra.mxu1 %v12732_v33 }
 0x7fc   :  { %11394 = vmatprep.subr.bf16.mxu1 %v12844_v31 }
 0x7ff   :  { %11395 = vmatpush3.bf16.msra.mxu1 %v12733_v42 }
 0x800   :  { %11396 = vmatprep.subr.bf16.mxu1 %v12844_v31 }
 0x803   :  { %11397 = vmatpush3.bf16.msra.mxu1 %v12734_v29 }
 0x804   :  { %11398 = vmatprep.subr.bf16.mxu1 %v12844_v31 }
 0x807   :  { %11399 = vmatpush3.bf16.msra.mxu1 %v12735_v62 }
 0x808   :  { %11400 = vmatprep.subr.bf16.mxu1 %v12844_v31  ;;  %v9891_v31 = vld [vmem:[%s14409_s8] ss:$0 sm:$0xff] }
 0x80b   :  { %11401 = vmatpush3.bf16.msra.mxu1 %v12736_v55 }
 0x8a0   :  { %v8788_v48 = vpop.f32.mrb[128].mxu1 }
 0x8a1   :  { %v11324_v10 = vpop.f32.mrb[129].mxu1  ;;  %v8876_v13 = vpop.f32.mrb[192].mxu0 }
 0x8a2   :  { %v8877_v11 = vadd.f32 %v8876_v13, %v8788_v48  ;;  %v8791_v8 = vpop.f32.mrb[130].mxu1  ;;  %v11344_v36 = vpop.f32.mrb[193].mxu0 }
 0x8a3   :  { %v11325_v46 = vpop.f32.mrb[131].mxu1  ;;  %v8879_v23 = vpop.f32.mrb[194].mxu0 }
 0x8a4   :  { %v11345_v1 = vpop.f32.mrb[195].mxu0 }
 0x8c0   :  { %v8982_v38 = vpop.f32.mrb[132].mxu1 }
 0x8c1   :  { %v8988_v5 = vadd.f32 %v8982_v38, %v8877_v11  ;;  %v11364_v34 = vpop.f32.mrb[133].mxu1  ;;  %v9089_v58 = vpop.f32.mrb[196].mxu0 }
 0x8c2   :  { %v8985_v44 = vpop.f32.mrb[134].mxu1  ;;  %v11384_v45 = vpop.f32.mrb[197].mxu0 }
 0x8c3   :  { %v9095_v49 = vadd.f32 %v9089_v58, %v8988_v5  ;;  %v11365_v3 = vpop.f32.mrb[135].mxu1  ;;  %v9092_v9 = vpop.f32.mrb[198].mxu0 }
 0x8c4   :  { %v11385_v21 = vpop.f32.mrb[199].mxu0 }
 0x8c5   :  { %v9103_v51 = vadd.f32 %v9891_v31, %v9095_v49 }
 0x8c7   :  { %v9104_v57 = vmax.f32 %v9103_v51, 0.0 }
 0x8c9   :  { %v9105_v43 = vpack.c.bf16 %v9104_v57, %v9104_v57 }
 0x8cb   :  { %11403 = vmatmul.mubr.bf16.vlgmr.msra.gmra.mrb[136].mxu1 %v9105_v43 }
 0x99e   :  { %v9211_v25 = vpop.f32.mrb[136].mxu1 }
 0x99f   :  { %v9212_v59 = vadd.f32 %v9892_v22, %v9211_v25  ;;  %v11404_v19 = vpop.f32.mrb[137].mxu1 }
 0x9a0   :  { %v9214_v63 = vpop.f32.mrb[138].mxu1 }
 0x9a1   :  { %9217 = vmax.xlane.f32.xlu0 %v9212_v59  ;;  %v11405_v7 = vpop.f32.mrb[139].mxu1 }
 0xa2e   :  { %v9218_v24 = vpop.xlane.xlu0 %9217 }
 0xa2f   :  { %v9219_v14 = vsub.f32 %v9212_v59, %v9218_v24 }
 0xa31   :  { %v9220_v16 = vmul.f32 1.442695, %v9219_v14 }
 0xa33   :  { %12737 = vpow2.f32 %v9220_v16 }
 0xa3d   :  { %v12738_v35 = vpop.eup %12737 }
 0xa3e   :  { %9222 = vadd.xlane.f32.xlu0 %v12738_v35 }
 0xacb   :  { %v9223_v18 = vpop.xlane.xlu0 %9222 }
 0xacc   :  { %12739 = vrcp.f32 %v9223_v18 }
 0xad6   :  { %v12740_v32 = vpop.eup %12739 }
 0xad7   :  { %v9225_v50 = vmul.f32 %v12740_v32, %v12738_v35 }
 0xad9   :  { %9226 = vst [vmem:[%s14412_s11] sm:$0xff] %v9225_v50 }
 0xada   :  { %9231 = vsyncpa [#allocation3], 1 }
 0xadb   :  { %9232 = vsyncpa [#allocation5], 1 }
 0xadc   :  { %9233 = vsyncpa [#allocation8], 1 }

</bundles_post_ra>
